<compile_context>
chip_gen: v5e
topology: v5e:2x2
jax: 0.10.0
libtpu: 0.0.40
codegen_flags: <defaults>
</compile_context>

<pallas_src>
import functools

import jax
import jax.numpy as jnp
from jax.experimental import pallas as pl
from jax.experimental.pallas import tpu as pltpu

F32 = jnp.float32
BF16 = jnp.bfloat16


# --------------------------------------------------------------------------------------
# LSTM cell step.  Gate order i|f|g|o packed along the 4H (=128 for H=32) lane dim.
#   xg   : [B, 4H] f32   precomputed x @ W_ih + (b_ih + b_hh)
#   h4   : [B, 4H] f32   hidden state; lanes [0,H) are the real h, rest is benign
#   c4   : [B, 4H] f32   cell state;   lanes [0,H) are the real c
#   whh4 : [4H, 4H] bf16 W_hh^T zero-padded in rows [H,4H) so extra lanes contribute 0
# --------------------------------------------------------------------------------------
def _lstm_cell(xg, h4, c4, whh4, H):
    gates = xg + jnp.dot(h4.astype(BF16), whh4, preferred_element_type=F32)
    sig = jax.nn.sigmoid(gates)          # whole 128-lane block (EUP)
    th = jnp.tanh(gates)
    # align f / g / o gate blocks onto lanes [0,H) with lane rolls (XLU, no masked slices)
    f_al = pltpu.roll(sig, 3 * H, 1)
    g_al = pltpu.roll(th, 2 * H, 1)
    o_al = pltpu.roll(sig, 1 * H, 1)
    c4_new = f_al * c4 + sig * g_al      # lanes [0,H): f*c + i*g   (rest: bounded garbage)
    h4_new = o_al * jnp.tanh(c4_new)     # lanes [0,H): o*tanh(c)
    return h4_new, c4_new


# --------------------------------------------------------------------------------------
# Fused kernel: GCN(2 layers) + mean-pool + 2-layer BiLSTM + fused lane-padded heads
# --------------------------------------------------------------------------------------
def gnn_fused_kernel(
    a_ref, x_ref, w1_ref, bg1_ref, w2_ref, bg2_ref, pool_ref,
    xp_ref,
    wih0f_ref, whh0f_ref, b0f_ref, wih0b_ref, whh0b_ref, b0b_ref,
    wih1ff_ref, wih1fb_ref, whh1f_ref, bl1f_ref,
    wih1bf_ref, wih1bb_ref, whh1b_ref, bl1b_ref,
    whdg_ref, whdf_ref, whdb_ref, bhd_ref,
    out_ref,
    xg0f_scr, xg0b_scr, h0f_scr, h0b_scr, xg1f_scr, xg1b_scr,
):
    H = w1_ref.shape[1]
    B = pool_ref.shape[0]
    TB = xp_ref.shape[0]
    T = TB // B

    # ----------------------------- GCN branch: 2 convs + ReLU + global mean pool -------
    xw1 = jnp.dot(x_ref[...], w1_ref[...], preferred_element_type=F32)
    g1 = jnp.dot(a_ref[...], xw1.astype(BF16), preferred_element_type=F32) + bg1_ref[...]
    g1 = jnp.maximum(g1, 0.0)            # .relu(); dropout identity in eval
    gw2 = jnp.dot(g1.astype(BF16), w2_ref[...], preferred_element_type=F32)
    g2 = jnp.dot(a_ref[...], gw2.astype(BF16), preferred_element_type=F32) + bg2_ref[...]
    graph_embed = jnp.dot(pool_ref[...], g2.astype(BF16), preferred_element_type=F32)  # [B,H]

    # ----------------------------- LSTM layer 0: hoisted input projections -------------
    xp = xp_ref[...]                                                    # [T*B, P] bf16
    xg0f_scr[...] = jnp.dot(xp, wih0f_ref[...], preferred_element_type=F32) + b0f_ref[...]
    xg0b_scr[...] = jnp.dot(xp, wih0b_ref[...], preferred_element_type=F32) + b0b_ref[...]

    whh0f = whh0f_ref[...]
    whh0b = whh0b_ref[...]
    zero = jnp.zeros((B, 4 * H), F32)
    h0f, c0f = zero, zero
    h0b, c0b = zero, zero
    # fully-unrolled time loop; fwd & bwd are independent chains issued together
    for s in range(T):
        tf, tb = s, T - 1 - s
        h0f, c0f = _lstm_cell(xg0f_scr[tf * B:(tf + 1) * B, :], h0f, c0f, whh0f, H)
        h0b, c0b = _lstm_cell(xg0b_scr[tb * B:(tb + 1) * B, :], h0b, c0b, whh0b, H)
        h0f_scr[tf * B:(tf + 1) * B, :] = h0f      # lane-dense [B,4H] stores
        h0b_scr[tb * B:(tb + 1) * B, :] = h0b

    # ----------------------------- LSTM layer 1: hoisted input projections -------------
    h0f_all = h0f_scr[...].astype(BF16)            # [T*B, 4H]
    h0b_all = h0b_scr[...].astype(BF16)
    xg1f_scr[...] = (jnp.dot(h0f_all, wih1ff_ref[...], preferred_element_type=F32)
                     + jnp.dot(h0b_all, wih1fb_ref[...], preferred_element_type=F32)
                     + bl1f_ref[...])
    xg1b_scr[...] = (jnp.dot(h0f_all, wih1bf_ref[...], preferred_element_type=F32)
                     + jnp.dot(h0b_all, wih1bb_ref[...], preferred_element_type=F32)
                     + bl1b_ref[...])

    whh1f = whh1f_ref[...]
    whh1b = whh1b_ref[...]
    h1f, c1f = zero, zero
    h1b, c1b = zero, zero
    for s in range(T):
        tf, tb = s, T - 1 - s
        h1f, c1f = _lstm_cell(xg1f_scr[tf * B:(tf + 1) * B, :], h1f, c1f, whh1f, H)
        h1b, c1b = _lstm_cell(xg1b_scr[tb * B:(tb + 1) * B, :], h1b, c1b, whh1b, H)
    # h1f / h1b (lanes [0,H)) == h_n[-2] / h_n[-1]; rnn_dropout identity in eval

    # ----------------------------- fused lane-padded heads -----------------------------
    out_ref[...] = (
        jnp.dot(graph_embed.astype(BF16), whdg_ref[...], preferred_element_type=F32)
        + jnp.dot(h1f.astype(BF16), whdf_ref[...], preferred_element_type=F32)
        + jnp.dot(h1b.astype(BF16), whdb_ref[...], preferred_element_type=F32)
        + bhd_ref[...])


# --------------------------------------------------------------------------------------
# Graph preprocessing (plain JAX, fused by jit around the kernel)
# --------------------------------------------------------------------------------------
def pad_features(x, target_dim):
    n, f = x.shape
    if f < target_dim:
        x = jnp.concatenate([x, jnp.zeros((n, target_dim - f), x.dtype)], axis=1)
    return x


def build_gcn_norm_adj(edge_index, num_nodes):
    # A_hat = D^-1/2 (A + I) D^-1/2 ; messages flow src -> dst (row = dst)
    adj = jnp.zeros((num_nodes, num_nodes), F32)
    adj = adj.at[edge_index[1], edge_index[0]].add(1.0)   # duplicates accumulate (PyG-like)
    adj = adj + jnp.eye(num_nodes, dtype=F32)
    deg = adj.sum(axis=1)
    dinv = 1.0 / jnp.sqrt(deg)
    return dinv[:, None] * adj * dinv[None, :]


def build_mean_pool(batch, num_graphs):
    onehot = (batch[None, :] == jnp.arange(num_graphs)[:, None]).astype(F32)
    counts = jnp.maximum(onehot.sum(axis=1, keepdims=True), 1.0)
    return onehot / counts


# --------------------------------------------------------------------------------------
# Parameter init in PyTorch-native layout (weight-porting friendly)
# --------------------------------------------------------------------------------------
def init_params(key, svg_dim, pcap_dim, hidden_dim, num_processes, num_ips):
    H = hidden_dim
    shapes = {
        "conv1_w": (H, svg_dim), "conv1_b": (H,),
        "conv2_w": (H, H), "conv2_b": (H,),
        # nn.LSTM(pcap_dim, H, num_layers=2, bidirectional=True), gate order i|f|g|o
        "wih_l0": (4 * H, pcap_dim), "whh_l0": (4 * H, H), "bih_l0": (4 * H,), "bhh_l0": (4 * H,),
        "wih_l0r": (4 * H, pcap_dim), "whh_l0r": (4 * H, H), "bih_l0r": (4 * H,), "bhh_l0r": (4 * H,),
        "wih_l1": (4 * H, 2 * H), "whh_l1": (4 * H, H), "bih_l1": (4 * H,), "bhh_l1": (4 * H,),
        "wih_l1r": (4 * H, 2 * H), "whh_l1r": (4 * H, H), "bih_l1r": (4 * H,), "bhh_l1r": (4 * H,),
        "origin_w": (num_ips, 3 * H), "origin_b": (num_ips,),
        "process_w": (num_processes, 3 * H), "process_b": (num_processes,),
    }
    keys = jax.random.split(key, len(shapes))
    return {name: 0.1 * jax.random.normal(k, shp, F32)
            for (name, shp), k in zip(shapes.items(), keys)}


# --------------------------------------------------------------------------------------
# Full forward pass (jit-safe: svg_dim / num_graphs are static)
# --------------------------------------------------------------------------------------
@functools.partial(jax.jit, static_argnames=("svg_dim", "num_graphs"))
def gnn_forward(node_x, edge_index, batch, pcap_features, params, *, svg_dim, num_graphs):
    H = params["conv1_w"].shape[0]
    H4 = 4 * H
    num_ips = params["origin_w"].shape[0]
    num_processes = params["process_w"].shape[0]
    OUT_PAD = max(128, ((num_ips + num_processes + 127) // 128) * 128)

    N = node_x.shape[0]
    Bp, T, P = pcap_features.shape   # pcap batch == number of graphs (as required by cat)

    # ---- graph preprocessing ----
    x = pad_features(node_x.astype(F32), svg_dim)
    a_norm = build_gcn_norm_adj(edge_index, N)
    pool = build_mean_pool(batch, num_graphs)

    # ---- time-major flatten of pcap features: [B, T, P] -> [T*B, P] ----
    xp = jnp.transpose(pcap_features.astype(F32), (1, 0, 2)).reshape(T * Bp, P)

    # ---- weight packing: transpose, combine biases, zero-pad to lane-dense layouts ----
    def bf(w):
        return w.astype(BF16)

    def pad_cols(w, total):
        c = w.shape[1]
        if c < total:
            w = jnp.concatenate([w, jnp.zeros((w.shape[0], total - c), w.dtype)], axis=1)
        return w

    def pad_rows(w, total):
        r = w.shape[0]
        if r < total:
            w = jnp.concatenate([w, jnp.zeros((total - r, w.shape[1]), w.dtype)], axis=0)
        return w

    w1 = bf(params["conv1_w"].T)                       # [svg_dim, H]
    bg1 = params["conv1_b"].reshape(1, H)
    w2 = bf(params["conv2_w"].T)                       # [H, H]
    bg2 = params["conv2_b"].reshape(1, H)

    def lstm_dir_l0(wih, whh, bih, bhh):
        return (bf(wih.T),                             # [P, 4H]
                bf(pad_rows(whh.T, H4)),               # [4H, 4H], rows >= H zero
                (bih + bhh).reshape(1, H4))            # combined bias (b_ih + b_hh)

    wih0f, whh0f4, b0f = lstm_dir_l0(params["wih_l0"], params["whh_l0"],
                                     params["bih_l0"], params["bhh_l0"])
    wih0b, whh0b4, b0b = lstm_dir_l0(params["wih_l0r"], params["whh_l0r"],
                                     params["bih_l0r"], params["bhh_l0r"])

    def lstm_dir_l1(wih, whh, bih, bhh):
        w_from_f = bf(pad_rows(wih[:, :H].T, H4))      # input cols for layer-0 fwd half
        w_from_b = bf(pad_rows(wih[:, H:].T, H4))      # input cols for layer-0 bwd half
        return (w_from_f, w_from_b, bf(pad_rows(whh.T, H4)), (bih + bhh).reshape(1, H4))

    wih1ff4, wih1fb4, whh1f4, bl1f = lstm_dir_l1(params["wih_l1"], params["whh_l1"],
                                                 params["bih_l1"], params["bhh_l1"])
    wih1bf4, wih1bb4, whh1b4, bl1b = lstm_dir_l1(params["wih_l1r"], params["whh_l1r"],
                                                 params["bih_l1r"], params["bhh_l1r"])

    # fused heads: output columns = [origin (num_ips) | process (num_processes) | 0-pad]
    ow_t = params["origin_w"].T                        # [3H, num_ips]
    pw_t = params["process_w"].T                       # [3H, num_processes]

    def head_block(r0, r1, pad_to_4h):
        w = jnp.concatenate([ow_t[r0:r1], pw_t[r0:r1]], axis=1)
        w = pad_cols(w, OUT_PAD)
        if pad_to_4h:
            w = pad_rows(w, H4)
        return bf(w)

    whd_g = head_block(0, H, False)                    # [H, OUT_PAD]
    whd_f = head_block(H, 2 * H, True)                 # [4H, OUT_PAD]
    whd_b = head_block(2 * H, 3 * H, True)             # [4H, OUT_PAD]
    bhd = pad_cols(jnp.concatenate([params["origin_b"], params["process_b"]]).reshape(1, -1),
                   OUT_PAD)

    args = (
        bf(a_norm), bf(x), w1, bg1, w2, bg2, bf(pool),
        bf(xp),
        wih0f, whh0f4, b0f, wih0b, whh0b4, b0b,
        wih1ff4, wih1fb4, whh1f4, bl1f,
        wih1bf4, wih1bb4, whh1b4, bl1b,
        whd_g, whd_f, whd_b, bhd,
    )

    out_pad = pl.pallas_call(
        gnn_fused_kernel,
        out_shape=jax.ShapeDtypeStruct((Bp, OUT_PAD), F32),
        in_specs=[pl.BlockSpec(memory_space=pltpu.MemorySpace.VMEM)] * len(args),
        out_specs=pl.BlockSpec(memory_space=pltpu.MemorySpace.VMEM),
        scratch_shapes=[pltpu.VMEM((T * Bp, H4), F32)] * 6,
    )(*args)

    origin_logits = out_pad[:, :num_ips]
    process_logits = out_pad[:, num_ips:num_ips + num_processes]
    return origin_logits, process_logits


if __name__ == "__main__":
    key = jax.random.PRNGKey(0)
    svg_dim, pcap_dim, hidden_dim = 10, 6, 32
    num_processes, num_ips = 5, 7
    N_NODES, RAW_FEAT, NUM_GRAPHS = 12, 7, 2
    B, T = 2, 8  # pcap batch must equal number of graphs (concat in forward)

    k_x, k_pcap, k_params = jax.random.split(key, 3)

    node_x = jax.random.normal(k_x, (N_NODES, RAW_FEAT), F32)

    # deterministic graph: a ring of 6 nodes per graph (both directions), 2 graphs
    src, dst = [], []
    for g in range(NUM_GRAPHS):
        base = g * 6
        for i in range(6):
            src += [base + i, base + (i + 1) % 6]
            dst += [base + (i + 1) % 6, base + i]
    edge_index = jnp.array([src, dst], dtype=jnp.int32)
    batch = jnp.array([0] * 6 + [1] * 6, dtype=jnp.int32)

    pcap_features = jax.random.normal(k_pcap, (B, T, pcap_dim), F32)

    params = init_params(k_params, svg_dim, pcap_dim, hidden_dim, num_processes, num_ips)

    origin_logits, process_logits = gnn_forward(node_x, edge_index, batch, pcap_features,
                                                params, svg_dim=svg_dim,
                                                num_graphs=NUM_GRAPHS)
    jax.block_until_ready((origin_logits, process_logits))
    assert origin_logits.shape == (B, num_ips)
    assert process_logits.shape == (B, num_processes)
    print("KERNEL_OK")
</pallas_src>

<mosaic_0001>
module attributes {stable_mosaic.version = 11 : i64} {
  func.func @gnn_fused_kernel(%arg0: memref<12x12xbf16, #tpu.memory_space<vmem>>, %arg1: memref<12x10xbf16, #tpu.memory_space<vmem>>, %arg2: memref<10x32xbf16, #tpu.memory_space<vmem>>, %arg3: memref<1x32xf32, #tpu.memory_space<vmem>>, %arg4: memref<32x32xbf16, #tpu.memory_space<vmem>>, %arg5: memref<1x32xf32, #tpu.memory_space<vmem>>, %arg6: memref<2x12xbf16, #tpu.memory_space<vmem>>, %arg7: memref<16x6xbf16, #tpu.memory_space<vmem>>, %arg8: memref<6x128xbf16, #tpu.memory_space<vmem>>, %arg9: memref<128x128xbf16, #tpu.memory_space<vmem>>, %arg10: memref<1x128xf32, #tpu.memory_space<vmem>>, %arg11: memref<6x128xbf16, #tpu.memory_space<vmem>>, %arg12: memref<128x128xbf16, #tpu.memory_space<vmem>>, %arg13: memref<1x128xf32, #tpu.memory_space<vmem>>, %arg14: memref<128x128xbf16, #tpu.memory_space<vmem>>, %arg15: memref<128x128xbf16, #tpu.memory_space<vmem>>, %arg16: memref<128x128xbf16, #tpu.memory_space<vmem>>, %arg17: memref<1x128xf32, #tpu.memory_space<vmem>>, %arg18: memref<128x128xbf16, #tpu.memory_space<vmem>>, %arg19: memref<128x128xbf16, #tpu.memory_space<vmem>>, %arg20: memref<128x128xbf16, #tpu.memory_space<vmem>>, %arg21: memref<1x128xf32, #tpu.memory_space<vmem>>, %arg22: memref<32x128xbf16, #tpu.memory_space<vmem>>, %arg23: memref<128x128xbf16, #tpu.memory_space<vmem>>, %arg24: memref<128x128xbf16, #tpu.memory_space<vmem>>, %arg25: memref<1x128xf32, #tpu.memory_space<vmem>>, %arg26: memref<2x128xf32, #tpu.memory_space<vmem>>, %arg27: memref<16x128xf32, #tpu.memory_space<vmem>>, %arg28: memref<16x128xf32, #tpu.memory_space<vmem>>, %arg29: memref<16x128xf32, #tpu.memory_space<vmem>>, %arg30: memref<16x128xf32, #tpu.memory_space<vmem>>, %arg31: memref<16x128xf32, #tpu.memory_space<vmem>>, %arg32: memref<16x128xf32, #tpu.memory_space<vmem>>) attributes {dimension_semantics = [], scalar_prefetch = 0 : i64, scratch_operands = 6 : i64, tpu.core_type = #tpu.core_type<tc>} {
    %c0 = arith.constant 0 : index
    %c0_0 = arith.constant 0 : index
    %0 = vector.load %arg1[%c0, %c0_0] : memref<12x10xbf16, #tpu.memory_space<vmem>>, vector<12x10xbf16>
    %c0_1 = arith.constant 0 : index
    %c0_2 = arith.constant 0 : index
    %1 = vector.load %arg2[%c0_1, %c0_2] : memref<10x32xbf16, #tpu.memory_space<vmem>>, vector<10x32xbf16>
    %cst = arith.constant dense<0.000000e+00> : vector<12x32xf32>
    %2 = tpu.matmul %0, %1, %cst {dimension_numbers = #tpu.dot_dimension_numbers<[1], [0], [0], [1], [0, 0, 1, 1], [], []>} : vector<12x10xbf16>, vector<10x32xbf16>, vector<12x32xf32> -> vector<12x32xf32>
    %c0_3 = arith.constant 0 : index
    %c0_4 = arith.constant 0 : index
    %3 = vector.load %arg0[%c0_3, %c0_4] : memref<12x12xbf16, #tpu.memory_space<vmem>>, vector<12x12xbf16>
    %4 = arith.truncf %2 : vector<12x32xf32> to vector<12x32xbf16>
    %cst_5 = arith.constant dense<0.000000e+00> : vector<12x32xf32>
    %5 = tpu.matmul %3, %4, %cst_5 {dimension_numbers = #tpu.dot_dimension_numbers<[1], [0], [0], [1], [0, 0, 1, 1], [], []>} : vector<12x12xbf16>, vector<12x32xbf16>, vector<12x32xf32> -> vector<12x32xf32>
    %c0_6 = arith.constant 0 : index
    %c0_7 = arith.constant 0 : index
    %6 = vector.load %arg3[%c0_6, %c0_7] : memref<1x32xf32, #tpu.memory_space<vmem>>, vector<1x32xf32>
    %7 = vector.broadcast %6 : vector<1x32xf32> to vector<12x32xf32>
    %8 = arith.addf %5, %7 : vector<12x32xf32>
    %cst_8 = arith.constant 0.000000e+00 : f32
    %9 = vector.broadcast %cst_8 : f32 to vector<12x32xf32>
    %10 = arith.maximumf %8, %9 : vector<12x32xf32>
    %11 = arith.truncf %10 : vector<12x32xf32> to vector<12x32xbf16>
    %c0_9 = arith.constant 0 : index
    %c0_10 = arith.constant 0 : index
    %12 = vector.load %arg4[%c0_9, %c0_10] : memref<32x32xbf16, #tpu.memory_space<vmem>>, vector<32x32xbf16>
    %cst_11 = arith.constant dense<0.000000e+00> : vector<12x32xf32>
    %13 = tpu.matmul %11, %12, %cst_11 {dimension_numbers = #tpu.dot_dimension_numbers<[1], [0], [0], [1], [0, 0, 1, 1], [], []>} : vector<12x32xbf16>, vector<32x32xbf16>, vector<12x32xf32> -> vector<12x32xf32>
    %c0_12 = arith.constant 0 : index
    %c0_13 = arith.constant 0 : index
    %14 = vector.load %arg0[%c0_12, %c0_13] : memref<12x12xbf16, #tpu.memory_space<vmem>>, vector<12x12xbf16>
    %15 = arith.truncf %13 : vector<12x32xf32> to vector<12x32xbf16>
    %cst_14 = arith.constant dense<0.000000e+00> : vector<12x32xf32>
    %16 = tpu.matmul %14, %15, %cst_14 {dimension_numbers = #tpu.dot_dimension_numbers<[1], [0], [0], [1], [0, 0, 1, 1], [], []>} : vector<12x12xbf16>, vector<12x32xbf16>, vector<12x32xf32> -> vector<12x32xf32>
    %c0_15 = arith.constant 0 : index
    %c0_16 = arith.constant 0 : index
    %17 = vector.load %arg5[%c0_15, %c0_16] : memref<1x32xf32, #tpu.memory_space<vmem>>, vector<1x32xf32>
    %18 = vector.broadcast %17 : vector<1x32xf32> to vector<12x32xf32>
    %19 = arith.addf %16, %18 : vector<12x32xf32>
    %c0_17 = arith.constant 0 : index
    %c0_18 = arith.constant 0 : index
    %20 = vector.load %arg6[%c0_17, %c0_18] : memref<2x12xbf16, #tpu.memory_space<vmem>>, vector<2x12xbf16>
    %21 = arith.truncf %19 : vector<12x32xf32> to vector<12x32xbf16>
    %cst_19 = arith.constant dense<0.000000e+00> : vector<2x32xf32>
    %22 = tpu.matmul %20, %21, %cst_19 {dimension_numbers = #tpu.dot_dimension_numbers<[1], [0], [0], [1], [0, 0, 1, 1], [], []>} : vector<2x12xbf16>, vector<12x32xbf16>, vector<2x32xf32> -> vector<2x32xf32>
    %c0_20 = arith.constant 0 : index
    %c0_21 = arith.constant 0 : index
    %23 = vector.load %arg7[%c0_20, %c0_21] : memref<16x6xbf16, #tpu.memory_space<vmem>>, vector<16x6xbf16>
    %c0_22 = arith.constant 0 : index
    %c0_23 = arith.constant 0 : index
    %24 = vector.load %arg8[%c0_22, %c0_23] : memref<6x128xbf16, #tpu.memory_space<vmem>>, vector<6x128xbf16>
    %cst_24 = arith.constant dense<0.000000e+00> : vector<16x128xf32>
    %25 = tpu.matmul %23, %24, %cst_24 {dimension_numbers = #tpu.dot_dimension_numbers<[1], [0], [0], [1], [0, 0, 1, 1], [], []>} : vector<16x6xbf16>, vector<6x128xbf16>, vector<16x128xf32> -> vector<16x128xf32>
    %c0_25 = arith.constant 0 : index
    %c0_26 = arith.constant 0 : index
    %26 = vector.load %arg10[%c0_25, %c0_26] : memref<1x128xf32, #tpu.memory_space<vmem>>, vector<1x128xf32>
    %27 = vector.broadcast %26 : vector<1x128xf32> to vector<16x128xf32>
    %28 = arith.addf %25, %27 : vector<16x128xf32>
    %c0_27 = arith.constant 0 : index
    %c0_28 = arith.constant 0 : index
    %29 = vector.load %arg27[%c0_27, %c0_28] : memref<16x128xf32, #tpu.memory_space<vmem>>, vector<16x128xf32>
    tpu.vector_store %arg27[%c0_27, %c0_28], %28 {strides = array<i32>} : memref<16x128xf32, #tpu.memory_space<vmem>>, vector<16x128xf32>,
    %c0_29 = arith.constant 0 : index
    %c0_30 = arith.constant 0 : index
    %30 = vector.load %arg11[%c0_29, %c0_30] : memref<6x128xbf16, #tpu.memory_space<vmem>>, vector<6x128xbf16>
    %cst_31 = arith.constant dense<0.000000e+00> : vector<16x128xf32>
    %31 = tpu.matmul %23, %30, %cst_31 {dimension_numbers = #tpu.dot_dimension_numbers<[1], [0], [0], [1], [0, 0, 1, 1], [], []>} : vector<16x6xbf16>, vector<6x128xbf16>, vector<16x128xf32> -> vector<16x128xf32>
    %c0_32 = arith.constant 0 : index
    %c0_33 = arith.constant 0 : index
    %32 = vector.load %arg13[%c0_32, %c0_33] : memref<1x128xf32, #tpu.memory_space<vmem>>, vector<1x128xf32>
    %33 = vector.broadcast %32 : vector<1x128xf32> to vector<16x128xf32>
    %34 = arith.addf %31, %33 : vector<16x128xf32>
    %c0_34 = arith.constant 0 : index
    %c0_35 = arith.constant 0 : index
    %35 = vector.load %arg28[%c0_34, %c0_35] : memref<16x128xf32, #tpu.memory_space<vmem>>, vector<16x128xf32>
    tpu.vector_store %arg28[%c0_34, %c0_35], %34 {strides = array<i32>} : memref<16x128xf32, #tpu.memory_space<vmem>>, vector<16x128xf32>,
    %c0_36 = arith.constant 0 : index
    %c0_37 = arith.constant 0 : index
    %36 = vector.load %arg9[%c0_36, %c0_37] : memref<128x128xbf16, #tpu.memory_space<vmem>>, vector<128x128xbf16>
    %c0_38 = arith.constant 0 : index
    %c0_39 = arith.constant 0 : index
    %37 = vector.load %arg12[%c0_38, %c0_39] : memref<128x128xbf16, #tpu.memory_space<vmem>>, vector<128x128xbf16>
    %cst_40 = arith.constant 0.000000e+00 : f32
    %38 = vector.broadcast %cst_40 : f32 to vector<2x128xf32>
    %c0_41 = arith.constant 0 : index
    %c0_42 = arith.constant 0 : index
    %39 = vector.load %arg27[%c0_41, %c0_42] : memref<16x128xf32, #tpu.memory_space<vmem>>, vector<2x128xf32>
    %40 = arith.truncf %38 : vector<2x128xf32> to vector<2x128xbf16>
    %cst_43 = arith.constant dense<0.000000e+00> : vector<2x128xf32>
    %41 = tpu.matmul %40, %36, %cst_43 {dimension_numbers = #tpu.dot_dimension_numbers<[1], [0], [0], [1], [0, 0, 1, 1], [], []>} : vector<2x128xbf16>, vector<128x128xbf16>, vector<2x128xf32> -> vector<2x128xf32>
    %42 = arith.addf %39, %41 : vector<2x128xf32>
    %43 = arith.negf %42 : vector<2x128xf32>
    %44 = math.exp %43 : vector<2x128xf32>
    %cst_44 = arith.constant 1.000000e+00 : f32
    %45 = vector.broadcast %cst_44 : f32 to vector<2x128xf32>
    %46 = arith.addf %45, %44 : vector<2x128xf32>
    %47 = arith.divf %45, %46 : vector<2x128xf32>
    %48 = math.tanh %42 : vector<2x128xf32>
    %c96_i32 = arith.constant 96 : i32
    %49 = tpu.dynamic_rotate %47 by %c96_i32 dim 1 : vector<2x128xf32>, i32 -> vector<2x128xf32>
    %c64_i32 = arith.constant 64 : i32
    %50 = tpu.dynamic_rotate %48 by %c64_i32 dim 1 : vector<2x128xf32>, i32 -> vector<2x128xf32>
    %c32_i32 = arith.constant 32 : i32
    %51 = tpu.dynamic_rotate %47 by %c32_i32 dim 1 : vector<2x128xf32>, i32 -> vector<2x128xf32>
    %52 = arith.mulf %49, %38 : vector<2x128xf32>
    %53 = arith.mulf %47, %50 : vector<2x128xf32>
    %54 = arith.addf %52, %53 : vector<2x128xf32>
    %55 = math.tanh %54 : vector<2x128xf32>
    %56 = arith.mulf %51, %55 : vector<2x128xf32>
    %c14 = arith.constant 14 : index
    %c0_45 = arith.constant 0 : index
    %57 = vector.load %arg28[%c14, %c0_45] : memref<16x128xf32, #tpu.memory_space<vmem>>, vector<2x128xf32>
    %58 = arith.truncf %38 : vector<2x128xf32> to vector<2x128xbf16>
    %cst_46 = arith.constant dense<0.000000e+00> : vector<2x128xf32>
    %59 = tpu.matmul %58, %37, %cst_46 {dimension_numbers = #tpu.dot_dimension_numbers<[1], [0], [0], [1], [0, 0, 1, 1], [], []>} : vector<2x128xbf16>, vector<128x128xbf16>, vector<2x128xf32> -> vector<2x128xf32>
    %60 = arith.addf %57, %59 : vector<2x128xf32>
    %61 = arith.negf %60 : vector<2x128xf32>
    %62 = math.exp %61 : vector<2x128xf32>
    %cst_47 = arith.constant 1.000000e+00 : f32
    %63 = vector.broadcast %cst_47 : f32 to vector<2x128xf32>
    %64 = arith.addf %63, %62 : vector<2x128xf32>
    %65 = arith.divf %63, %64 : vector<2x128xf32>
    %66 = math.tanh %60 : vector<2x128xf32>
    %c96_i32_48 = arith.constant 96 : i32
    %67 = tpu.dynamic_rotate %65 by %c96_i32_48 dim 1 : vector<2x128xf32>, i32 -> vector<2x128xf32>
    %c64_i32_49 = arith.constant 64 : i32
    %68 = tpu.dynamic_rotate %66 by %c64_i32_49 dim 1 : vector<2x128xf32>, i32 -> vector<2x128xf32>
    %c32_i32_50 = arith.constant 32 : i32
    %69 = tpu.dynamic_rotate %65 by %c32_i32_50 dim 1 : vector<2x128xf32>, i32 -> vector<2x128xf32>
    %70 = arith.mulf %67, %38 : vector<2x128xf32>
    %71 = arith.mulf %65, %68 : vector<2x128xf32>
    %72 = arith.addf %70, %71 : vector<2x128xf32>
    %73 = math.tanh %72 : vector<2x128xf32>
    %74 = arith.mulf %69, %73 : vector<2x128xf32>
    %c0_51 = arith.constant 0 : index
    %c0_52 = arith.constant 0 : index
    %75 = vector.load %arg29[%c0_51, %c0_52] : memref<16x128xf32, #tpu.memory_space<vmem>>, vector<2x128xf32>
    tpu.vector_store %arg29[%c0_51, %c0_52], %56 {strides = array<i32>} : memref<16x128xf32, #tpu.memory_space<vmem>>, vector<2x128xf32>,
    %c14_53 = arith.constant 14 : index
    %c0_54 = arith.constant 0 : index
    %76 = vector.load %arg30[%c14_53, %c0_54] : memref<16x128xf32, #tpu.memory_space<vmem>>, vector<2x128xf32>
    tpu.vector_store %arg30[%c14_53, %c0_54], %74 {strides = array<i32>} : memref<16x128xf32, #tpu.memory_space<vmem>>, vector<2x128xf32>,
    %c2 = arith.constant 2 : index
    %c0_55 = arith.constant 0 : index
    %77 = vector.load %arg27[%c2, %c0_55] : memref<16x128xf32, #tpu.memory_space<vmem>>, vector<2x128xf32>
    %78 = arith.truncf %56 : vector<2x128xf32> to vector<2x128xbf16>
    %cst_56 = arith.constant dense<0.000000e+00> : vector<2x128xf32>
    %79 = tpu.matmul %78, %36, %cst_56 {dimension_numbers = #tpu.dot_dimension_numbers<[1], [0], [0], [1], [0, 0, 1, 1], [], []>} : vector<2x128xbf16>, vector<128x128xbf16>, vector<2x128xf32> -> vector<2x128xf32>
    %80 = arith.addf %77, %79 : vector<2x128xf32>
    %81 = arith.negf %80 : vector<2x128xf32>
    %82 = math.exp %81 : vector<2x128xf32>
    %cst_57 = arith.constant 1.000000e+00 : f32
    %83 = vector.broadcast %cst_57 : f32 to vector<2x128xf32>
    %84 = arith.addf %83, %82 : vector<2x128xf32>
    %85 = arith.divf %83, %84 : vector<2x128xf32>
    %86 = math.tanh %80 : vector<2x128xf32>
    %c96_i32_58 = arith.constant 96 : i32
    %87 = tpu.dynamic_rotate %85 by %c96_i32_58 dim 1 : vector<2x128xf32>, i32 -> vector<2x128xf32>
    %c64_i32_59 = arith.constant 64 : i32
    %88 = tpu.dynamic_rotate %86 by %c64_i32_59 dim 1 : vector<2x128xf32>, i32 -> vector<2x128xf32>
    %c32_i32_60 = arith.constant 32 : i32
    %89 = tpu.dynamic_rotate %85 by %c32_i32_60 dim 1 : vector<2x128xf32>, i32 -> vector<2x128xf32>
    %90 = arith.mulf %87, %54 : vector<2x128xf32>
    %91 = arith.mulf %85, %88 : vector<2x128xf32>
    %92 = arith.addf %90, %91 : vector<2x128xf32>
    %93 = math.tanh %92 : vector<2x128xf32>
    %94 = arith.mulf %89, %93 : vector<2x128xf32>
    %c12 = arith.constant 12 : index
    %c0_61 = arith.constant 0 : index
    %95 = vector.load %arg28[%c12, %c0_61] : memref<16x128xf32, #tpu.memory_space<vmem>>, vector<2x128xf32>
    %96 = arith.truncf %74 : vector<2x128xf32> to vector<2x128xbf16>
    %cst_62 = arith.constant dense<0.000000e+00> : vector<2x128xf32>
    %97 = tpu.matmul %96, %37, %cst_62 {dimension_numbers = #tpu.dot_dimension_numbers<[1], [0], [0], [1], [0, 0, 1, 1], [], []>} : vector<2x128xbf16>, vector<128x128xbf16>, vector<2x128xf32> -> vector<2x128xf32>
    %98 = arith.addf %95, %97 : vector<2x128xf32>
    %99 = arith.negf %98 : vector<2x128xf32>
    %100 = math.exp %99 : vector<2x128xf32>
    %cst_63 = arith.constant 1.000000e+00 : f32
    %101 = vector.broadcast %cst_63 : f32 to vector<2x128xf32>
    %102 = arith.addf %101, %100 : vector<2x128xf32>
    %103 = arith.divf %101, %102 : vector<2x128xf32>
    %104 = math.tanh %98 : vector<2x128xf32>
    %c96_i32_64 = arith.constant 96 : i32
    %105 = tpu.dynamic_rotate %103 by %c96_i32_64 dim 1 : vector<2x128xf32>, i32 -> vector<2x128xf32>
    %c64_i32_65 = arith.constant 64 : i32
    %106 = tpu.dynamic_rotate %104 by %c64_i32_65 dim 1 : vector<2x128xf32>, i32 -> vector<2x128xf32>
    %c32_i32_66 = arith.constant 32 : i32
    %107 = tpu.dynamic_rotate %103 by %c32_i32_66 dim 1 : vector<2x128xf32>, i32 -> vector<2x128xf32>
    %108 = arith.mulf %105, %72 : vector<2x128xf32>
    %109 = arith.mulf %103, %106 : vector<2x128xf32>
    %110 = arith.addf %108, %109 : vector<2x128xf32>
    %111 = math.tanh %110 : vector<2x128xf32>
    %112 = arith.mulf %107, %111 : vector<2x128xf32>
    %c2_67 = arith.constant 2 : index
    %c0_68 = arith.constant 0 : index
    %113 = vector.load %arg29[%c2_67, %c0_68] : memref<16x128xf32, #tpu.memory_space<vmem>>, vector<2x128xf32>
    tpu.vector_store %arg29[%c2_67, %c0_68], %94 {strides = array<i32>} : memref<16x128xf32, #tpu.memory_space<vmem>>, vector<2x128xf32>,
    %c12_69 = arith.constant 12 : index
    %c0_70 = arith.constant 0 : index
    %114 = vector.load %arg30[%c12_69, %c0_70] : memref<16x128xf32, #tpu.memory_space<vmem>>, vector<2x128xf32>
    tpu.vector_store %arg30[%c12_69, %c0_70], %112 {strides = array<i32>} : memref<16x128xf32, #tpu.memory_space<vmem>>, vector<2x128xf32>,
    %c4 = arith.constant 4 : index
    %c0_71 = arith.constant 0 : index
    %115 = vector.load %arg27[%c4, %c0_71] : memref<16x128xf32, #tpu.memory_space<vmem>>, vector<2x128xf32>
    %116 = arith.truncf %94 : vector<2x128xf32> to vector<2x128xbf16>
    %cst_72 = arith.constant dense<0.000000e+00> : vector<2x128xf32>
    %117 = tpu.matmul %116, %36, %cst_72 {dimension_numbers = #tpu.dot_dimension_numbers<[1], [0], [0], [1], [0, 0, 1, 1], [], []>} : vector<2x128xbf16>, vector<128x128xbf16>, vector<2x128xf32> -> vector<2x128xf32>
    %118 = arith.addf %115, %117 : vector<2x128xf32>
    %119 = arith.negf %118 : vector<2x128xf32>
    %120 = math.exp %119 : vector<2x128xf32>
    %cst_73 = arith.constant 1.000000e+00 : f32
    %121 = vector.broadcast %cst_73 : f32 to vector<2x128xf32>
    %122 = arith.addf %121, %120 : vector<2x128xf32>
    %123 = arith.divf %121, %122 : vector<2x128xf32>
    %124 = math.tanh %118 : vector<2x128xf32>
    %c96_i32_74 = arith.constant 96 : i32
    %125 = tpu.dynamic_rotate %123 by %c96_i32_74 dim 1 : vector<2x128xf32>, i32 -> vector<2x128xf32>
    %c64_i32_75 = arith.constant 64 : i32
    %126 = tpu.dynamic_rotate %124 by %c64_i32_75 dim 1 : vector<2x128xf32>, i32 -> vector<2x128xf32>
    %c32_i32_76 = arith.constant 32 : i32
    %127 = tpu.dynamic_rotate %123 by %c32_i32_76 dim 1 : vector<2x128xf32>, i32 -> vector<2x128xf32>
    %128 = arith.mulf %125, %92 : vector<2x128xf32>
    %129 = arith.mulf %123, %126 : vector<2x128xf32>
    %130 = arith.addf %128, %129 : vector<2x128xf32>
    %131 = math.tanh %130 : vector<2x128xf32>
    %132 = arith.mulf %127, %131 : vector<2x128xf32>
    %c10 = arith.constant 10 : index
    %c0_77 = arith.constant 0 : index
    %133 = vector.load %arg28[%c10, %c0_77] : memref<16x128xf32, #tpu.memory_space<vmem>>, vector<2x128xf32>
    %134 = arith.truncf %112 : vector<2x128xf32> to vector<2x128xbf16>
    %cst_78 = arith.constant dense<0.000000e+00> : vector<2x128xf32>
    %135 = tpu.matmul %134, %37, %cst_78 {dimension_numbers = #tpu.dot_dimension_numbers<[1], [0], [0], [1], [0, 0, 1, 1], [], []>} : vector<2x128xbf16>, vector<128x128xbf16>, vector<2x128xf32> -> vector<2x128xf32>
    %136 = arith.addf %133, %135 : vector<2x128xf32>
    %137 = arith.negf %136 : vector<2x128xf32>
    %138 = math.exp %137 : vector<2x128xf32>
    %cst_79 = arith.constant 1.000000e+00 : f32
    %139 = vector.broadcast %cst_79 : f32 to vector<2x128xf32>
    %140 = arith.addf %139, %138 : vector<2x128xf32>
    %141 = arith.divf %139, %140 : vector<2x128xf32>
    %142 = math.tanh %136 : vector<2x128xf32>
    %c96_i32_80 = arith.constant 96 : i32
    %143 = tpu.dynamic_rotate %141 by %c96_i32_80 dim 1 : vector<2x128xf32>, i32 -> vector<2x128xf32>
    %c64_i32_81 = arith.constant 64 : i32
    %144 = tpu.dynamic_rotate %142 by %c64_i32_81 dim 1 : vector<2x128xf32>, i32 -> vector<2x128xf32>
    %c32_i32_82 = arith.constant 32 : i32
    %145 = tpu.dynamic_rotate %141 by %c32_i32_82 dim 1 : vector<2x128xf32>, i32 -> vector<2x128xf32>
    %146 = arith.mulf %143, %110 : vector<2x128xf32>
    %147 = arith.mulf %141, %144 : vector<2x128xf32>
    %148 = arith.addf %146, %147 : vector<2x128xf32>
    %149 = math.tanh %148 : vector<2x128xf32>
    %150 = arith.mulf %145, %149 : vector<2x128xf32>
    %c4_83 = arith.constant 4 : index
    %c0_84 = arith.constant 0 : index
    %151 = vector.load %arg29[%c4_83, %c0_84] : memref<16x128xf32, #tpu.memory_space<vmem>>, vector<2x128xf32>
    tpu.vector_store %arg29[%c4_83, %c0_84], %132 {strides = array<i32>} : memref<16x128xf32, #tpu.memory_space<vmem>>, vector<2x128xf32>,
    %c10_85 = arith.constant 10 : index
    %c0_86 = arith.constant 0 : index
    %152 = vector.load %arg30[%c10_85, %c0_86] : memref<16x128xf32, #tpu.memory_space<vmem>>, vector<2x128xf32>
    tpu.vector_store %arg30[%c10_85, %c0_86], %150 {strides = array<i32>} : memref<16x128xf32, #tpu.memory_space<vmem>>, vector<2x128xf32>,
    %c6 = arith.constant 6 : index
    %c0_87 = arith.constant 0 : index
    %153 = vector.load %arg27[%c6, %c0_87] : memref<16x128xf32, #tpu.memory_space<vmem>>, vector<2x128xf32>
    %154 = arith.truncf %132 : vector<2x128xf32> to vector<2x128xbf16>
    %cst_88 = arith.constant dense<0.000000e+00> : vector<2x128xf32>
    %155 = tpu.matmul %154, %36, %cst_88 {dimension_numbers = #tpu.dot_dimension_numbers<[1], [0], [0], [1], [0, 0, 1, 1], [], []>} : vector<2x128xbf16>, vector<128x128xbf16>, vector<2x128xf32> -> vector<2x128xf32>
    %156 = arith.addf %153, %155 : vector<2x128xf32>
    %157 = arith.negf %156 : vector<2x128xf32>
    %158 = math.exp %157 : vector<2x128xf32>
    %cst_89 = arith.constant 1.000000e+00 : f32
    %159 = vector.broadcast %cst_89 : f32 to vector<2x128xf32>
    %160 = arith.addf %159, %158 : vector<2x128xf32>
    %161 = arith.divf %159, %160 : vector<2x128xf32>
    %162 = math.tanh %156 : vector<2x128xf32>
    %c96_i32_90 = arith.constant 96 : i32
    %163 = tpu.dynamic_rotate %161 by %c96_i32_90 dim 1 : vector<2x128xf32>, i32 -> vector<2x128xf32>
    %c64_i32_91 = arith.constant 64 : i32
    %164 = tpu.dynamic_rotate %162 by %c64_i32_91 dim 1 : vector<2x128xf32>, i32 -> vector<2x128xf32>
    %c32_i32_92 = arith.constant 32 : i32
    %165 = tpu.dynamic_rotate %161 by %c32_i32_92 dim 1 : vector<2x128xf32>, i32 -> vector<2x128xf32>
    %166 = arith.mulf %163, %130 : vector<2x128xf32>
    %167 = arith.mulf %161, %164 : vector<2x128xf32>
    %168 = arith.addf %166, %167 : vector<2x128xf32>
    %169 = math.tanh %168 : vector<2x128xf32>
    %170 = arith.mulf %165, %169 : vector<2x128xf32>
    %c8 = arith.constant 8 : index
    %c0_93 = arith.constant 0 : index
    %171 = vector.load %arg28[%c8, %c0_93] : memref<16x128xf32, #tpu.memory_space<vmem>>, vector<2x128xf32>
    %172 = arith.truncf %150 : vector<2x128xf32> to vector<2x128xbf16>
    %cst_94 = arith.constant dense<0.000000e+00> : vector<2x128xf32>
    %173 = tpu.matmul %172, %37, %cst_94 {dimension_numbers = #tpu.dot_dimension_numbers<[1], [0], [0], [1], [0, 0, 1, 1], [], []>} : vector<2x128xbf16>, vector<128x128xbf16>, vector<2x128xf32> -> vector<2x128xf32>
    %174 = arith.addf %171, %173 : vector<2x128xf32>
    %175 = arith.negf %174 : vector<2x128xf32>
    %176 = math.exp %175 : vector<2x128xf32>
    %cst_95 = arith.constant 1.000000e+00 : f32
    %177 = vector.broadcast %cst_95 : f32 to vector<2x128xf32>
    %178 = arith.addf %177, %176 : vector<2x128xf32>
    %179 = arith.divf %177, %178 : vector<2x128xf32>
    %180 = math.tanh %174 : vector<2x128xf32>
    %c96_i32_96 = arith.constant 96 : i32
    %181 = tpu.dynamic_rotate %179 by %c96_i32_96 dim 1 : vector<2x128xf32>, i32 -> vector<2x128xf32>
    %c64_i32_97 = arith.constant 64 : i32
    %182 = tpu.dynamic_rotate %180 by %c64_i32_97 dim 1 : vector<2x128xf32>, i32 -> vector<2x128xf32>
    %c32_i32_98 = arith.constant 32 : i32
    %183 = tpu.dynamic_rotate %179 by %c32_i32_98 dim 1 : vector<2x128xf32>, i32 -> vector<2x128xf32>
    %184 = arith.mulf %181, %148 : vector<2x128xf32>
    %185 = arith.mulf %179, %182 : vector<2x128xf32>
    %186 = arith.addf %184, %185 : vector<2x128xf32>
    %187 = math.tanh %186 : vector<2x128xf32>
    %188 = arith.mulf %183, %187 : vector<2x128xf32>
    %c6_99 = arith.constant 6 : index
    %c0_100 = arith.constant 0 : index
    %189 = vector.load %arg29[%c6_99, %c0_100] : memref<16x128xf32, #tpu.memory_space<vmem>>, vector<2x128xf32>
    tpu.vector_store %arg29[%c6_99, %c0_100], %170 {strides = array<i32>} : memref<16x128xf32, #tpu.memory_space<vmem>>, vector<2x128xf32>,
    %c8_101 = arith.constant 8 : index
    %c0_102 = arith.constant 0 : index
    %190 = vector.load %arg30[%c8_101, %c0_102] : memref<16x128xf32, #tpu.memory_space<vmem>>, vector<2x128xf32>
    tpu.vector_store %arg30[%c8_101, %c0_102], %188 {strides = array<i32>} : memref<16x128xf32, #tpu.memory_space<vmem>>, vector<2x128xf32>,
    %c8_103 = arith.constant 8 : index
    %c0_104 = arith.constant 0 : index
    %191 = vector.load %arg27[%c8_103, %c0_104] : memref<16x128xf32, #tpu.memory_space<vmem>>, vector<2x128xf32>
    %192 = arith.truncf %170 : vector<2x128xf32> to vector<2x128xbf16>
    %cst_105 = arith.constant dense<0.000000e+00> : vector<2x128xf32>
    %193 = tpu.matmul %192, %36, %cst_105 {dimension_numbers = #tpu.dot_dimension_numbers<[1], [0], [0], [1], [0, 0, 1, 1], [], []>} : vector<2x128xbf16>, vector<128x128xbf16>, vector<2x128xf32> -> vector<2x128xf32>
    %194 = arith.addf %191, %193 : vector<2x128xf32>
    %195 = arith.negf %194 : vector<2x128xf32>
    %196 = math.exp %195 : vector<2x128xf32>
    %cst_106 = arith.constant 1.000000e+00 : f32
    %197 = vector.broadcast %cst_106 : f32 to vector<2x128xf32>
    %198 = arith.addf %197, %196 : vector<2x128xf32>
    %199 = arith.divf %197, %198 : vector<2x128xf32>
    %200 = math.tanh %194 : vector<2x128xf32>
    %c96_i32_107 = arith.constant 96 : i32
    %201 = tpu.dynamic_rotate %199 by %c96_i32_107 dim 1 : vector<2x128xf32>, i32 -> vector<2x128xf32>
    %c64_i32_108 = arith.constant 64 : i32
    %202 = tpu.dynamic_rotate %200 by %c64_i32_108 dim 1 : vector<2x128xf32>, i32 -> vector<2x128xf32>
    %c32_i32_109 = arith.constant 32 : i32
    %203 = tpu.dynamic_rotate %199 by %c32_i32_109 dim 1 : vector<2x128xf32>, i32 -> vector<2x128xf32>
    %204 = arith.mulf %201, %168 : vector<2x128xf32>
    %205 = arith.mulf %199, %202 : vector<2x128xf32>
    %206 = arith.addf %204, %205 : vector<2x128xf32>
    %207 = math.tanh %206 : vector<2x128xf32>
    %208 = arith.mulf %203, %207 : vector<2x128xf32>
    %c6_110 = arith.constant 6 : index
    %c0_111 = arith.constant 0 : index
    %209 = vector.load %arg28[%c6_110, %c0_111] : memref<16x128xf32, #tpu.memory_space<vmem>>, vector<2x128xf32>
    %210 = arith.truncf %188 : vector<2x128xf32> to vector<2x128xbf16>
    %cst_112 = arith.constant dense<0.000000e+00> : vector<2x128xf32>
    %211 = tpu.matmul %210, %37, %cst_112 {dimension_numbers = #tpu.dot_dimension_numbers<[1], [0], [0], [1], [0, 0, 1, 1], [], []>} : vector<2x128xbf16>, vector<128x128xbf16>, vector<2x128xf32> -> vector<2x128xf32>
    %212 = arith.addf %209, %211 : vector<2x128xf32>
    %213 = arith.negf %212 : vector<2x128xf32>
    %214 = math.exp %213 : vector<2x128xf32>
    %cst_113 = arith.constant 1.000000e+00 : f32
    %215 = vector.broadcast %cst_113 : f32 to vector<2x128xf32>
    %216 = arith.addf %215, %214 : vector<2x128xf32>
    %217 = arith.divf %215, %216 : vector<2x128xf32>
    %218 = math.tanh %212 : vector<2x128xf32>
    %c96_i32_114 = arith.constant 96 : i32
    %219 = tpu.dynamic_rotate %217 by %c96_i32_114 dim 1 : vector<2x128xf32>, i32 -> vector<2x128xf32>
    %c64_i32_115 = arith.constant 64 : i32
    %220 = tpu.dynamic_rotate %218 by %c64_i32_115 dim 1 : vector<2x128xf32>, i32 -> vector<2x128xf32>
    %c32_i32_116 = arith.constant 32 : i32
    %221 = tpu.dynamic_rotate %217 by %c32_i32_116 dim 1 : vector<2x128xf32>, i32 -> vector<2x128xf32>
    %222 = arith.mulf %219, %186 : vector<2x128xf32>
    %223 = arith.mulf %217, %220 : vector<2x128xf32>
    %224 = arith.addf %222, %223 : vector<2x128xf32>
    %225 = math.tanh %224 : vector<2x128xf32>
    %226 = arith.mulf %221, %225 : vector<2x128xf32>
    %c8_117 = arith.constant 8 : index
    %c0_118 = arith.constant 0 : index
    %227 = vector.load %arg29[%c8_117, %c0_118] : memref<16x128xf32, #tpu.memory_space<vmem>>, vector<2x128xf32>
    tpu.vector_store %arg29[%c8_117, %c0_118], %208 {strides = array<i32>} : memref<16x128xf32, #tpu.memory_space<vmem>>, vector<2x128xf32>,
    %c6_119 = arith.constant 6 : index
    %c0_120 = arith.constant 0 : index
    %228 = vector.load %arg30[%c6_119, %c0_120] : memref<16x128xf32, #tpu.memory_space<vmem>>, vector<2x128xf32>
    tpu.vector_store %arg30[%c6_119, %c0_120], %226 {strides = array<i32>} : memref<16x128xf32, #tpu.memory_space<vmem>>, vector<2x128xf32>,
    %c10_121 = arith.constant 10 : index
    %c0_122 = arith.constant 0 : index
    %229 = vector.load %arg27[%c10_121, %c0_122] : memref<16x128xf32, #tpu.memory_space<vmem>>, vector<2x128xf32>
    %230 = arith.truncf %208 : vector<2x128xf32> to vector<2x128xbf16>
    %cst_123 = arith.constant dense<0.000000e+00> : vector<2x128xf32>
    %231 = tpu.matmul %230, %36, %cst_123 {dimension_numbers = #tpu.dot_dimension_numbers<[1], [0], [0], [1], [0, 0, 1, 1], [], []>} : vector<2x128xbf16>, vector<128x128xbf16>, vector<2x128xf32> -> vector<2x128xf32>
    %232 = arith.addf %229, %231 : vector<2x128xf32>
    %233 = arith.negf %232 : vector<2x128xf32>
    %234 = math.exp %233 : vector<2x128xf32>
    %cst_124 = arith.constant 1.000000e+00 : f32
    %235 = vector.broadcast %cst_124 : f32 to vector<2x128xf32>
    %236 = arith.addf %235, %234 : vector<2x128xf32>
    %237 = arith.divf %235, %236 : vector<2x128xf32>
    %238 = math.tanh %232 : vector<2x128xf32>
    %c96_i32_125 = arith.constant 96 : i32
    %239 = tpu.dynamic_rotate %237 by %c96_i32_125 dim 1 : vector<2x128xf32>, i32 -> vector<2x128xf32>
    %c64_i32_126 = arith.constant 64 : i32
    %240 = tpu.dynamic_rotate %238 by %c64_i32_126 dim 1 : vector<2x128xf32>, i32 -> vector<2x128xf32>
    %c32_i32_127 = arith.constant 32 : i32
    %241 = tpu.dynamic_rotate %237 by %c32_i32_127 dim 1 : vector<2x128xf32>, i32 -> vector<2x128xf32>
    %242 = arith.mulf %239, %206 : vector<2x128xf32>
    %243 = arith.mulf %237, %240 : vector<2x128xf32>
    %244 = arith.addf %242, %243 : vector<2x128xf32>
    %245 = math.tanh %244 : vector<2x128xf32>
    %246 = arith.mulf %241, %245 : vector<2x128xf32>
    %c4_128 = arith.constant 4 : index
    %c0_129 = arith.constant 0 : index
    %247 = vector.load %arg28[%c4_128, %c0_129] : memref<16x128xf32, #tpu.memory_space<vmem>>, vector<2x128xf32>
    %248 = arith.truncf %226 : vector<2x128xf32> to vector<2x128xbf16>
    %cst_130 = arith.constant dense<0.000000e+00> : vector<2x128xf32>
    %249 = tpu.matmul %248, %37, %cst_130 {dimension_numbers = #tpu.dot_dimension_numbers<[1], [0], [0], [1], [0, 0, 1, 1], [], []>} : vector<2x128xbf16>, vector<128x128xbf16>, vector<2x128xf32> -> vector<2x128xf32>
    %250 = arith.addf %247, %249 : vector<2x128xf32>
    %251 = arith.negf %250 : vector<2x128xf32>
    %252 = math.exp %251 : vector<2x128xf32>
    %cst_131 = arith.constant 1.000000e+00 : f32
    %253 = vector.broadcast %cst_131 : f32 to vector<2x128xf32>
    %254 = arith.addf %253, %252 : vector<2x128xf32>
    %255 = arith.divf %253, %254 : vector<2x128xf32>
    %256 = math.tanh %250 : vector<2x128xf32>
    %c96_i32_132 = arith.constant 96 : i32
    %257 = tpu.dynamic_rotate %255 by %c96_i32_132 dim 1 : vector<2x128xf32>, i32 -> vector<2x128xf32>
    %c64_i32_133 = arith.constant 64 : i32
    %258 = tpu.dynamic_rotate %256 by %c64_i32_133 dim 1 : vector<2x128xf32>, i32 -> vector<2x128xf32>
    %c32_i32_134 = arith.constant 32 : i32
    %259 = tpu.dynamic_rotate %255 by %c32_i32_134 dim 1 : vector<2x128xf32>, i32 -> vector<2x128xf32>
    %260 = arith.mulf %257, %224 : vector<2x128xf32>
    %261 = arith.mulf %255, %258 : vector<2x128xf32>
    %262 = arith.addf %260, %261 : vector<2x128xf32>
    %263 = math.tanh %262 : vector<2x128xf32>
    %264 = arith.mulf %259, %263 : vector<2x128xf32>
    %c10_135 = arith.constant 10 : index
    %c0_136 = arith.constant 0 : index
    %265 = vector.load %arg29[%c10_135, %c0_136] : memref<16x128xf32, #tpu.memory_space<vmem>>, vector<2x128xf32>
    tpu.vector_store %arg29[%c10_135, %c0_136], %246 {strides = array<i32>} : memref<16x128xf32, #tpu.memory_space<vmem>>, vector<2x128xf32>,
    %c4_137 = arith.constant 4 : index
    %c0_138 = arith.constant 0 : index
    %266 = vector.load %arg30[%c4_137, %c0_138] : memref<16x128xf32, #tpu.memory_space<vmem>>, vector<2x128xf32>
    tpu.vector_store %arg30[%c4_137, %c0_138], %264 {strides = array<i32>} : memref<16x128xf32, #tpu.memory_space<vmem>>, vector<2x128xf32>,
    %c12_139 = arith.constant 12 : index
    %c0_140 = arith.constant 0 : index
    %267 = vector.load %arg27[%c12_139, %c0_140] : memref<16x128xf32, #tpu.memory_space<vmem>>, vector<2x128xf32>
    %268 = arith.truncf %246 : vector<2x128xf32> to vector<2x128xbf16>
    %cst_141 = arith.constant dense<0.000000e+00> : vector<2x128xf32>
    %269 = tpu.matmul %268, %36, %cst_141 {dimension_numbers = #tpu.dot_dimension_numbers<[1], [0], [0], [1], [0, 0, 1, 1], [], []>} : vector<2x128xbf16>, vector<128x128xbf16>, vector<2x128xf32> -> vector<2x128xf32>
    %270 = arith.addf %267, %269 : vector<2x128xf32>
    %271 = arith.negf %270 : vector<2x128xf32>
    %272 = math.exp %271 : vector<2x128xf32>
    %cst_142 = arith.constant 1.000000e+00 : f32
    %273 = vector.broadcast %cst_142 : f32 to vector<2x128xf32>
    %274 = arith.addf %273, %272 : vector<2x128xf32>
    %275 = arith.divf %273, %274 : vector<2x128xf32>
    %276 = math.tanh %270 : vector<2x128xf32>
    %c96_i32_143 = arith.constant 96 : i32
    %277 = tpu.dynamic_rotate %275 by %c96_i32_143 dim 1 : vector<2x128xf32>, i32 -> vector<2x128xf32>
    %c64_i32_144 = arith.constant 64 : i32
    %278 = tpu.dynamic_rotate %276 by %c64_i32_144 dim 1 : vector<2x128xf32>, i32 -> vector<2x128xf32>
    %c32_i32_145 = arith.constant 32 : i32
    %279 = tpu.dynamic_rotate %275 by %c32_i32_145 dim 1 : vector<2x128xf32>, i32 -> vector<2x128xf32>
    %280 = arith.mulf %277, %244 : vector<2x128xf32>
    %281 = arith.mulf %275, %278 : vector<2x128xf32>
    %282 = arith.addf %280, %281 : vector<2x128xf32>
    %283 = math.tanh %282 : vector<2x128xf32>
    %284 = arith.mulf %279, %283 : vector<2x128xf32>
    %c2_146 = arith.constant 2 : index
    %c0_147 = arith.constant 0 : index
    %285 = vector.load %arg28[%c2_146, %c0_147] : memref<16x128xf32, #tpu.memory_space<vmem>>, vector<2x128xf32>
    %286 = arith.truncf %264 : vector<2x128xf32> to vector<2x128xbf16>
    %cst_148 = arith.constant dense<0.000000e+00> : vector<2x128xf32>
    %287 = tpu.matmul %286, %37, %cst_148 {dimension_numbers = #tpu.dot_dimension_numbers<[1], [0], [0], [1], [0, 0, 1, 1], [], []>} : vector<2x128xbf16>, vector<128x128xbf16>, vector<2x128xf32> -> vector<2x128xf32>
    %288 = arith.addf %285, %287 : vector<2x128xf32>
    %289 = arith.negf %288 : vector<2x128xf32>
    %290 = math.exp %289 : vector<2x128xf32>
    %cst_149 = arith.constant 1.000000e+00 : f32
    %291 = vector.broadcast %cst_149 : f32 to vector<2x128xf32>
    %292 = arith.addf %291, %290 : vector<2x128xf32>
    %293 = arith.divf %291, %292 : vector<2x128xf32>
    %294 = math.tanh %288 : vector<2x128xf32>
    %c96_i32_150 = arith.constant 96 : i32
    %295 = tpu.dynamic_rotate %293 by %c96_i32_150 dim 1 : vector<2x128xf32>, i32 -> vector<2x128xf32>
    %c64_i32_151 = arith.constant 64 : i32
    %296 = tpu.dynamic_rotate %294 by %c64_i32_151 dim 1 : vector<2x128xf32>, i32 -> vector<2x128xf32>
    %c32_i32_152 = arith.constant 32 : i32
    %297 = tpu.dynamic_rotate %293 by %c32_i32_152 dim 1 : vector<2x128xf32>, i32 -> vector<2x128xf32>
    %298 = arith.mulf %295, %262 : vector<2x128xf32>
    %299 = arith.mulf %293, %296 : vector<2x128xf32>
    %300 = arith.addf %298, %299 : vector<2x128xf32>
    %301 = math.tanh %300 : vector<2x128xf32>
    %302 = arith.mulf %297, %301 : vector<2x128xf32>
    %c12_153 = arith.constant 12 : index
    %c0_154 = arith.constant 0 : index
    %303 = vector.load %arg29[%c12_153, %c0_154] : memref<16x128xf32, #tpu.memory_space<vmem>>, vector<2x128xf32>
    tpu.vector_store %arg29[%c12_153, %c0_154], %284 {strides = array<i32>} : memref<16x128xf32, #tpu.memory_space<vmem>>, vector<2x128xf32>,
    %c2_155 = arith.constant 2 : index
    %c0_156 = arith.constant 0 : index
    %304 = vector.load %arg30[%c2_155, %c0_156] : memref<16x128xf32, #tpu.memory_space<vmem>>, vector<2x128xf32>
    tpu.vector_store %arg30[%c2_155, %c0_156], %302 {strides = array<i32>} : memref<16x128xf32, #tpu.memory_space<vmem>>, vector<2x128xf32>,
    %c14_157 = arith.constant 14 : index
    %c0_158 = arith.constant 0 : index
    %305 = vector.load %arg27[%c14_157, %c0_158] : memref<16x128xf32, #tpu.memory_space<vmem>>, vector<2x128xf32>
    %306 = arith.truncf %284 : vector<2x128xf32> to vector<2x128xbf16>
    %cst_159 = arith.constant dense<0.000000e+00> : vector<2x128xf32>
    %307 = tpu.matmul %306, %36, %cst_159 {dimension_numbers = #tpu.dot_dimension_numbers<[1], [0], [0], [1], [0, 0, 1, 1], [], []>} : vector<2x128xbf16>, vector<128x128xbf16>, vector<2x128xf32> -> vector<2x128xf32>
    %308 = arith.addf %305, %307 : vector<2x128xf32>
    %309 = arith.negf %308 : vector<2x128xf32>
    %310 = math.exp %309 : vector<2x128xf32>
    %cst_160 = arith.constant 1.000000e+00 : f32
    %311 = vector.broadcast %cst_160 : f32 to vector<2x128xf32>
    %312 = arith.addf %311, %310 : vector<2x128xf32>
    %313 = arith.divf %311, %312 : vector<2x128xf32>
    %314 = math.tanh %308 : vector<2x128xf32>
    %c96_i32_161 = arith.constant 96 : i32
    %315 = tpu.dynamic_rotate %313 by %c96_i32_161 dim 1 : vector<2x128xf32>, i32 -> vector<2x128xf32>
    %c64_i32_162 = arith.constant 64 : i32
    %316 = tpu.dynamic_rotate %314 by %c64_i32_162 dim 1 : vector<2x128xf32>, i32 -> vector<2x128xf32>
    %c32_i32_163 = arith.constant 32 : i32
    %317 = tpu.dynamic_rotate %313 by %c32_i32_163 dim 1 : vector<2x128xf32>, i32 -> vector<2x128xf32>
    %318 = arith.mulf %315, %282 : vector<2x128xf32>
    %319 = arith.mulf %313, %316 : vector<2x128xf32>
    %320 = arith.addf %318, %319 : vector<2x128xf32>
    %321 = math.tanh %320 : vector<2x128xf32>
    %322 = arith.mulf %317, %321 : vector<2x128xf32>
    %c0_164 = arith.constant 0 : index
    %c0_165 = arith.constant 0 : index
    %323 = vector.load %arg28[%c0_164, %c0_165] : memref<16x128xf32, #tpu.memory_space<vmem>>, vector<2x128xf32>
    %324 = arith.truncf %302 : vector<2x128xf32> to vector<2x128xbf16>
    %cst_166 = arith.constant dense<0.000000e+00> : vector<2x128xf32>
    %325 = tpu.matmul %324, %37, %cst_166 {dimension_numbers = #tpu.dot_dimension_numbers<[1], [0], [0], [1], [0, 0, 1, 1], [], []>} : vector<2x128xbf16>, vector<128x128xbf16>, vector<2x128xf32> -> vector<2x128xf32>
    %326 = arith.addf %323, %325 : vector<2x128xf32>
    %327 = arith.negf %326 : vector<2x128xf32>
    %328 = math.exp %327 : vector<2x128xf32>
    %cst_167 = arith.constant 1.000000e+00 : f32
    %329 = vector.broadcast %cst_167 : f32 to vector<2x128xf32>
    %330 = arith.addf %329, %328 : vector<2x128xf32>
    %331 = arith.divf %329, %330 : vector<2x128xf32>
    %332 = math.tanh %326 : vector<2x128xf32>
    %c96_i32_168 = arith.constant 96 : i32
    %333 = tpu.dynamic_rotate %331 by %c96_i32_168 dim 1 : vector<2x128xf32>, i32 -> vector<2x128xf32>
    %c64_i32_169 = arith.constant 64 : i32
    %334 = tpu.dynamic_rotate %332 by %c64_i32_169 dim 1 : vector<2x128xf32>, i32 -> vector<2x128xf32>
    %c32_i32_170 = arith.constant 32 : i32
    %335 = tpu.dynamic_rotate %331 by %c32_i32_170 dim 1 : vector<2x128xf32>, i32 -> vector<2x128xf32>
    %336 = arith.mulf %333, %300 : vector<2x128xf32>
    %337 = arith.mulf %331, %334 : vector<2x128xf32>
    %338 = arith.addf %336, %337 : vector<2x128xf32>
    %339 = math.tanh %338 : vector<2x128xf32>
    %340 = arith.mulf %335, %339 : vector<2x128xf32>
    %c14_171 = arith.constant 14 : index
    %c0_172 = arith.constant 0 : index
    %341 = vector.load %arg29[%c14_171, %c0_172] : memref<16x128xf32, #tpu.memory_space<vmem>>, vector<2x128xf32>
    tpu.vector_store %arg29[%c14_171, %c0_172], %322 {strides = array<i32>} : memref<16x128xf32, #tpu.memory_space<vmem>>, vector<2x128xf32>,
    %c0_173 = arith.constant 0 : index
    %c0_174 = arith.constant 0 : index
    %342 = vector.load %arg30[%c0_173, %c0_174] : memref<16x128xf32, #tpu.memory_space<vmem>>, vector<2x128xf32>
    tpu.vector_store %arg30[%c0_173, %c0_174], %340 {strides = array<i32>} : memref<16x128xf32, #tpu.memory_space<vmem>>, vector<2x128xf32>,
    %c0_175 = arith.constant 0 : index
    %c0_176 = arith.constant 0 : index
    %343 = vector.load %arg29[%c0_175, %c0_176] : memref<16x128xf32, #tpu.memory_space<vmem>>, vector<16x128xf32>
    %344 = arith.truncf %343 : vector<16x128xf32> to vector<16x128xbf16>
    %c0_177 = arith.constant 0 : index
    %c0_178 = arith.constant 0 : index
    %345 = vector.load %arg30[%c0_177, %c0_178] : memref<16x128xf32, #tpu.memory_space<vmem>>, vector<16x128xf32>
    %346 = arith.truncf %345 : vector<16x128xf32> to vector<16x128xbf16>
    %c0_179 = arith.constant 0 : index
    %c0_180 = arith.constant 0 : index
    %347 = vector.load %arg14[%c0_179, %c0_180] : memref<128x128xbf16, #tpu.memory_space<vmem>>, vector<128x128xbf16>
    %cst_181 = arith.constant dense<0.000000e+00> : vector<16x128xf32>
    %348 = tpu.matmul %344, %347, %cst_181 {dimension_numbers = #tpu.dot_dimension_numbers<[1], [0], [0], [1], [0, 0, 1, 1], [], []>} : vector<16x128xbf16>, vector<128x128xbf16>, vector<16x128xf32> -> vector<16x128xf32>
    %c0_182 = arith.constant 0 : index
    %c0_183 = arith.constant 0 : index
    %349 = vector.load %arg15[%c0_182, %c0_183] : memref<128x128xbf16, #tpu.memory_space<vmem>>, vector<128x128xbf16>
    %cst_184 = arith.constant dense<0.000000e+00> : vector<16x128xf32>
    %350 = tpu.matmul %346, %349, %cst_184 {dimension_numbers = #tpu.dot_dimension_numbers<[1], [0], [0], [1], [0, 0, 1, 1], [], []>} : vector<16x128xbf16>, vector<128x128xbf16>, vector<16x128xf32> -> vector<16x128xf32>
    %351 = arith.addf %348, %350 : vector<16x128xf32>
    %c0_185 = arith.constant 0 : index
    %c0_186 = arith.constant 0 : index
    %352 = vector.load %arg17[%c0_185, %c0_186] : memref<1x128xf32, #tpu.memory_space<vmem>>, vector<1x128xf32>
    %353 = vector.broadcast %352 : vector<1x128xf32> to vector<16x128xf32>
    %354 = arith.addf %351, %353 : vector<16x128xf32>
    %c0_187 = arith.constant 0 : index
    %c0_188 = arith.constant 0 : index
    %355 = vector.load %arg31[%c0_187, %c0_188] : memref<16x128xf32, #tpu.memory_space<vmem>>, vector<16x128xf32>
    tpu.vector_store %arg31[%c0_187, %c0_188], %354 {strides = array<i32>} : memref<16x128xf32, #tpu.memory_space<vmem>>, vector<16x128xf32>,
    %c0_189 = arith.constant 0 : index
    %c0_190 = arith.constant 0 : index
    %356 = vector.load %arg18[%c0_189, %c0_190] : memref<128x128xbf16, #tpu.memory_space<vmem>>, vector<128x128xbf16>
    %cst_191 = arith.constant dense<0.000000e+00> : vector<16x128xf32>
    %357 = tpu.matmul %344, %356, %cst_191 {dimension_numbers = #tpu.dot_dimension_numbers<[1], [0], [0], [1], [0, 0, 1, 1], [], []>} : vector<16x128xbf16>, vector<128x128xbf16>, vector<16x128xf32> -> vector<16x128xf32>
    %c0_192 = arith.constant 0 : index
    %c0_193 = arith.constant 0 : index
    %358 = vector.load %arg19[%c0_192, %c0_193] : memref<128x128xbf16, #tpu.memory_space<vmem>>, vector<128x128xbf16>
    %cst_194 = arith.constant dense<0.000000e+00> : vector<16x128xf32>
    %359 = tpu.matmul %346, %358, %cst_194 {dimension_numbers = #tpu.dot_dimension_numbers<[1], [0], [0], [1], [0, 0, 1, 1], [], []>} : vector<16x128xbf16>, vector<128x128xbf16>, vector<16x128xf32> -> vector<16x128xf32>
    %360 = arith.addf %357, %359 : vector<16x128xf32>
    %c0_195 = arith.constant 0 : index
    %c0_196 = arith.constant 0 : index
    %361 = vector.load %arg21[%c0_195, %c0_196] : memref<1x128xf32, #tpu.memory_space<vmem>>, vector<1x128xf32>
    %362 = vector.broadcast %361 : vector<1x128xf32> to vector<16x128xf32>
    %363 = arith.addf %360, %362 : vector<16x128xf32>
    %c0_197 = arith.constant 0 : index
    %c0_198 = arith.constant 0 : index
    %364 = vector.load %arg32[%c0_197, %c0_198] : memref<16x128xf32, #tpu.memory_space<vmem>>, vector<16x128xf32>
    tpu.vector_store %arg32[%c0_197, %c0_198], %363 {strides = array<i32>} : memref<16x128xf32, #tpu.memory_space<vmem>>, vector<16x128xf32>,
    %c0_199 = arith.constant 0 : index
    %c0_200 = arith.constant 0 : index
    %365 = vector.load %arg16[%c0_199, %c0_200] : memref<128x128xbf16, #tpu.memory_space<vmem>>, vector<128x128xbf16>
    %c0_201 = arith.constant 0 : index
    %c0_202 = arith.constant 0 : index
    %366 = vector.load %arg20[%c0_201, %c0_202] : memref<128x128xbf16, #tpu.memory_space<vmem>>, vector<128x128xbf16>
    %c0_203 = arith.constant 0 : index
    %c0_204 = arith.constant 0 : index
    %367 = vector.load %arg31[%c0_203, %c0_204] : memref<16x128xf32, #tpu.memory_space<vmem>>, vector<2x128xf32>
    %368 = arith.truncf %38 : vector<2x128xf32> to vector<2x128xbf16>
    %cst_205 = arith.constant dense<0.000000e+00> : vector<2x128xf32>
    %369 = tpu.matmul %368, %365, %cst_205 {dimension_numbers = #tpu.dot_dimension_numbers<[1], [0], [0], [1], [0, 0, 1, 1], [], []>} : vector<2x128xbf16>, vector<128x128xbf16>, vector<2x128xf32> -> vector<2x128xf32>
    %370 = arith.addf %367, %369 : vector<2x128xf32>
    %371 = arith.negf %370 : vector<2x128xf32>
    %372 = math.exp %371 : vector<2x128xf32>
    %cst_206 = arith.constant 1.000000e+00 : f32
    %373 = vector.broadcast %cst_206 : f32 to vector<2x128xf32>
    %374 = arith.addf %373, %372 : vector<2x128xf32>
    %375 = arith.divf %373, %374 : vector<2x128xf32>
    %376 = math.tanh %370 : vector<2x128xf32>
    %c96_i32_207 = arith.constant 96 : i32
    %377 = tpu.dynamic_rotate %375 by %c96_i32_207 dim 1 : vector<2x128xf32>, i32 -> vector<2x128xf32>
    %c64_i32_208 = arith.constant 64 : i32
    %378 = tpu.dynamic_rotate %376 by %c64_i32_208 dim 1 : vector<2x128xf32>, i32 -> vector<2x128xf32>
    %c32_i32_209 = arith.constant 32 : i32
    %379 = tpu.dynamic_rotate %375 by %c32_i32_209 dim 1 : vector<2x128xf32>, i32 -> vector<2x128xf32>
    %380 = arith.mulf %377, %38 : vector<2x128xf32>
    %381 = arith.mulf %375, %378 : vector<2x128xf32>
    %382 = arith.addf %380, %381 : vector<2x128xf32>
    %383 = math.tanh %382 : vector<2x128xf32>
    %384 = arith.mulf %379, %383 : vector<2x128xf32>
    %c14_210 = arith.constant 14 : index
    %c0_211 = arith.constant 0 : index
    %385 = vector.load %arg32[%c14_210, %c0_211] : memref<16x128xf32, #tpu.memory_space<vmem>>, vector<2x128xf32>
    %386 = arith.truncf %38 : vector<2x128xf32> to vector<2x128xbf16>
    %cst_212 = arith.constant dense<0.000000e+00> : vector<2x128xf32>
    %387 = tpu.matmul %386, %366, %cst_212 {dimension_numbers = #tpu.dot_dimension_numbers<[1], [0], [0], [1], [0, 0, 1, 1], [], []>} : vector<2x128xbf16>, vector<128x128xbf16>, vector<2x128xf32> -> vector<2x128xf32>
    %388 = arith.addf %385, %387 : vector<2x128xf32>
    %389 = arith.negf %388 : vector<2x128xf32>
    %390 = math.exp %389 : vector<2x128xf32>
    %cst_213 = arith.constant 1.000000e+00 : f32
    %391 = vector.broadcast %cst_213 : f32 to vector<2x128xf32>
    %392 = arith.addf %391, %390 : vector<2x128xf32>
    %393 = arith.divf %391, %392 : vector<2x128xf32>
    %394 = math.tanh %388 : vector<2x128xf32>
    %c96_i32_214 = arith.constant 96 : i32
    %395 = tpu.dynamic_rotate %393 by %c96_i32_214 dim 1 : vector<2x128xf32>, i32 -> vector<2x128xf32>
    %c64_i32_215 = arith.constant 64 : i32
    %396 = tpu.dynamic_rotate %394 by %c64_i32_215 dim 1 : vector<2x128xf32>, i32 -> vector<2x128xf32>
    %c32_i32_216 = arith.constant 32 : i32
    %397 = tpu.dynamic_rotate %393 by %c32_i32_216 dim 1 : vector<2x128xf32>, i32 -> vector<2x128xf32>
    %398 = arith.mulf %395, %38 : vector<2x128xf32>
    %399 = arith.mulf %393, %396 : vector<2x128xf32>
    %400 = arith.addf %398, %399 : vector<2x128xf32>
    %401 = math.tanh %400 : vector<2x128xf32>
    %402 = arith.mulf %397, %401 : vector<2x128xf32>
    %c2_217 = arith.constant 2 : index
    %c0_218 = arith.constant 0 : index
    %403 = vector.load %arg31[%c2_217, %c0_218] : memref<16x128xf32, #tpu.memory_space<vmem>>, vector<2x128xf32>
    %404 = arith.truncf %384 : vector<2x128xf32> to vector<2x128xbf16>
    %cst_219 = arith.constant dense<0.000000e+00> : vector<2x128xf32>
    %405 = tpu.matmul %404, %365, %cst_219 {dimension_numbers = #tpu.dot_dimension_numbers<[1], [0], [0], [1], [0, 0, 1, 1], [], []>} : vector<2x128xbf16>, vector<128x128xbf16>, vector<2x128xf32> -> vector<2x128xf32>
    %406 = arith.addf %403, %405 : vector<2x128xf32>
    %407 = arith.negf %406 : vector<2x128xf32>
    %408 = math.exp %407 : vector<2x128xf32>
    %cst_220 = arith.constant 1.000000e+00 : f32
    %409 = vector.broadcast %cst_220 : f32 to vector<2x128xf32>
    %410 = arith.addf %409, %408 : vector<2x128xf32>
    %411 = arith.divf %409, %410 : vector<2x128xf32>
    %412 = math.tanh %406 : vector<2x128xf32>
    %c96_i32_221 = arith.constant 96 : i32
    %413 = tpu.dynamic_rotate %411 by %c96_i32_221 dim 1 : vector<2x128xf32>, i32 -> vector<2x128xf32>
    %c64_i32_222 = arith.constant 64 : i32
    %414 = tpu.dynamic_rotate %412 by %c64_i32_222 dim 1 : vector<2x128xf32>, i32 -> vector<2x128xf32>
    %c32_i32_223 = arith.constant 32 : i32
    %415 = tpu.dynamic_rotate %411 by %c32_i32_223 dim 1 : vector<2x128xf32>, i32 -> vector<2x128xf32>
    %416 = arith.mulf %413, %382 : vector<2x128xf32>
    %417 = arith.mulf %411, %414 : vector<2x128xf32>
    %418 = arith.addf %416, %417 : vector<2x128xf32>
    %419 = math.tanh %418 : vector<2x128xf32>
    %420 = arith.mulf %415, %419 : vector<2x128xf32>
    %c12_224 = arith.constant 12 : index
    %c0_225 = arith.constant 0 : index
    %421 = vector.load %arg32[%c12_224, %c0_225] : memref<16x128xf32, #tpu.memory_space<vmem>>, vector<2x128xf32>
    %422 = arith.truncf %402 : vector<2x128xf32> to vector<2x128xbf16>
    %cst_226 = arith.constant dense<0.000000e+00> : vector<2x128xf32>
    %423 = tpu.matmul %422, %366, %cst_226 {dimension_numbers = #tpu.dot_dimension_numbers<[1], [0], [0], [1], [0, 0, 1, 1], [], []>} : vector<2x128xbf16>, vector<128x128xbf16>, vector<2x128xf32> -> vector<2x128xf32>
    %424 = arith.addf %421, %423 : vector<2x128xf32>
    %425 = arith.negf %424 : vector<2x128xf32>
    %426 = math.exp %425 : vector<2x128xf32>
    %cst_227 = arith.constant 1.000000e+00 : f32
    %427 = vector.broadcast %cst_227 : f32 to vector<2x128xf32>
    %428 = arith.addf %427, %426 : vector<2x128xf32>
    %429 = arith.divf %427, %428 : vector<2x128xf32>
    %430 = math.tanh %424 : vector<2x128xf32>
    %c96_i32_228 = arith.constant 96 : i32
    %431 = tpu.dynamic_rotate %429 by %c96_i32_228 dim 1 : vector<2x128xf32>, i32 -> vector<2x128xf32>
    %c64_i32_229 = arith.constant 64 : i32
    %432 = tpu.dynamic_rotate %430 by %c64_i32_229 dim 1 : vector<2x128xf32>, i32 -> vector<2x128xf32>
    %c32_i32_230 = arith.constant 32 : i32
    %433 = tpu.dynamic_rotate %429 by %c32_i32_230 dim 1 : vector<2x128xf32>, i32 -> vector<2x128xf32>
    %434 = arith.mulf %431, %400 : vector<2x128xf32>
    %435 = arith.mulf %429, %432 : vector<2x128xf32>
    %436 = arith.addf %434, %435 : vector<2x128xf32>
    %437 = math.tanh %436 : vector<2x128xf32>
    %438 = arith.mulf %433, %437 : vector<2x128xf32>
    %c4_231 = arith.constant 4 : index
    %c0_232 = arith.constant 0 : index
    %439 = vector.load %arg31[%c4_231, %c0_232] : memref<16x128xf32, #tpu.memory_space<vmem>>, vector<2x128xf32>
    %440 = arith.truncf %420 : vector<2x128xf32> to vector<2x128xbf16>
    %cst_233 = arith.constant dense<0.000000e+00> : vector<2x128xf32>
    %441 = tpu.matmul %440, %365, %cst_233 {dimension_numbers = #tpu.dot_dimension_numbers<[1], [0], [0], [1], [0, 0, 1, 1], [], []>} : vector<2x128xbf16>, vector<128x128xbf16>, vector<2x128xf32> -> vector<2x128xf32>
    %442 = arith.addf %439, %441 : vector<2x128xf32>
    %443 = arith.negf %442 : vector<2x128xf32>
    %444 = math.exp %443 : vector<2x128xf32>
    %cst_234 = arith.constant 1.000000e+00 : f32
    %445 = vector.broadcast %cst_234 : f32 to vector<2x128xf32>
    %446 = arith.addf %445, %444 : vector<2x128xf32>
    %447 = arith.divf %445, %446 : vector<2x128xf32>
    %448 = math.tanh %442 : vector<2x128xf32>
    %c96_i32_235 = arith.constant 96 : i32
    %449 = tpu.dynamic_rotate %447 by %c96_i32_235 dim 1 : vector<2x128xf32>, i32 -> vector<2x128xf32>
    %c64_i32_236 = arith.constant 64 : i32
    %450 = tpu.dynamic_rotate %448 by %c64_i32_236 dim 1 : vector<2x128xf32>, i32 -> vector<2x128xf32>
    %c32_i32_237 = arith.constant 32 : i32
    %451 = tpu.dynamic_rotate %447 by %c32_i32_237 dim 1 : vector<2x128xf32>, i32 -> vector<2x128xf32>
    %452 = arith.mulf %449, %418 : vector<2x128xf32>
    %453 = arith.mulf %447, %450 : vector<2x128xf32>
    %454 = arith.addf %452, %453 : vector<2x128xf32>
    %455 = math.tanh %454 : vector<2x128xf32>
    %456 = arith.mulf %451, %455 : vector<2x128xf32>
    %c10_238 = arith.constant 10 : index
    %c0_239 = arith.constant 0 : index
    %457 = vector.load %arg32[%c10_238, %c0_239] : memref<16x128xf32, #tpu.memory_space<vmem>>, vector<2x128xf32>
    %458 = arith.truncf %438 : vector<2x128xf32> to vector<2x128xbf16>
    %cst_240 = arith.constant dense<0.000000e+00> : vector<2x128xf32>
    %459 = tpu.matmul %458, %366, %cst_240 {dimension_numbers = #tpu.dot_dimension_numbers<[1], [0], [0], [1], [0, 0, 1, 1], [], []>} : vector<2x128xbf16>, vector<128x128xbf16>, vector<2x128xf32> -> vector<2x128xf32>
    %460 = arith.addf %457, %459 : vector<2x128xf32>
    %461 = arith.negf %460 : vector<2x128xf32>
    %462 = math.exp %461 : vector<2x128xf32>
    %cst_241 = arith.constant 1.000000e+00 : f32
    %463 = vector.broadcast %cst_241 : f32 to vector<2x128xf32>
    %464 = arith.addf %463, %462 : vector<2x128xf32>
    %465 = arith.divf %463, %464 : vector<2x128xf32>
    %466 = math.tanh %460 : vector<2x128xf32>
    %c96_i32_242 = arith.constant 96 : i32
    %467 = tpu.dynamic_rotate %465 by %c96_i32_242 dim 1 : vector<2x128xf32>, i32 -> vector<2x128xf32>
    %c64_i32_243 = arith.constant 64 : i32
    %468 = tpu.dynamic_rotate %466 by %c64_i32_243 dim 1 : vector<2x128xf32>, i32 -> vector<2x128xf32>
    %c32_i32_244 = arith.constant 32 : i32
    %469 = tpu.dynamic_rotate %465 by %c32_i32_244 dim 1 : vector<2x128xf32>, i32 -> vector<2x128xf32>
    %470 = arith.mulf %467, %436 : vector<2x128xf32>
    %471 = arith.mulf %465, %468 : vector<2x128xf32>
    %472 = arith.addf %470, %471 : vector<2x128xf32>
    %473 = math.tanh %472 : vector<2x128xf32>
    %474 = arith.mulf %469, %473 : vector<2x128xf32>
    %c6_245 = arith.constant 6 : index
    %c0_246 = arith.constant 0 : index
    %475 = vector.load %arg31[%c6_245, %c0_246] : memref<16x128xf32, #tpu.memory_space<vmem>>, vector<2x128xf32>
    %476 = arith.truncf %456 : vector<2x128xf32> to vector<2x128xbf16>
    %cst_247 = arith.constant dense<0.000000e+00> : vector<2x128xf32>
    %477 = tpu.matmul %476, %365, %cst_247 {dimension_numbers = #tpu.dot_dimension_numbers<[1], [0], [0], [1], [0, 0, 1, 1], [], []>} : vector<2x128xbf16>, vector<128x128xbf16>, vector<2x128xf32> -> vector<2x128xf32>
    %478 = arith.addf %475, %477 : vector<2x128xf32>
    %479 = arith.negf %478 : vector<2x128xf32>
    %480 = math.exp %479 : vector<2x128xf32>
    %cst_248 = arith.constant 1.000000e+00 : f32
    %481 = vector.broadcast %cst_248 : f32 to vector<2x128xf32>
    %482 = arith.addf %481, %480 : vector<2x128xf32>
    %483 = arith.divf %481, %482 : vector<2x128xf32>
    %484 = math.tanh %478 : vector<2x128xf32>
    %c96_i32_249 = arith.constant 96 : i32
    %485 = tpu.dynamic_rotate %483 by %c96_i32_249 dim 1 : vector<2x128xf32>, i32 -> vector<2x128xf32>
    %c64_i32_250 = arith.constant 64 : i32
    %486 = tpu.dynamic_rotate %484 by %c64_i32_250 dim 1 : vector<2x128xf32>, i32 -> vector<2x128xf32>
    %c32_i32_251 = arith.constant 32 : i32
    %487 = tpu.dynamic_rotate %483 by %c32_i32_251 dim 1 : vector<2x128xf32>, i32 -> vector<2x128xf32>
    %488 = arith.mulf %485, %454 : vector<2x128xf32>
    %489 = arith.mulf %483, %486 : vector<2x128xf32>
    %490 = arith.addf %488, %489 : vector<2x128xf32>
    %491 = math.tanh %490 : vector<2x128xf32>
    %492 = arith.mulf %487, %491 : vector<2x128xf32>
    %c8_252 = arith.constant 8 : index
    %c0_253 = arith.constant 0 : index
    %493 = vector.load %arg32[%c8_252, %c0_253] : memref<16x128xf32, #tpu.memory_space<vmem>>, vector<2x128xf32>
    %494 = arith.truncf %474 : vector<2x128xf32> to vector<2x128xbf16>
    %cst_254 = arith.constant dense<0.000000e+00> : vector<2x128xf32>
    %495 = tpu.matmul %494, %366, %cst_254 {dimension_numbers = #tpu.dot_dimension_numbers<[1], [0], [0], [1], [0, 0, 1, 1], [], []>} : vector<2x128xbf16>, vector<128x128xbf16>, vector<2x128xf32> -> vector<2x128xf32>
    %496 = arith.addf %493, %495 : vector<2x128xf32>
    %497 = arith.negf %496 : vector<2x128xf32>
    %498 = math.exp %497 : vector<2x128xf32>
    %cst_255 = arith.constant 1.000000e+00 : f32
    %499 = vector.broadcast %cst_255 : f32 to vector<2x128xf32>
    %500 = arith.addf %499, %498 : vector<2x128xf32>
    %501 = arith.divf %499, %500 : vector<2x128xf32>
    %502 = math.tanh %496 : vector<2x128xf32>
    %c96_i32_256 = arith.constant 96 : i32
    %503 = tpu.dynamic_rotate %501 by %c96_i32_256 dim 1 : vector<2x128xf32>, i32 -> vector<2x128xf32>
    %c64_i32_257 = arith.constant 64 : i32
    %504 = tpu.dynamic_rotate %502 by %c64_i32_257 dim 1 : vector<2x128xf32>, i32 -> vector<2x128xf32>
    %c32_i32_258 = arith.constant 32 : i32
    %505 = tpu.dynamic_rotate %501 by %c32_i32_258 dim 1 : vector<2x128xf32>, i32 -> vector<2x128xf32>
    %506 = arith.mulf %503, %472 : vector<2x128xf32>
    %507 = arith.mulf %501, %504 : vector<2x128xf32>
    %508 = arith.addf %506, %507 : vector<2x128xf32>
    %509 = math.tanh %508 : vector<2x128xf32>
    %510 = arith.mulf %505, %509 : vector<2x128xf32>
    %c8_259 = arith.constant 8 : index
    %c0_260 = arith.constant 0 : index
    %511 = vector.load %arg31[%c8_259, %c0_260] : memref<16x128xf32, #tpu.memory_space<vmem>>, vector<2x128xf32>
    %512 = arith.truncf %492 : vector<2x128xf32> to vector<2x128xbf16>
    %cst_261 = arith.constant dense<0.000000e+00> : vector<2x128xf32>
    %513 = tpu.matmul %512, %365, %cst_261 {dimension_numbers = #tpu.dot_dimension_numbers<[1], [0], [0], [1], [0, 0, 1, 1], [], []>} : vector<2x128xbf16>, vector<128x128xbf16>, vector<2x128xf32> -> vector<2x128xf32>
    %514 = arith.addf %511, %513 : vector<2x128xf32>
    %515 = arith.negf %514 : vector<2x128xf32>
    %516 = math.exp %515 : vector<2x128xf32>
    %cst_262 = arith.constant 1.000000e+00 : f32
    %517 = vector.broadcast %cst_262 : f32 to vector<2x128xf32>
    %518 = arith.addf %517, %516 : vector<2x128xf32>
    %519 = arith.divf %517, %518 : vector<2x128xf32>
    %520 = math.tanh %514 : vector<2x128xf32>
    %c96_i32_263 = arith.constant 96 : i32
    %521 = tpu.dynamic_rotate %519 by %c96_i32_263 dim 1 : vector<2x128xf32>, i32 -> vector<2x128xf32>
    %c64_i32_264 = arith.constant 64 : i32
    %522 = tpu.dynamic_rotate %520 by %c64_i32_264 dim 1 : vector<2x128xf32>, i32 -> vector<2x128xf32>
    %c32_i32_265 = arith.constant 32 : i32
    %523 = tpu.dynamic_rotate %519 by %c32_i32_265 dim 1 : vector<2x128xf32>, i32 -> vector<2x128xf32>
    %524 = arith.mulf %521, %490 : vector<2x128xf32>
    %525 = arith.mulf %519, %522 : vector<2x128xf32>
    %526 = arith.addf %524, %525 : vector<2x128xf32>
    %527 = math.tanh %526 : vector<2x128xf32>
    %528 = arith.mulf %523, %527 : vector<2x128xf32>
    %c6_266 = arith.constant 6 : index
    %c0_267 = arith.constant 0 : index
    %529 = vector.load %arg32[%c6_266, %c0_267] : memref<16x128xf32, #tpu.memory_space<vmem>>, vector<2x128xf32>
    %530 = arith.truncf %510 : vector<2x128xf32> to vector<2x128xbf16>
    %cst_268 = arith.constant dense<0.000000e+00> : vector<2x128xf32>
    %531 = tpu.matmul %530, %366, %cst_268 {dimension_numbers = #tpu.dot_dimension_numbers<[1], [0], [0], [1], [0, 0, 1, 1], [], []>} : vector<2x128xbf16>, vector<128x128xbf16>, vector<2x128xf32> -> vector<2x128xf32>
    %532 = arith.addf %529, %531 : vector<2x128xf32>
    %533 = arith.negf %532 : vector<2x128xf32>
    %534 = math.exp %533 : vector<2x128xf32>
    %cst_269 = arith.constant 1.000000e+00 : f32
    %535 = vector.broadcast %cst_269 : f32 to vector<2x128xf32>
    %536 = arith.addf %535, %534 : vector<2x128xf32>
    %537 = arith.divf %535, %536 : vector<2x128xf32>
    %538 = math.tanh %532 : vector<2x128xf32>
    %c96_i32_270 = arith.constant 96 : i32
    %539 = tpu.dynamic_rotate %537 by %c96_i32_270 dim 1 : vector<2x128xf32>, i32 -> vector<2x128xf32>
    %c64_i32_271 = arith.constant 64 : i32
    %540 = tpu.dynamic_rotate %538 by %c64_i32_271 dim 1 : vector<2x128xf32>, i32 -> vector<2x128xf32>
    %c32_i32_272 = arith.constant 32 : i32
    %541 = tpu.dynamic_rotate %537 by %c32_i32_272 dim 1 : vector<2x128xf32>, i32 -> vector<2x128xf32>
    %542 = arith.mulf %539, %508 : vector<2x128xf32>
    %543 = arith.mulf %537, %540 : vector<2x128xf32>
    %544 = arith.addf %542, %543 : vector<2x128xf32>
    %545 = math.tanh %544 : vector<2x128xf32>
    %546 = arith.mulf %541, %545 : vector<2x128xf32>
    %c10_273 = arith.constant 10 : index
    %c0_274 = arith.constant 0 : index
    %547 = vector.load %arg31[%c10_273, %c0_274] : memref<16x128xf32, #tpu.memory_space<vmem>>, vector<2x128xf32>
    %548 = arith.truncf %528 : vector<2x128xf32> to vector<2x128xbf16>
    %cst_275 = arith.constant dense<0.000000e+00> : vector<2x128xf32>
    %549 = tpu.matmul %548, %365, %cst_275 {dimension_numbers = #tpu.dot_dimension_numbers<[1], [0], [0], [1], [0, 0, 1, 1], [], []>} : vector<2x128xbf16>, vector<128x128xbf16>, vector<2x128xf32> -> vector<2x128xf32>
    %550 = arith.addf %547, %549 : vector<2x128xf32>
    %551 = arith.negf %550 : vector<2x128xf32>
    %552 = math.exp %551 : vector<2x128xf32>
    %cst_276 = arith.constant 1.000000e+00 : f32
    %553 = vector.broadcast %cst_276 : f32 to vector<2x128xf32>
    %554 = arith.addf %553, %552 : vector<2x128xf32>
    %555 = arith.divf %553, %554 : vector<2x128xf32>
    %556 = math.tanh %550 : vector<2x128xf32>
    %c96_i32_277 = arith.constant 96 : i32
    %557 = tpu.dynamic_rotate %555 by %c96_i32_277 dim 1 : vector<2x128xf32>, i32 -> vector<2x128xf32>
    %c64_i32_278 = arith.constant 64 : i32
    %558 = tpu.dynamic_rotate %556 by %c64_i32_278 dim 1 : vector<2x128xf32>, i32 -> vector<2x128xf32>
    %c32_i32_279 = arith.constant 32 : i32
    %559 = tpu.dynamic_rotate %555 by %c32_i32_279 dim 1 : vector<2x128xf32>, i32 -> vector<2x128xf32>
    %560 = arith.mulf %557, %526 : vector<2x128xf32>
    %561 = arith.mulf %555, %558 : vector<2x128xf32>
    %562 = arith.addf %560, %561 : vector<2x128xf32>
    %563 = math.tanh %562 : vector<2x128xf32>
    %564 = arith.mulf %559, %563 : vector<2x128xf32>
    %c4_280 = arith.constant 4 : index
    %c0_281 = arith.constant 0 : index
    %565 = vector.load %arg32[%c4_280, %c0_281] : memref<16x128xf32, #tpu.memory_space<vmem>>, vector<2x128xf32>
    %566 = arith.truncf %546 : vector<2x128xf32> to vector<2x128xbf16>
    %cst_282 = arith.constant dense<0.000000e+00> : vector<2x128xf32>
    %567 = tpu.matmul %566, %366, %cst_282 {dimension_numbers = #tpu.dot_dimension_numbers<[1], [0], [0], [1], [0, 0, 1, 1], [], []>} : vector<2x128xbf16>, vector<128x128xbf16>, vector<2x128xf32> -> vector<2x128xf32>
    %568 = arith.addf %565, %567 : vector<2x128xf32>
    %569 = arith.negf %568 : vector<2x128xf32>
    %570 = math.exp %569 : vector<2x128xf32>
    %cst_283 = arith.constant 1.000000e+00 : f32
    %571 = vector.broadcast %cst_283 : f32 to vector<2x128xf32>
    %572 = arith.addf %571, %570 : vector<2x128xf32>
    %573 = arith.divf %571, %572 : vector<2x128xf32>
    %574 = math.tanh %568 : vector<2x128xf32>
    %c96_i32_284 = arith.constant 96 : i32
    %575 = tpu.dynamic_rotate %573 by %c96_i32_284 dim 1 : vector<2x128xf32>, i32 -> vector<2x128xf32>
    %c64_i32_285 = arith.constant 64 : i32
    %576 = tpu.dynamic_rotate %574 by %c64_i32_285 dim 1 : vector<2x128xf32>, i32 -> vector<2x128xf32>
    %c32_i32_286 = arith.constant 32 : i32
    %577 = tpu.dynamic_rotate %573 by %c32_i32_286 dim 1 : vector<2x128xf32>, i32 -> vector<2x128xf32>
    %578 = arith.mulf %575, %544 : vector<2x128xf32>
    %579 = arith.mulf %573, %576 : vector<2x128xf32>
    %580 = arith.addf %578, %579 : vector<2x128xf32>
    %581 = math.tanh %580 : vector<2x128xf32>
    %582 = arith.mulf %577, %581 : vector<2x128xf32>
    %c12_287 = arith.constant 12 : index
    %c0_288 = arith.constant 0 : index
    %583 = vector.load %arg31[%c12_287, %c0_288] : memref<16x128xf32, #tpu.memory_space<vmem>>, vector<2x128xf32>
    %584 = arith.truncf %564 : vector<2x128xf32> to vector<2x128xbf16>
    %cst_289 = arith.constant dense<0.000000e+00> : vector<2x128xf32>
    %585 = tpu.matmul %584, %365, %cst_289 {dimension_numbers = #tpu.dot_dimension_numbers<[1], [0], [0], [1], [0, 0, 1, 1], [], []>} : vector<2x128xbf16>, vector<128x128xbf16>, vector<2x128xf32> -> vector<2x128xf32>
    %586 = arith.addf %583, %585 : vector<2x128xf32>
    %587 = arith.negf %586 : vector<2x128xf32>
    %588 = math.exp %587 : vector<2x128xf32>
    %cst_290 = arith.constant 1.000000e+00 : f32
    %589 = vector.broadcast %cst_290 : f32 to vector<2x128xf32>
    %590 = arith.addf %589, %588 : vector<2x128xf32>
    %591 = arith.divf %589, %590 : vector<2x128xf32>
    %592 = math.tanh %586 : vector<2x128xf32>
    %c96_i32_291 = arith.constant 96 : i32
    %593 = tpu.dynamic_rotate %591 by %c96_i32_291 dim 1 : vector<2x128xf32>, i32 -> vector<2x128xf32>
    %c64_i32_292 = arith.constant 64 : i32
    %594 = tpu.dynamic_rotate %592 by %c64_i32_292 dim 1 : vector<2x128xf32>, i32 -> vector<2x128xf32>
    %c32_i32_293 = arith.constant 32 : i32
    %595 = tpu.dynamic_rotate %591 by %c32_i32_293 dim 1 : vector<2x128xf32>, i32 -> vector<2x128xf32>
    %596 = arith.mulf %593, %562 : vector<2x128xf32>
    %597 = arith.mulf %591, %594 : vector<2x128xf32>
    %598 = arith.addf %596, %597 : vector<2x128xf32>
    %599 = math.tanh %598 : vector<2x128xf32>
    %600 = arith.mulf %595, %599 : vector<2x128xf32>
    %c2_294 = arith.constant 2 : index
    %c0_295 = arith.constant 0 : index
    %601 = vector.load %arg32[%c2_294, %c0_295] : memref<16x128xf32, #tpu.memory_space<vmem>>, vector<2x128xf32>
    %602 = arith.truncf %582 : vector<2x128xf32> to vector<2x128xbf16>
    %cst_296 = arith.constant dense<0.000000e+00> : vector<2x128xf32>
    %603 = tpu.matmul %602, %366, %cst_296 {dimension_numbers = #tpu.dot_dimension_numbers<[1], [0], [0], [1], [0, 0, 1, 1], [], []>} : vector<2x128xbf16>, vector<128x128xbf16>, vector<2x128xf32> -> vector<2x128xf32>
    %604 = arith.addf %601, %603 : vector<2x128xf32>
    %605 = arith.negf %604 : vector<2x128xf32>
    %606 = math.exp %605 : vector<2x128xf32>
    %cst_297 = arith.constant 1.000000e+00 : f32
    %607 = vector.broadcast %cst_297 : f32 to vector<2x128xf32>
    %608 = arith.addf %607, %606 : vector<2x128xf32>
    %609 = arith.divf %607, %608 : vector<2x128xf32>
    %610 = math.tanh %604 : vector<2x128xf32>
    %c96_i32_298 = arith.constant 96 : i32
    %611 = tpu.dynamic_rotate %609 by %c96_i32_298 dim 1 : vector<2x128xf32>, i32 -> vector<2x128xf32>
    %c64_i32_299 = arith.constant 64 : i32
    %612 = tpu.dynamic_rotate %610 by %c64_i32_299 dim 1 : vector<2x128xf32>, i32 -> vector<2x128xf32>
    %c32_i32_300 = arith.constant 32 : i32
    %613 = tpu.dynamic_rotate %609 by %c32_i32_300 dim 1 : vector<2x128xf32>, i32 -> vector<2x128xf32>
    %614 = arith.mulf %611, %580 : vector<2x128xf32>
    %615 = arith.mulf %609, %612 : vector<2x128xf32>
    %616 = arith.addf %614, %615 : vector<2x128xf32>
    %617 = math.tanh %616 : vector<2x128xf32>
    %618 = arith.mulf %613, %617 : vector<2x128xf32>
    %c14_301 = arith.constant 14 : index
    %c0_302 = arith.constant 0 : index
    %619 = vector.load %arg31[%c14_301, %c0_302] : memref<16x128xf32, #tpu.memory_space<vmem>>, vector<2x128xf32>
    %620 = arith.truncf %600 : vector<2x128xf32> to vector<2x128xbf16>
    %cst_303 = arith.constant dense<0.000000e+00> : vector<2x128xf32>
    %621 = tpu.matmul %620, %365, %cst_303 {dimension_numbers = #tpu.dot_dimension_numbers<[1], [0], [0], [1], [0, 0, 1, 1], [], []>} : vector<2x128xbf16>, vector<128x128xbf16>, vector<2x128xf32> -> vector<2x128xf32>
    %622 = arith.addf %619, %621 : vector<2x128xf32>
    %623 = arith.negf %622 : vector<2x128xf32>
    %624 = math.exp %623 : vector<2x128xf32>
    %cst_304 = arith.constant 1.000000e+00 : f32
    %625 = vector.broadcast %cst_304 : f32 to vector<2x128xf32>
    %626 = arith.addf %625, %624 : vector<2x128xf32>
    %627 = arith.divf %625, %626 : vector<2x128xf32>
    %628 = math.tanh %622 : vector<2x128xf32>
    %c96_i32_305 = arith.constant 96 : i32
    %629 = tpu.dynamic_rotate %627 by %c96_i32_305 dim 1 : vector<2x128xf32>, i32 -> vector<2x128xf32>
    %c64_i32_306 = arith.constant 64 : i32
    %630 = tpu.dynamic_rotate %628 by %c64_i32_306 dim 1 : vector<2x128xf32>, i32 -> vector<2x128xf32>
    %c32_i32_307 = arith.constant 32 : i32
    %631 = tpu.dynamic_rotate %627 by %c32_i32_307 dim 1 : vector<2x128xf32>, i32 -> vector<2x128xf32>
    %632 = arith.mulf %629, %598 : vector<2x128xf32>
    %633 = arith.mulf %627, %630 : vector<2x128xf32>
    %634 = arith.addf %632, %633 : vector<2x128xf32>
    %635 = math.tanh %634 : vector<2x128xf32>
    %636 = arith.mulf %631, %635 : vector<2x128xf32>
    %c0_308 = arith.constant 0 : index
    %c0_309 = arith.constant 0 : index
    %637 = vector.load %arg32[%c0_308, %c0_309] : memref<16x128xf32, #tpu.memory_space<vmem>>, vector<2x128xf32>
    %638 = arith.truncf %618 : vector<2x128xf32> to vector<2x128xbf16>
    %cst_310 = arith.constant dense<0.000000e+00> : vector<2x128xf32>
    %639 = tpu.matmul %638, %366, %cst_310 {dimension_numbers = #tpu.dot_dimension_numbers<[1], [0], [0], [1], [0, 0, 1, 1], [], []>} : vector<2x128xbf16>, vector<128x128xbf16>, vector<2x128xf32> -> vector<2x128xf32>
    %640 = arith.addf %637, %639 : vector<2x128xf32>
    %641 = arith.negf %640 : vector<2x128xf32>
    %642 = math.exp %641 : vector<2x128xf32>
    %cst_311 = arith.constant 1.000000e+00 : f32
    %643 = vector.broadcast %cst_311 : f32 to vector<2x128xf32>
    %644 = arith.addf %643, %642 : vector<2x128xf32>
    %645 = arith.divf %643, %644 : vector<2x128xf32>
    %646 = math.tanh %640 : vector<2x128xf32>
    %c96_i32_312 = arith.constant 96 : i32
    %647 = tpu.dynamic_rotate %645 by %c96_i32_312 dim 1 : vector<2x128xf32>, i32 -> vector<2x128xf32>
    %c64_i32_313 = arith.constant 64 : i32
    %648 = tpu.dynamic_rotate %646 by %c64_i32_313 dim 1 : vector<2x128xf32>, i32 -> vector<2x128xf32>
    %c32_i32_314 = arith.constant 32 : i32
    %649 = tpu.dynamic_rotate %645 by %c32_i32_314 dim 1 : vector<2x128xf32>, i32 -> vector<2x128xf32>
    %650 = arith.mulf %647, %616 : vector<2x128xf32>
    %651 = arith.mulf %645, %648 : vector<2x128xf32>
    %652 = arith.addf %650, %651 : vector<2x128xf32>
    %653 = math.tanh %652 : vector<2x128xf32>
    %654 = arith.mulf %649, %653 : vector<2x128xf32>
    %655 = arith.truncf %22 : vector<2x32xf32> to vector<2x32xbf16>
    %c0_315 = arith.constant 0 : index
    %c0_316 = arith.constant 0 : index
    %656 = vector.load %arg22[%c0_315, %c0_316] : memref<32x128xbf16, #tpu.memory_space<vmem>>, vector<32x128xbf16>
    %cst_317 = arith.constant dense<0.000000e+00> : vector<2x128xf32>
    %657 = tpu.matmul %655, %656, %cst_317 {dimension_numbers = #tpu.dot_dimension_numbers<[1], [0], [0], [1], [0, 0, 1, 1], [], []>} : vector<2x32xbf16>, vector<32x128xbf16>, vector<2x128xf32> -> vector<2x128xf32>
    %658 = arith.truncf %636 : vector<2x128xf32> to vector<2x128xbf16>
    %c0_318 = arith.constant 0 : index
    %c0_319 = arith.constant 0 : index
    %659 = vector.load %arg23[%c0_318, %c0_319] : memref<128x128xbf16, #tpu.memory_space<vmem>>, vector<128x128xbf16>
    %cst_320 = arith.constant dense<0.000000e+00> : vector<2x128xf32>
    %660 = tpu.matmul %658, %659, %cst_320 {dimension_numbers = #tpu.dot_dimension_numbers<[1], [0], [0], [1], [0, 0, 1, 1], [], []>} : vector<2x128xbf16>, vector<128x128xbf16>, vector<2x128xf32> -> vector<2x128xf32>
    %661 = arith.addf %657, %660 : vector<2x128xf32>
    %662 = arith.truncf %654 : vector<2x128xf32> to vector<2x128xbf16>
    %c0_321 = arith.constant 0 : index
    %c0_322 = arith.constant 0 : index
    %663 = vector.load %arg24[%c0_321, %c0_322] : memref<128x128xbf16, #tpu.memory_space<vmem>>, vector<128x128xbf16>
    %cst_323 = arith.constant dense<0.000000e+00> : vector<2x128xf32>
    %664 = tpu.matmul %662, %663, %cst_323 {dimension_numbers = #tpu.dot_dimension_numbers<[1], [0], [0], [1], [0, 0, 1, 1], [], []>} : vector<2x128xbf16>, vector<128x128xbf16>, vector<2x128xf32> -> vector<2x128xf32>
    %665 = arith.addf %661, %664 : vector<2x128xf32>
    %c0_324 = arith.constant 0 : index
    %c0_325 = arith.constant 0 : index
    %666 = vector.load %arg25[%c0_324, %c0_325] : memref<1x128xf32, #tpu.memory_space<vmem>>, vector<1x128xf32>
    %667 = vector.broadcast %666 : vector<1x128xf32> to vector<2x128xf32>
    %668 = arith.addf %665, %667 : vector<2x128xf32>
    %c0_326 = arith.constant 0 : index
    %c0_327 = arith.constant 0 : index
    %669 = vector.load %arg26[%c0_326, %c0_327] : memref<2x128xf32, #tpu.memory_space<vmem>>, vector<2x128xf32>
    tpu.vector_store %arg26[%c0_326, %c0_327], %668 {strides = array<i32>} : memref<2x128xf32, #tpu.memory_space<vmem>>, vector<2x128xf32>,
    return
  }
}

</mosaic_0001>

<bundles_post_ra>
// kernel: gnn_forward.1
= control target key start
LH: loop header
LB: loop body
LE: loop exit
PB: predicated region body
PF: predicated region fallthrough
CT: control target
= control target key end

     0   :  { %vm102_vm0 = vcmask 1044480   ;;  %vm98_vm1 = vcmask 80896   ;;  %vm136_vm2 = vcmask 1045504   ;;  %vm132_vm3 = vcmask 97280   ;;  %s4362_s2 = inlined_call_operand.vmem [shape: bf16[10,32], index: 2, kind: input, shape index: {}]   ;;  %s4363_s1 = inlined_call_operand.vmem [shape: bf16[12,10], index: 1, kind: input, shape index: {}]   ;;  %s4364_s3 = inlined_call_operand.vmem [shape: f32[1,32], index: 3, kind: input, shape index: {}]   ;;  %s4365_s0 = inlined_call_operand.vmem [shape: bf16[12,12], index: 0, kind: input, shape index: {}]   ;;  %s4366_s4 = inlined_call_operand.vmem [shape: bf16[32,32], index: 4, kind: input, shape index: {}]   ;;  %s4367_s9 = inlined_call_operand.vmem [shape: bf16[128,128], index: 9, kind: input, shape index: {}]   ;;  %s4368_s5 = inlined_call_operand.vmem [shape: f32[1,32], index: 5, kind: input, shape index: {}]   ;;  %s4369_s8 = inlined_call_operand.vmem [shape: bf16[6,128], index: 8, kind: input, shape index: {}]   ;;  %s4370_s7 = inlined_call_operand.vmem [shape: bf16[16,6], index: 7, kind: input, shape index: {}]   ;;  %s4371_s11 = inlined_call_operand.vmem [shape: bf16[6,128], index: 11, kind: input, shape index: {}]   ;;  %s4372_s10 = inlined_call_operand.vmem [shape: f32[1,128], index: 10, kind: input, shape index: {}]   ;;  %s4373_s13 = inlined_call_operand.vmem [shape: f32[1,128], index: 13, kind: input, shape index: {}]   ;;  %s4374_s12 = inlined_call_operand.vmem [shape: bf16[128,128], index: 12, kind: input, shape index: {}]   ;;  %s4375_s6 = inlined_call_operand.vmem [shape: bf16[2,12], index: 6, kind: input, shape index: {}]   ;;  %s4376_s15 = inlined_call_operand.vmem [shape: bf16[128,128], index: 15, kind: input, shape index: {}]   ;;  %s4377_s14 = inlined_call_operand.vmem [shape: bf16[128,128], index: 14, kind: input, shape index: {}]   ;;  %s4378_s18 = inlined_call_operand.vmem [shape: bf16[128,128], index: 18, kind: input, shape index: {}]   ;;  %s4379_s19 = inlined_call_operand.vmem [shape: bf16[128,128], index: 19, kind: input, shape index: {}]   ;;  %s4380_s16 = inlined_call_operand.vmem [shape: bf16[128,128], index: 16, kind: input, shape index: {}]   ;;  %s4381_s20 = inlined_call_operand.vmem [shape: bf16[128,128], index: 20, kind: input, shape index: {}]   ;;  %s4382_s21 = inlined_call_operand.vmem [shape: f32[1,128], index: 21, kind: input, shape index: {}]   ;;  %s4383_s17 = inlined_call_operand.vmem [shape: f32[1,128], index: 17, kind: input, shape index: {}]   ;;  %s4384_s22 = inlined_call_operand.vmem [shape: bf16[32,128], index: 22, kind: input, shape index: {}]   ;;  %s4385_s23 = inlined_call_operand.vmem [shape: bf16[128,128], index: 23, kind: input, shape index: {}]   ;;  %s4386_s24 = inlined_call_operand.vmem [shape: bf16[128,128], index: 24, kind: input, shape index: {}]   ;;  %s4387_s25 = inlined_call_operand.vmem [shape: f32[1,128], index: 25, kind: input, shape index: {}]   ;;  %s4388_s26 = inlined_call_operand.vmem [shape: f32[2,128], index: 26, kind: output, shape index: {}]  }
   0x1   :  { %4394 = sst [smem:[#allocation8_spill]] %s4362_s2  ;;  %vm173_vm4 = vcmask 261120   ;;  %vm250_vm5 = vcmask 1042432   ;;  %vm246_vm6 = vcmask 48128   ;;  %v3347_v35 = vmov 0   ;;  %v3622_v48 = vld [vmem:[%s4374_s12 + $0x38] sm:$0xff] }
   0x2   :  { %4395 = sst [smem:[#allocation9_spill]] %s4363_s1  ;;  %v3628_v50 = vld [vmem:[%s4374_s12 + $0x30] sm:$0xff]  ;;  %v3634_v52 = vld [vmem:[%s4374_s12 + $0x28] sm:$0xff]  ;;  %v3640_v55 = vld [vmem:[%s4374_s12 + $0x20] sm:$0xff]  ;;  %s3349_s1 = smov 64  }
   0x3   :  { %4396 = sst [smem:[#allocation10_spill]] %s4364_s3  ;;  %v3646_v56 = vld [vmem:[%s4374_s12 + $0x18] sm:$0xff]  ;;  %v3652_v59 = vld [vmem:[%s4374_s12 + $0x10] sm:$0xff]  ;;  %v3661_v63 = vld [vmem:[%s4374_s12 + $0x8] sm:$0xff] }
   0x4   :  { %4397 = sst [smem:[#allocation11_spill]] %s4365_s0 }
   0x5   :  { %4398 = sst [smem:[#allocation12_spill]] %s4366_s4 }
   0x6   :  { %4399 = sst [smem:[#allocation13_spill]] %s4367_s9 }
   0x7   :  { %4400 = sst [smem:[#allocation14_spill]] %s4368_s5 }
   0x8   :  { %4401 = sst [smem:[#allocation15_spill]] %s4369_s8 }
   0x9   :  { %4402 = sst [smem:[#allocation16_spill]] %s4370_s7 }
   0xa   :  { %4403 = sst [smem:[#allocation17_spill]] %s4371_s11 }
   0xb   :  { %4404 = sst [smem:[#allocation18_spill]] %s4372_s10 }
   0xc   :  { %s4405_s8 = sld [smem:[#allocation8_spill]] }
   0xd   :  { %s4406_s2 = sld [smem:[#allocation9_spill]] }
   0xe   :  { %s4407_s10 = sld [smem:[#allocation11_spill]] }
   0xf   :  { %s4410_s3 = sld [smem:[#allocation10_spill]] }
  0x10   :  { %s4411_s30 = sld [smem:[#allocation15_spill]] }
  0x11   :  { %s4412_s0 = sld [smem:[#allocation16_spill]] }
  0x12   :  { %v2606_v0 = vld [vmem:[%s4405_s8] sm:$0xf]  ;;  %v2993_v1 = vld [vmem:[%s4405_s8] sm:$0x10]  ;;  %s4408_s8 = sld [smem:[#allocation12_spill]] }
  0x13   :  { %v2602_v2 = vld [vmem:[%s4406_s2] sm:$0xf]  ;;  %v2607_v3 = vor.u32 %v2993_v1, %v2606_v0  ;;  %v2992_v4 = vld [vmem:[%s4406_s2] sm:$0x30]  ;;  %s4409_s2 = sld [smem:[#allocation13_spill]] }
  0x14   :  { %v2603_v6 = vor.u32 %v2992_v4, %v2602_v2  ;;  %v2611_v9 = vld [vmem:[%s4407_s10] sm:$0xf]  ;;  %v2994_v10 = vld [vmem:[%s4407_s10] sm:$0x30]  ;;  %s4413_s28 = sld [smem:[#allocation17_spill]]  ;;  %s3348_s10 = smov 96  }
  0x15   :  { %v104_v5 = vsel %vm102_vm0, %v2607_v3, 0  ;;  %v3505_v13 = vor.u32 %v2994_v10, %v2611_v9  ;;  %v3084_v18 = vld [vmem:[%s4410_s3] ss:$0 sm:$0xff]  ;;  %s4414_s29 = sld [smem:[#allocation18_spill]] }
  0x16   :  { %113 = vmatpush.bf16.msra.mxu0 %v104_v5  ;;  %v236_v30 = vld [vmem:[%s4411_s30] sm:$0x7] }
  0x17   :  { %v252_v31 = vsel %vm250_vm5, %v236_v30, 0  ;;  %v2997_v33 = vld [vmem:[%s4412_s0] sm:$0xff] }
  0x18   :  { %v2996_v14 = vld [vmem:[%s4408_s8 + $0x8] sm:$0xff]  ;;  %v2995_v15 = vld [vmem:[%s4408_s8] sm:$0xff]  ;;  %261 = vmatpush.bf16.msra.mxu1 %v252_v31 }
  0x19   :  { %2608 = vmatmul.msk.bf16.vlgmr.msra.gmra.mxu0 %vm98_vm1, %v2603_v6  ;;  %183 = vmatpush.bf16.msra.mxu2 %v2996_v14  ;;  %v3518_v16 = vld [vmem:[%s4409_s2 + $0x38] sm:$0xff]  ;;  %v3528_v25 = vld [vmem:[%s4409_s2 + $0x30] sm:$0xff]  ;;  %v3534_v26 = vld [vmem:[%s4409_s2 + $0x28] sm:$0xff] }
  0x1a   :  { %v3540_v27 = vld [vmem:[%s4409_s2 + $0x20] sm:$0xff]  ;;  %v3546_v28 = vld [vmem:[%s4409_s2 + $0x18] sm:$0xff]  ;;  %v3552_v29 = vld [vmem:[%s4409_s2 + $0x10] sm:$0xff] }
  0x1b   :  { %v3562_v32 = vld [vmem:[%s4409_s2 + $0x8] sm:$0xff]  ;;  %2629 = vmatmul.msk.bf16.vlgmr.msra.gmra.mxu1 %vm246_vm6, %v2997_v33  ;;  %v3573_v34 = vld [vmem:[%s4409_s2] sm:$0xff] }
  0x1c   :  { %518 = vmatpush.bf16.msrb.mxu1 %v3518_v16  ;;  %v270_v37 = vld [vmem:[%s4413_s28] sm:$0x7] }
  0x1d   :  { %184 = vmatpush.bf16.msra.mxu2 %v2995_v15  ;;  %v276_v40 = vsel %vm250_vm5, %v270_v37, 0  ;;  %v3086_v42 = vld [vmem:[%s4414_s29] ss:$0 sm:$0xff]  ;;  %s4415_s29 = sld [smem:[#allocation14_spill]] }
  0x1e   :  { %v3667_v9 = vld [vmem:[%s4374_s12] sm:$0xff] }
  0x1f   :  { %v3087_v15 = vld [vmem:[%s4373_s13] ss:$0 sm:$0xff] }
  0x20   :  { %519 = vmatpush.bf16.msrb.mxu1 %v3528_v25 }
  0x21   :  { %375 = vmatpush.bf16.msrb.mxu2 %v3518_v16 }
  0x23   :  { %v3085_v62 = vld [vmem:[%s4415_s29] ss:$0 sm:$0xff] }
  0x24   :  { %520 = vmatpush.bf16.msrb.mxu1 %v3534_v26 }
  0x25   :  { %376 = vmatpush.bf16.msrb.mxu2 %v3528_v25 }
  0x28   :  { %521 = vmatpush.bf16.msrb.mxu1 %v3540_v27 }
  0x29   :  { %377 = vmatpush.bf16.msrb.mxu2 %v3534_v26 }
  0x2c   :  { %522 = vmatpush.bf16.msrb.mxu1 %v3546_v28 }
  0x2d   :  { %378 = vmatpush.bf16.msrb.mxu2 %v3540_v27 }
  0x30   :  { %523 = vmatpush.bf16.msrb.mxu1 %v3552_v29 }
  0x31   :  { %379 = vmatpush.bf16.msrb.mxu2 %v3546_v28 }
  0x34   :  { %524 = vmatpush.bf16.msrb.mxu1 %v3562_v32 }
  0x35   :  { %380 = vmatpush.bf16.msrb.mxu2 %v3552_v29 }
  0x38   :  { %525 = vmatpush.bf16.msrb.mxu1 %v3573_v34 }
  0x39   :  { %381 = vmatpush.bf16.msrb.mxu2 %v3562_v32 }
  0x3c   :  { %710 = vmatpush.bf16.msra.mxu1 %v3518_v16 }
  0x3d   :  { %382 = vmatpush.bf16.msrb.mxu2 %v3573_v34 }
  0x40   :  { %711 = vmatpush.bf16.msra.mxu1 %v3528_v25 }
  0x44   :  { %712 = vmatpush.bf16.msra.mxu1 %v3534_v26 }
  0x48   :  { %713 = vmatpush.bf16.msra.mxu1 %v3540_v27 }
  0x4c   :  { %714 = vmatpush.bf16.msra.mxu1 %v3546_v28 }
  0x50   :  { %715 = vmatpush.bf16.msra.mxu1 %v3552_v29 }
  0x54   :  { %716 = vmatpush.bf16.msra.mxu1 %v3562_v32 }
  0x58   :  { %717 = vmatpush.bf16.msra.mxu1 %v3573_v34 }
  0x96   :  { %v115_v7 = vpop.f32.mrf.mxu0 }
  0x98   :  { %v263_v43 = vpop.f32.mrf.mxu1 }
  0x99   :  { %v264_v44 = vadd.f32 %v3086_v42, %v263_v43 }
  0x9b   :  { %268 = vst [vmem:[#allocation2] sm:$0xff] %v264_v44 }
  0x9e   :  { %v117_v8 = vpop.f32.mrf.mxu0 }
  0x9f   :  { %v122_v11 = vpack.c.bf16 %v117_v8, %v115_v7 }
  0xa0   :  { %v265_v14 = vpop.f32.mrf.mxu1 }
  0xa1   :  { %v138_v12 = vsel %vm136_vm2, %v122_v11, 0 }
  0xa2   :  { %147 = vmatpush.bf16.msra.mxu3 %v138_v12  ;;  %v326_v45 = vld [vmem:[#allocation2] sm:$0x3] }
  0xa5   :  { %2613 = vmatmul.msk.bf16.vlgmr.msra.gmra.mxu3 %vm132_vm3, %v3505_v13 }
 0x128   :  { %v149_v17 = vpop.f32.mrf.mxu3 }
 0x129   :  { %v150_v19 = vadd.f32 %v3084_v18, %v149_v17  ;;  %v266_v17 = vadd.f32 %v3086_v42, %v265_v14 }
 0x12b   :  { %v154_v22 = vmax.f32 %v150_v19, 0.0  ;;  %269 = vst [vmem:[#allocation2 + $0x8] sm:$0xff] %v266_v17 }
 0x130   :  { %v151_v20 = vpop.f32.mrf.mxu3 }
 0x131   :  { %v152_v21 = vadd.f32 %v3084_v18, %v151_v20 }
 0x133   :  { %v155_v23 = vmax.f32 %v152_v21, 0.0 }
 0x135   :  { %v156_v24 = vpack.c.bf16 %v155_v23, %v154_v22 }
 0x137   :  { %2622 = vmatmul.msk.bf16.vlgmr.msra.gmra.mxu2 %vm173_vm4, %v156_v24 }
 0x138   :  { %614 = vmatpush.bf16.msra.mxu2 %v3518_v16 }
 0x13c   :  { %615 = vmatpush.bf16.msra.mxu2 %v3528_v25 }
 0x140   :  { %616 = vmatpush.bf16.msra.mxu2 %v3534_v26 }
 0x144   :  { %617 = vmatpush.bf16.msra.mxu2 %v3540_v27 }
 0x147   :  { %383 = vmatmul.bf16.vlgmr.msrb.gmra.mxu2 %v3347_v35 }
 0x148   :  { %618 = vmatpush.bf16.msra.mxu2 %v3546_v28 }
 0x14c   :  { %619 = vmatpush.bf16.msra.mxu2 %v3552_v29 }
 0x150   :  { %620 = vmatpush.bf16.msra.mxu2 %v3562_v32 }
 0x154   :  { %621 = vmatpush.bf16.msra.mxu2 %v3573_v34 }
 0x158   :  { %806 = vmatpush.bf16.msrb.mxu2 %v3518_v16 }
 0x15c   :  { %807 = vmatpush.bf16.msrb.mxu2 %v3528_v25 }
 0x160   :  { %808 = vmatpush.bf16.msrb.mxu2 %v3534_v26 }
 0x164   :  { %809 = vmatpush.bf16.msrb.mxu2 %v3540_v27 }
 0x168   :  { %810 = vmatpush.bf16.msrb.mxu2 %v3546_v28 }
 0x16c   :  { %811 = vmatpush.bf16.msrb.mxu2 %v3552_v29 }
 0x170   :  { %812 = vmatpush.bf16.msrb.mxu2 %v3562_v32 }
 0x174   :  { %813 = vmatpush.bf16.msrb.mxu2 %v3573_v34 }
 0x1ba   :  { %v186_v36 = vpop.f32.mrf.mxu2 }
 0x1c2   :  { %v188_v38 = vpop.f32.mrf.mxu2 }
 0x1c3   :  { %v191_v39 = vpack.c.bf16 %v188_v38, %v186_v36 }
 0x1c5   :  { %v197_v41 = vsel %vm136_vm2, %v191_v39, 0 }
 0x1c6   :  { %206 = vmatpush.bf16.msrb.mxu3 %v197_v41 }
 0x1c9   :  { %2623 = vmatmul.msk.bf16.vlgmr.msrb.gmra.mxu3 %vm132_vm3, %v3505_v13  ;;  %v213_v13 = vld [vmem:[%s4375_s6] sm:$0x1]  ;;  %s3350_s6 = smov 32  }
 0x1ca   :  { %285 = vmatpush.bf16.msra.mxu3 %v276_v40  ;;  %v384_v46 = vpop.f32.mrf.mxu2 }
 0x1cb   :  { %v388_v47 = vadd.f32 %v384_v46, %v326_v45 }
 0x1cd   :  { %v2663_v49 = vmul.f32 -1.442695, %v388_v47 }
 0x1ce   :  { %565 = vmatpush.bf16.msrb.mxu3 %v3622_v48 }
 0x1cf   :  { %3091 = vpow2.f32 %v2663_v49 }
 0x1d2   :  { %566 = vmatpush.bf16.msrb.mxu3 %v3628_v50  ;;  %v386_v51 = vpop.f32.mrf.mxu2 }
 0x1d5   :  { %v3092_v53 = vpop.eup %3091 }
 0x1d6   :  { %567 = vmatpush.bf16.msrb.mxu3 %v3634_v52  ;;  %v392_v54 = vadd.f32 1.0, %v3092_v53 }
 0x1d8   :  { %3093 = vrcp.f32 %v392_v54  ;;  %v404_v1 = vand.u32 2147483648, %v392_v54  ;;  %vm398_vm7 = vweird.f32 %v392_v54  ;;  %v402_v3 = vand.u32 2147483647, %v392_v54 }
 0x1d9   :  { %2630 = vmatmul.msk.bf16.vlgmr.msra.gmra.mxu3 %vm246_vm6, %v2997_v33  ;;  %3095 = vtanh.f32 %v388_v47 }
 0x1da   :  { %568 = vmatpush.bf16.msrb.mxu3 %v3640_v55  ;;  %v405_v5 = vor.u32 1.1754944e-38, %v404_v1  ;;  %vm403_vm10 = vcmp.eq.f32.partialorder %v402_v3, 8.507059e+37 }
 0x1de   :  { %569 = vmatpush.bf16.msrb.mxu3 %v3646_v56  ;;  %v3094_v57 = vpop.eup %3093 }
 0x1df   :  { %v394_v60 = vmul.f32 %v3094_v57, %v392_v54  ;;  %vm399_vm8 = vweird.f32 %v3094_v57  ;;  %v3096_v18 = vpop.eup %3095 }
 0x1e0   :  { %vm400_vm9 = vmor %vm398_vm7, %vm399_vm8 }
 0x1e1   :  { %v395_v61 = vsub.f32 1.0, %v394_v60 }
 0x1e2   :  { %570 = vmatpush.bf16.msrb.mxu3 %v3652_v59 }
 0x1e3   :  { %v396_v0 = vmul.f32 %v3094_v57, %v395_v61 }
 0x1e5   :  { %v397_v2 = vadd.f32 %v3094_v57, %v396_v0 }
 0x1e6   :  { %571 = vmatpush.bf16.msrb.mxu3 %v3661_v63 }
 0x1e7   :  { %v401_v8 = vsel %vm400_vm9, %v3094_v57, %v397_v2 }
 0x1e8   :  { %v3669_v10 = vsel %vm403_vm10, %v405_v5, %v401_v8 }
 0x1e9   :  { %409 = vrot.lane.b32.xlu1 %v3669_v10, %s3348_s10 }
 0x1ea   :  { %572 = vmatpush.bf16.msrb.mxu3 %v3667_v9 }
 0x1ee   :  { %757 = vmatpush.bf16.msra.mxu3 %v3622_v48 }
 0x1f1   :  { %411 = vrot.lane.b32.xlu1 %v3096_v18, %s3349_s1 }
 0x1f2   :  { %758 = vmatpush.bf16.msra.mxu3 %v3628_v50 }
 0x1f6   :  { %759 = vmatpush.bf16.msra.mxu3 %v3634_v52 }
 0x1fa   :  { %760 = vmatpush.bf16.msra.mxu3 %v3640_v55 }
 0x1fe   :  { %761 = vmatpush.bf16.msra.mxu3 %v3646_v56 }
 0x202   :  { %762 = vmatpush.bf16.msra.mxu3 %v3652_v59 }
 0x206   :  { %763 = vmatpush.bf16.msra.mxu3 %v3661_v63 }
 0x20a   :  { %764 = vmatpush.bf16.msra.mxu3 %v3667_v9 }
 0x24c   :  { %v208_v58 = vpop.f32.mrf.mxu3 }
 0x24d   :  { %v209_v6 = vadd.f32 %v3085_v62, %v208_v58 }
 0x254   :  { %v210_v4 = vpop.f32.mrf.mxu3 }
 0x255   :  { %v211_v7 = vadd.f32 %v3085_v62, %v210_v4 }
 0x257   :  { %v214_v11 = vpack.c.bf16 %v211_v7, %v209_v6 }
 0x259   :  { %v219_v12 = vsel %vm136_vm2, %v214_v11, 0 }
 0x25a   :  { %228 = vmatpush.bf16.msrb.mxu0 %v219_v12 }
 0x25b   :  { %v410_v54 = vpop.permute.xlu1 %409 }
 0x25c   :  { %v287_v19 = vpop.f32.mrf.mxu3  ;;  %v415_v58 = vmul.f32 0.0, %v410_v54 }
 0x25d   :  { %2624 = vmatmul.msk.bf16.vlgmr.msrb.gmra.mxu0 %vm132_vm3, %v213_v13  ;;  %v288_v20 = vadd.f32 %v3087_v15, %v287_v19  ;;  %v516_v13 = vld [vmem:[#allocation2 + $0x2] sm:$0x3] }
 0x25e   :  { %469 = vmatpush.bf16.msra.mxu0 %v3622_v48 }
 0x25f   :  { %292 = vst [vmem:[#allocation3] sm:$0xff] %v288_v20 }
 0x262   :  { %470 = vmatpush.bf16.msra.mxu0 %v3628_v50 }
 0x263   :  { %v412_v57 = vpop.permute.xlu1 %411 }
 0x264   :  { %v289_v21 = vpop.f32.mrf.mxu3  ;;  %v416_v60 = vmul.f32 %v412_v57, %v3669_v10 }
 0x265   :  { %v290_v22 = vadd.f32 %v3087_v15, %v289_v21 }
 0x266   :  { %471 = vmatpush.bf16.msra.mxu0 %v3634_v52  ;;  %v3724_v61 = vadd.f32 %v416_v60, %v415_v58 }
 0x267   :  { %293 = vst [vmem:[#allocation3 + $0x8] sm:$0xff] %v290_v22 }
 0x26a   :  { %472 = vmatpush.bf16.msra.mxu0 %v3640_v55 }
 0x26e   :  { %473 = vmatpush.bf16.msra.mxu0 %v3646_v56  ;;  %v420_v30 = vld [vmem:[#allocation3 + $0xe] sm:$0x3] }
 0x272   :  { %474 = vmatpush.bf16.msra.mxu0 %v3652_v59 }
 0x276   :  { %475 = vmatpush.bf16.msra.mxu0 %v3661_v63 }
 0x27a   :  { %476 = vmatpush.bf16.msra.mxu0 %v3667_v9 }
 0x27d   :  { %477 = vmatmul.bf16.vlgmr.msra.gmra.mxu0 %v3347_v35 }
 0x27e   :  { %661 = vmatpush.bf16.msrb.mxu0 %v3622_v48 }
 0x282   :  { %662 = vmatpush.bf16.msrb.mxu0 %v3628_v50 }
 0x286   :  { %663 = vmatpush.bf16.msrb.mxu0 %v3634_v52 }
 0x28a   :  { %664 = vmatpush.bf16.msrb.mxu0 %v3640_v55 }
 0x28e   :  { %665 = vmatpush.bf16.msrb.mxu0 %v3646_v56 }
 0x292   :  { %666 = vmatpush.bf16.msrb.mxu0 %v3652_v59 }
 0x296   :  { %667 = vmatpush.bf16.msrb.mxu0 %v3661_v63 }
 0x29a   :  { %668 = vmatpush.bf16.msrb.mxu0 %v3667_v9 }
 0x29e   :  { %853 = vmatpush.bf16.msra.mxu0 %v3622_v48 }
 0x2a2   :  { %854 = vmatpush.bf16.msra.mxu0 %v3628_v50 }
 0x2a6   :  { %855 = vmatpush.bf16.msra.mxu0 %v3634_v52 }
 0x2aa   :  { %856 = vmatpush.bf16.msra.mxu0 %v3640_v55 }
 0x2ae   :  { %857 = vmatpush.bf16.msra.mxu0 %v3646_v56 }
 0x2b2   :  { %858 = vmatpush.bf16.msra.mxu0 %v3652_v59 }
 0x2b6   :  { %859 = vmatpush.bf16.msra.mxu0 %v3661_v63 }
 0x2ba   :  { %860 = vmatpush.bf16.msra.mxu0 %v3667_v9 }
 0x2da   :  { %v3716_v23 = vpop.f32.mrf.mxu0 }
 0x2e2   :  { %v232_v24 = vpop.f32.mrf.mxu0 }
 0x2fa   :  { %v478_v31 = vpop.f32.mrf.mxu0 }
 0x2fb   :  { %v482_v33 = vadd.f32 %v478_v31, %v420_v30 }
 0x2fd   :  { %v2696_v36 = vmul.f32 -1.442695, %v482_v33 }
 0x2ff   :  { %3097 = vpow2.f32 %v2696_v36 }
 0x302   :  { %v480_v37 = vpop.f32.mrf.mxu0 }
 0x305   :  { %v3098_v38 = vpop.eup %3097 }
 0x306   :  { %v486_v39 = vadd.f32 1.0, %v3098_v38 }
 0x308   :  { %3099 = vrcp.f32 %v486_v39  ;;  %v498_v43 = vand.u32 2147483648, %v486_v39  ;;  %v496_v45 = vand.u32 2147483647, %v486_v39  ;;  %vm492_vm12 = vweird.f32 %v486_v39 }
 0x309   :  { %3101 = vtanh.f32 %v482_v33 }
 0x30a   :  { %v499_v47 = vor.u32 1.1754944e-38, %v498_v43  ;;  %vm497_vm14 = vcmp.eq.f32.partialorder %v496_v45, 8.507059e+37  ;;  %3103 = vtanh.f32 %v3724_v61 }
 0x30e   :  { %v3100_v40 = vpop.eup %3099 }
 0x30f   :  { %v488_v41 = vmul.f32 %v3100_v40, %v486_v39  ;;  %vm493_vm11 = vweird.f32 %v3100_v40  ;;  %v3102_v53 = vpop.eup %3101 }
 0x310   :  { %vm494_vm13 = vmor %vm492_vm12, %vm493_vm11  ;;  %v3104_v0 = vpop.eup %3103 }
 0x311   :  { %v489_v42 = vsub.f32 1.0, %v488_v41  ;;  %v563_v41 = vld [vmem:[#allocation3 + $0xc] sm:$0x3] }
 0x313   :  { %v490_v44 = vmul.f32 %v3100_v40, %v489_v42 }
 0x315   :  { %v491_v46 = vadd.f32 %v3100_v40, %v490_v44 }
 0x317   :  { %v495_v49 = vsel %vm494_vm13, %v3100_v40, %v491_v46 }
 0x318   :  { %v500_v51 = vsel %vm497_vm14, %v499_v47, %v495_v49 }
 0x319   :  { %507 = vrot.lane.b32.xlu2 %v500_v51, %s3350_s6  ;;  %503 = vrot.lane.b32.xlu0 %v500_v51, %s3348_s10 }
 0x321   :  { %413 = vrot.lane.b32.xlu2 %v3669_v10, %s3350_s6  ;;  %505 = vrot.lane.b32.xlu0 %v3102_v53, %s3349_s1 }
 0x373   :  { %v508_v62 = vpop.permute.xlu2 %507 }
 0x37b   :  { %v414_v1 = vpop.permute.xlu2 %413 }
 0x37c   :  { %v419_v2 = vmul.f32 %v3104_v0, %v414_v1 }
 0x37e   :  { %514 = vst [vmem:[#allocation4] sm:$0x3] %v419_v2  ;;  %v517_v3 = vpack.c.bf16 %v419_v2, %v419_v2 }
 0x380   :  { %526 = vmatmul.bf16.vlgmr.msrb.gmra.mxu1 %v517_v3 }
 0x381   :  { %902 = vmatpush.bf16.msrb.mxu1 %v3518_v16 }
 0x385   :  { %903 = vmatpush.bf16.msrb.mxu1 %v3528_v25 }
 0x389   :  { %904 = vmatpush.bf16.msrb.mxu1 %v3534_v26 }
 0x38b   :  { %v504_v4 = vpop.permute.xlu0 %503 }
 0x38c   :  { %v509_v6 = vmul.f32 0.0, %v504_v4 }
 0x38d   :  { %905 = vmatpush.bf16.msrb.mxu1 %v3540_v27 }
 0x391   :  { %906 = vmatpush.bf16.msrb.mxu1 %v3546_v28 }
 0x393   :  { %v506_v5 = vpop.permute.xlu0 %505 }
 0x394   :  { %v510_v7 = vmul.f32 %v506_v5, %v500_v51 }
 0x395   :  { %907 = vmatpush.bf16.msrb.mxu1 %v3552_v29 }
 0x396   :  { %v3733_v8 = vadd.f32 %v510_v7, %v509_v6 }
 0x398   :  { %3105 = vtanh.f32 %v3733_v8 }
 0x399   :  { %908 = vmatpush.bf16.msrb.mxu1 %v3562_v32 }
 0x39d   :  { %909 = vmatpush.bf16.msrb.mxu1 %v3573_v34 }
 0x39e   :  { %v3106_v10 = vpop.eup %3105 }
 0x39f   :  { %v513_v11 = vmul.f32 %v3106_v10, %v508_v62 }
 0x3a1   :  { %515 = vst [vmem:[#allocation5 + $0xe] sm:$0x3] %v513_v11  ;;  %v564_v12 = vpack.c.bf16 %v513_v11, %v513_v11 }
 0x3a3   :  { %573 = vmatmul.bf16.vlgmr.msrb.gmra.mxu3 %v564_v12 }
 0x3a4   :  { %949 = vmatpush.bf16.msrb.mxu3 %v3622_v48 }
 0x3a8   :  { %950 = vmatpush.bf16.msrb.mxu3 %v3628_v50 }
 0x3ac   :  { %951 = vmatpush.bf16.msrb.mxu3 %v3634_v52 }
 0x3b0   :  { %952 = vmatpush.bf16.msrb.mxu3 %v3640_v55 }
 0x3b4   :  { %953 = vmatpush.bf16.msrb.mxu3 %v3646_v56 }
 0x3b8   :  { %954 = vmatpush.bf16.msrb.mxu3 %v3652_v59 }
 0x3bc   :  { %955 = vmatpush.bf16.msrb.mxu3 %v3661_v63 }
 0x3c0   :  { %956 = vmatpush.bf16.msrb.mxu3 %v3667_v9 }
 0x3fd   :  { %v527_v14 = vpop.f32.mrf.mxu1 }
 0x3fe   :  { %v531_v15 = vadd.f32 %v527_v14, %v516_v13 }
 0x400   :  { %v2697_v17 = vmul.f32 -1.442695, %v531_v15  ;;  %3107 = vtanh.f32 %v531_v15 }
 0x402   :  { %3109 = vpow2.f32 %v2697_v17 }
 0x405   :  { %v529_v18 = vpop.f32.mrf.mxu1 }
 0x406   :  { %v3108_v19 = vpop.eup %3107 }
 0x407   :  { %554 = vrot.lane.b32.xlu1 %v3108_v19, %s3349_s1 }
 0x408   :  { %v3110_v20 = vpop.eup %3109 }
 0x409   :  { %v535_v21 = vadd.f32 1.0, %v3110_v20 }
 0x40b   :  { %3111 = vrcp.f32 %v535_v21  ;;  %v547_v31 = vand.u32 2147483648, %v535_v21  ;;  %v545_v36 = vand.u32 2147483647, %v535_v21  ;;  %vm541_vm0 = vweird.f32 %v535_v21 }
 0x40d   :  { %v548_v38 = vor.u32 1.1754944e-38, %v547_v31  ;;  %vm546_vm2 = vcmp.eq.f32.partialorder %v545_v36, 8.507059e+37 }
 0x411   :  { %v3112_v22 = vpop.eup %3111 }
 0x412   :  { %v537_v24 = vmul.f32 %v3112_v22, %v535_v21  ;;  %vm542_vm15 = vweird.f32 %v3112_v22 }
 0x413   :  { %vm543_vm1 = vmor %vm541_vm0, %vm542_vm15 }
 0x414   :  { %v538_v30 = vsub.f32 1.0, %v537_v24 }
 0x416   :  { %v539_v33 = vmul.f32 %v3112_v22, %v538_v30 }
 0x418   :  { %v540_v37 = vadd.f32 %v3112_v22, %v539_v33 }
 0x41a   :  { %v544_v39 = vsel %vm543_vm1, %v3112_v22, %v540_v37 }
 0x41b   :  { %v549_v40 = vsel %vm546_vm2, %v548_v38, %v544_v39  ;;  %v659_v38 = vld [vmem:[#allocation3 + $0xa] sm:$0x3] }
 0x41c   :  { %556 = vrot.lane.b32.xlu1 %v549_v40, %s3350_s6  ;;  %552 = vrot.lane.b32.xlu0 %v549_v40, %s3348_s10 }
 0x426   :  { %v574_v42 = vpop.f32.mrf.mxu3 }
 0x427   :  { %v578_v43 = vadd.f32 %v574_v42, %v563_v41 }
 0x429   :  { %v2698_v44 = vmul.f32 -1.442695, %v578_v43  ;;  %3113 = vtanh.f32 %v578_v43 }
 0x42b   :  { %3115 = vpow2.f32 %v2698_v44 }
 0x42e   :  { %v576_v45 = vpop.f32.mrf.mxu3 }
 0x42f   :  { %v3114_v46 = vpop.eup %3113 }
 0x430   :  { %601 = vrot.lane.b32.xlu0 %v3114_v46, %s3349_s1 }
 0x431   :  { %v3116_v47 = vpop.eup %3115 }
 0x432   :  { %v582_v49 = vadd.f32 1.0, %v3116_v47 }
 0x434   :  { %3117 = vrcp.f32 %v582_v49  ;;  %v594_v57 = vand.u32 2147483648, %v582_v49  ;;  %v592_v60 = vand.u32 2147483647, %v582_v49  ;;  %vm588_vm5 = vweird.f32 %v582_v49 }
 0x436   :  { %v595_v0 = vor.u32 1.1754944e-38, %v594_v57  ;;  %vm593_vm7 = vcmp.eq.f32.partialorder %v592_v60, 8.507059e+37 }
 0x43a   :  { %v3118_v51 = vpop.eup %3117 }
 0x43b   :  { %v584_v53 = vmul.f32 %v3118_v51, %v582_v49  ;;  %vm589_vm3 = vweird.f32 %v3118_v51 }
 0x43c   :  { %vm590_vm6 = vmor %vm588_vm5, %vm589_vm3 }
 0x43d   :  { %v585_v54 = vsub.f32 1.0, %v584_v53 }
 0x43f   :  { %v586_v58 = vmul.f32 %v3118_v51, %v585_v54 }
 0x441   :  { %v587_v62 = vadd.f32 %v3118_v51, %v586_v58 }
 0x443   :  { %v591_v1 = vsel %vm590_vm6, %v3118_v51, %v587_v62 }
 0x444   :  { %v596_v2 = vsel %vm593_vm7, %v595_v0, %v591_v1 }
 0x445   :  { %599 = vrot.lane.b32.xlu2 %v596_v2, %s3348_s10 }
 0x44d   :  { %603 = vrot.lane.b32.xlu2 %v596_v2, %s3350_s6 }
 0x479   :  { %v555_v3 = vpop.permute.xlu1 %554 }
 0x47a   :  { %v559_v5 = vmul.f32 %v555_v3, %v549_v40 }
 0x48e   :  { %v553_v4 = vpop.permute.xlu0 %552  ;;  %v557_v11 = vpop.permute.xlu1 %556 }
 0x48f   :  { %v558_v6 = vmul.f32 %v553_v4, %v3724_v61 }
 0x491   :  { %v3753_v7 = vadd.f32 %v559_v5, %v558_v6 }
 0x493   :  { %3119 = vtanh.f32 %v3753_v7 }
 0x499   :  { %v3120_v10 = vpop.eup %3119 }
 0x49a   :  { %v562_v12 = vmul.f32 %v3120_v10, %v557_v11 }
 0x49c   :  { %610 = vst [vmem:[#allocation4 + $0x2] sm:$0x3] %v562_v12  ;;  %v613_v13 = vpack.c.bf16 %v562_v12, %v562_v12 }
 0x49e   :  { %622 = vmatmul.bf16.vlgmr.msra.gmra.mxu2 %v613_v13 }
 0x49f   :  { %998 = vmatpush.bf16.msra.mxu2 %v3518_v16  ;;  %v600_v14 = vpop.permute.xlu2 %599 }
 0x4a0   :  { %v605_v17 = vmul.f32 %v600_v14, %v3733_v8  ;;  %v612_v8 = vld [vmem:[#allocation2 + $0x4] sm:$0x3] }
 0x4a2   :  { %v602_v15 = vpop.permute.xlu0 %601 }
 0x4a3   :  { %v606_v18 = vmul.f32 %v602_v15, %v596_v2  ;;  %999 = vmatpush.bf16.msra.mxu2 %v3528_v25 }
 0x4a5   :  { %v3759_v61 = vadd.f32 %v606_v18, %v605_v17 }
 0x4a7   :  { %3121 = vtanh.f32 %v3759_v61  ;;  %1000 = vmatpush.bf16.msra.mxu2 %v3534_v26  ;;  %v604_v20 = vpop.permute.xlu2 %603 }
 0x4ab   :  { %1001 = vmatpush.bf16.msra.mxu2 %v3540_v27 }
 0x4ad   :  { %v3122_v19 = vpop.eup %3121 }
 0x4ae   :  { %v609_v21 = vmul.f32 %v3122_v19, %v604_v20 }
 0x4af   :  { %1002 = vmatpush.bf16.msra.mxu2 %v3546_v28 }
 0x4b0   :  { %611 = vst [vmem:[#allocation5 + $0xc] sm:$0x3] %v609_v21  ;;  %v660_v22 = vpack.c.bf16 %v609_v21, %v609_v21 }
 0x4b2   :  { %669 = vmatmul.bf16.vlgmr.msrb.gmra.mxu0 %v660_v22 }
 0x4b3   :  { %1045 = vmatpush.bf16.msrb.mxu0 %v3622_v48  ;;  %1003 = vmatpush.bf16.msra.mxu2 %v3552_v29 }
 0x4b7   :  { %1046 = vmatpush.bf16.msrb.mxu0 %v3628_v50  ;;  %1004 = vmatpush.bf16.msra.mxu2 %v3562_v32 }
 0x4bb   :  { %1047 = vmatpush.bf16.msrb.mxu0 %v3634_v52  ;;  %1005 = vmatpush.bf16.msra.mxu2 %v3573_v34 }
 0x4bf   :  { %1048 = vmatpush.bf16.msrb.mxu0 %v3640_v55 }
 0x4c3   :  { %1049 = vmatpush.bf16.msrb.mxu0 %v3646_v56 }
 0x4c7   :  { %1050 = vmatpush.bf16.msrb.mxu0 %v3652_v59 }
 0x4cb   :  { %1051 = vmatpush.bf16.msrb.mxu0 %v3661_v63 }
 0x4cf   :  { %1052 = vmatpush.bf16.msrb.mxu0 %v3667_v9 }
 0x521   :  { %v623_v24 = vpop.f32.mrf.mxu2 }
 0x522   :  { %v627_v30 = vadd.f32 %v623_v24, %v612_v8 }
 0x524   :  { %v2699_v31 = vmul.f32 -1.442695, %v627_v30 }
 0x526   :  { %3123 = vpow2.f32 %v2699_v31 }
 0x529   :  { %v625_v33 = vpop.f32.mrf.mxu2 }
 0x52c   :  { %v3124_v36 = vpop.eup %3123 }
 0x52d   :  { %v631_v37 = vadd.f32 1.0, %v3124_v36 }
 0x52f   :  { %3125 = vrcp.f32 %v631_v37  ;;  %v670_v39 = vpop.f32.mrf.mxu0  ;;  %v643_v47 = vand.u32 2147483648, %v631_v37  ;;  %v641_v53 = vand.u32 2147483647, %v631_v37  ;;  %vm637_vm9 = vweird.f32 %v631_v37 }
 0x530   :  { %v674_v40 = vadd.f32 %v670_v39, %v659_v38 }
 0x531   :  { %v644_v58 = vor.u32 1.1754944e-38, %v643_v47  ;;  %vm642_vm11 = vcmp.eq.f32.partialorder %v641_v53, 8.507059e+37 }
 0x532   :  { %v2700_v41 = vmul.f32 -1.442695, %v674_v40  ;;  %3127 = vtanh.f32 %v674_v40 }
 0x534   :  { %3129 = vpow2.f32 %v2700_v41 }
 0x535   :  { %v3126_v42 = vpop.eup %3125 }
 0x536   :  { %v633_v43 = vmul.f32 %v3126_v42, %v631_v37  ;;  %vm638_vm8 = vweird.f32 %v3126_v42 }
 0x537   :  { %v672_v44 = vpop.f32.mrf.mxu0  ;;  %vm639_vm10 = vmor %vm637_vm9, %vm638_vm8 }
 0x538   :  { %v3128_v45 = vpop.eup %3127  ;;  %v634_v46 = vsub.f32 1.0, %v633_v43 }
 0x539   :  { %697 = vrot.lane.b32.xlu1 %v3128_v45, %s3349_s1 }
 0x53a   :  { %v3130_v49 = vpop.eup %3129  ;;  %v635_v51 = vmul.f32 %v3126_v42, %v634_v46 }
 0x53b   :  { %v678_v54 = vadd.f32 1.0, %v3130_v49 }
 0x53c   :  { %v636_v57 = vadd.f32 %v3126_v42, %v635_v51 }
 0x53d   :  { %3131 = vrcp.f32 %v678_v54  ;;  %v690_v3 = vand.u32 2147483648, %v678_v54  ;;  %v688_v5 = vand.u32 2147483647, %v678_v54  ;;  %vm684_vm13 = vweird.f32 %v678_v54 }
 0x53e   :  { %v640_v60 = vsel %vm639_vm10, %v3126_v42, %v636_v57  ;;  %3133 = vtanh.f32 %v627_v30 }
 0x53f   :  { %v645_v62 = vsel %vm642_vm11, %v644_v58, %v640_v60  ;;  %v691_v10 = vor.u32 1.1754944e-38, %v690_v3  ;;  %vm689_vm15 = vcmp.eq.f32.partialorder %v688_v5, 8.507059e+37 }
 0x540   :  { %648 = vrot.lane.b32.xlu2 %v645_v62, %s3348_s10 }
 0x543   :  { %v3132_v0 = vpop.eup %3131 }
 0x544   :  { %v680_v1 = vmul.f32 %v3132_v0, %v678_v54  ;;  %vm685_vm12 = vweird.f32 %v3132_v0  ;;  %v3134_v13 = vpop.eup %3133 }
 0x545   :  { %vm686_vm14 = vmor %vm684_vm13, %vm685_vm12 }
 0x546   :  { %v681_v2 = vsub.f32 1.0, %v680_v1 }
 0x548   :  { %652 = vrot.lane.b32.xlu2 %v645_v62, %s3350_s6  ;;  %v682_v4 = vmul.f32 %v3132_v0, %v681_v2 }
 0x54a   :  { %v683_v6 = vadd.f32 %v3132_v0, %v682_v4 }
 0x54c   :  { %v687_v11 = vsel %vm686_vm14, %v3132_v0, %v683_v6 }
 0x54d   :  { %v692_v12 = vsel %vm689_vm15, %v691_v10, %v687_v11 }
 0x54e   :  { %699 = vrot.lane.b32.xlu1 %v692_v12, %s3350_s6  ;;  %695 = vrot.lane.b32.xlu0 %v692_v12, %s3348_s10 }
 0x556   :  { %650 = vrot.lane.b32.xlu0 %v3134_v13, %s3349_s1 }
 0x59a   :  { %v649_v20 = vpop.permute.xlu2 %648 }
 0x59b   :  { %v654_v22 = vmul.f32 %v649_v20, %v3753_v7 }
 0x5a2   :  { %v653_v37 = vpop.permute.xlu2 %652 }
 0x5ab   :  { %v698_v14 = vpop.permute.xlu1 %697 }
 0x5ac   :  { %v702_v17 = vmul.f32 %v698_v14, %v692_v12 }
 0x5c0   :  { %v696_v15 = vpop.permute.xlu0 %695  ;;  %v700_v31 = vpop.permute.xlu1 %699 }
 0x5c1   :  { %v701_v18 = vmul.f32 %v696_v15, %v3759_v61 }
 0x5c3   :  { %v3783_v19 = vadd.f32 %v702_v17, %v701_v18 }
 0x5c5   :  { %3135 = vtanh.f32 %v3783_v19 }
 0x5c8   :  { %v651_v21 = vpop.permute.xlu0 %650 }
 0x5c9   :  { %v655_v8 = vmul.f32 %v651_v21, %v645_v62 }
 0x5cb   :  { %v3136_v24 = vpop.eup %3135  ;;  %v3787_v30 = vadd.f32 %v655_v8, %v654_v22 }
 0x5cc   :  { %v705_v33 = vmul.f32 %v3136_v24, %v700_v31 }
 0x5cd   :  { %3137 = vtanh.f32 %v3787_v30 }
 0x5ce   :  { %707 = vst [vmem:[#allocation5 + $0xa] sm:$0x3] %v705_v33  ;;  %v756_v36 = vpack.c.bf16 %v705_v33, %v705_v33 }
 0x5d0   :  { %765 = vmatmul.bf16.vlgmr.msra.gmra.mxu3 %v756_v36  ;;  %v851_v36 = vld [vmem:[#allocation3 + $0x6] sm:$0x3] }
 0x5d1   :  { %1141 = vmatpush.bf16.msra.mxu3 %v3622_v48  ;;  %v708_v48 = vld [vmem:[#allocation2 + $0x6] sm:$0x3] }
 0x5d3   :  { %v3138_v61 = vpop.eup %3137 }
 0x5d4   :  { %v658_v38 = vmul.f32 %v3138_v61, %v653_v37 }
 0x5d5   :  { %1142 = vmatpush.bf16.msra.mxu3 %v3628_v50 }
 0x5d6   :  { %706 = vst [vmem:[#allocation4 + $0x4] sm:$0x3] %v658_v38  ;;  %v709_v7 = vpack.c.bf16 %v658_v38, %v658_v38 }
 0x5d8   :  { %718 = vmatmul.bf16.vlgmr.msra.gmra.mxu1 %v709_v7 }
 0x5d9   :  { %1094 = vmatpush.bf16.msra.mxu1 %v3518_v16  ;;  %1143 = vmatpush.bf16.msra.mxu3 %v3634_v52  ;;  %v755_v16 = vld [vmem:[#allocation3 + $0x8] sm:$0x3] }
 0x5dd   :  { %1095 = vmatpush.bf16.msra.mxu1 %v3528_v25  ;;  %1144 = vmatpush.bf16.msra.mxu3 %v3640_v55 }
 0x5e1   :  { %1096 = vmatpush.bf16.msra.mxu1 %v3534_v26  ;;  %1145 = vmatpush.bf16.msra.mxu3 %v3646_v56 }
 0x5e5   :  { %1097 = vmatpush.bf16.msra.mxu1 %v3540_v27  ;;  %1146 = vmatpush.bf16.msra.mxu3 %v3652_v59 }
 0x5e9   :  { %1098 = vmatpush.bf16.msra.mxu1 %v3546_v28  ;;  %1147 = vmatpush.bf16.msra.mxu3 %v3661_v63 }
 0x5ed   :  { %1099 = vmatpush.bf16.msra.mxu1 %v3552_v29  ;;  %1148 = vmatpush.bf16.msra.mxu3 %v3667_v9 }
 0x5f1   :  { %1100 = vmatpush.bf16.msra.mxu1 %v3562_v32 }
 0x5f5   :  { %1101 = vmatpush.bf16.msra.mxu1 %v3573_v34 }
 0x653   :  { %v766_v25 = vpop.f32.mrf.mxu3 }
 0x654   :  { %v770_v26 = vadd.f32 %v766_v25, %v755_v16 }
 0x655   :  { %v719_v50 = vpop.f32.mrf.mxu1 }
 0x656   :  { %v2702_v27 = vmul.f32 -1.442695, %v770_v26  ;;  %v723_v52 = vadd.f32 %v719_v50, %v708_v48 }
 0x658   :  { %3139 = vpow2.f32 %v2702_v27  ;;  %v2701_v55 = vmul.f32 -1.442695, %v723_v52 }
 0x659   :  { %3141 = vtanh.f32 %v723_v52 }
 0x65a   :  { %3143 = vpow2.f32 %v2701_v55 }
 0x65b   :  { %v768_v28 = vpop.f32.mrf.mxu3 }
 0x65d   :  { %v721_v56 = vpop.f32.mrf.mxu1 }
 0x65e   :  { %v3140_v29 = vpop.eup %3139 }
 0x65f   :  { %v3142_v59 = vpop.eup %3141  ;;  %v774_v63 = vadd.f32 1.0, %v3140_v29 }
 0x660   :  { %v3144_v9 = vpop.eup %3143  ;;  %746 = vrot.lane.b32.xlu1 %v3142_v59, %s3349_s1 }
 0x661   :  { %3145 = vrcp.f32 %v774_v63  ;;  %v727_v32 = vadd.f32 1.0, %v3144_v9  ;;  %v786_v43 = vand.u32 2147483648, %v774_v63  ;;  %v784_v45 = vand.u32 2147483647, %v774_v63 }
 0x662   :  { %vm780_vm1 = vweird.f32 %v774_v63 }
 0x663   :  { %3147 = vrcp.f32 %v727_v32  ;;  %v739_v47 = vand.u32 2147483648, %v727_v32  ;;  %v737_v53 = vand.u32 2147483647, %v727_v32  ;;  %v787_v54 = vor.u32 1.1754944e-38, %v786_v43 }
 0x664   :  { %vm785_vm5 = vcmp.eq.f32.partialorder %v784_v45, 8.507059e+37  ;;  %vm733_vm6 = vweird.f32 %v727_v32  ;;  %3149 = vtanh.f32 %v770_v26 }
 0x665   :  { %v740_v62 = vor.u32 1.1754944e-38, %v739_v47  ;;  %vm738_vm8 = vcmp.eq.f32.partialorder %v737_v53, 8.507059e+37 }
 0x667   :  { %v3146_v34 = vpop.eup %3145 }
 0x668   :  { %v776_v39 = vmul.f32 %v3146_v34, %v774_v63  ;;  %vm781_vm0 = vweird.f32 %v3146_v34 }
 0x669   :  { %v3148_v40 = vpop.eup %3147  ;;  %vm782_vm3 = vmor %vm780_vm1, %vm781_vm0 }
 0x66a   :  { %v777_v41 = vsub.f32 1.0, %v776_v39  ;;  %v729_v42 = vmul.f32 %v3148_v40, %v727_v32  ;;  %vm734_vm2 = vweird.f32 %v3148_v40  ;;  %v3150_v2 = vpop.eup %3149 }
 0x66b   :  { %vm735_vm7 = vmor %vm733_vm6, %vm734_vm2 }
 0x66c   :  { %v778_v44 = vmul.f32 %v3146_v34, %v777_v41  ;;  %v730_v46 = vsub.f32 1.0, %v729_v42 }
 0x66e   :  { %v779_v49 = vadd.f32 %v3146_v34, %v778_v44  ;;  %v731_v51 = vmul.f32 %v3148_v40, %v730_v46 }
 0x670   :  { %v783_v57 = vsel %vm782_vm3, %v3146_v34, %v779_v49  ;;  %v732_v58 = vadd.f32 %v3148_v40, %v731_v51 }
 0x671   :  { %v788_v60 = vsel %vm785_vm5, %v787_v54, %v783_v57 }
 0x672   :  { %791 = vrot.lane.b32.xlu2 %v788_v60, %s3348_s10  ;;  %v736_v0 = vsel %vm735_vm7, %v3148_v40, %v732_v58 }
 0x673   :  { %v741_v1 = vsel %vm738_vm8, %v740_v62, %v736_v0 }
 0x674   :  { %748 = vrot.lane.b32.xlu1 %v741_v1, %s3350_s6  ;;  %744 = vrot.lane.b32.xlu0 %v741_v1, %s3348_s10 }
 0x67a   :  { %795 = vrot.lane.b32.xlu2 %v788_v60, %s3350_s6 }
 0x67c   :  { %793 = vrot.lane.b32.xlu0 %v3150_v2, %s3349_s1 }
 0x6cc   :  { %v792_v11 = vpop.permute.xlu2 %791 }
 0x6cd   :  { %v797_v13 = vmul.f32 %v792_v11, %v3783_v19 }
 0x6d2   :  { %v747_v3 = vpop.permute.xlu1 %746 }
 0x6d3   :  { %v751_v5 = vmul.f32 %v747_v3, %v741_v1 }
 0x6d4   :  { %v796_v8 = vpop.permute.xlu2 %795 }
 0x6e6   :  { %v745_v4 = vpop.permute.xlu0 %744  ;;  %v749_v17 = vpop.permute.xlu1 %748 }
 0x6e7   :  { %v750_v6 = vmul.f32 %v745_v4, %v3787_v30  ;;  %v804_v30 = vld [vmem:[#allocation2 + $0x8] sm:$0x3] }
 0x6e9   :  { %v3813_v10 = vadd.f32 %v751_v5, %v750_v6 }
 0x6eb   :  { %3151 = vtanh.f32 %v3813_v10 }
 0x6ee   :  { %v794_v12 = vpop.permute.xlu0 %793 }
 0x6ef   :  { %v798_v14 = vmul.f32 %v794_v12, %v788_v60 }
 0x6f1   :  { %v3152_v15 = vpop.eup %3151  ;;  %v3817_v18 = vadd.f32 %v798_v14, %v797_v13 }
 0x6f2   :  { %v754_v20 = vmul.f32 %v3152_v15, %v749_v17 }
 0x6f3   :  { %3153 = vtanh.f32 %v3817_v18 }
 0x6f4   :  { %802 = vst [vmem:[#allocation4 + $0x6] sm:$0x3] %v754_v20  ;;  %v805_v21 = vpack.c.bf16 %v754_v20, %v754_v20 }
 0x6f6   :  { %814 = vmatmul.bf16.vlgmr.msrb.gmra.mxu2 %v805_v21  ;;  %v900_v21 = vld [vmem:[#allocation2 + $0xa] sm:$0x3] }
 0x6f9   :  { %v3154_v22 = vpop.eup %3153 }
 0x6fa   :  { %v801_v24 = vmul.f32 %v3154_v22, %v796_v8 }
 0x6fc   :  { %803 = vst [vmem:[#allocation5 + $0x8] sm:$0x3] %v801_v24  ;;  %v852_v31 = vpack.c.bf16 %v801_v24, %v801_v24 }
 0x6fe   :  { %861 = vmatmul.bf16.vlgmr.msra.gmra.mxu0 %v852_v31 }
 0x779   :  { %v815_v33 = vpop.f32.mrf.mxu2 }
 0x77a   :  { %v819_v19 = vadd.f32 %v815_v33, %v804_v30 }
 0x77b   :  { %v862_v61 = vpop.f32.mrf.mxu0 }
 0x77c   :  { %v2703_v37 = vmul.f32 -1.442695, %v819_v19  ;;  %v866_v38 = vadd.f32 %v862_v61, %v851_v36 }
 0x77e   :  { %3155 = vpow2.f32 %v2703_v37  ;;  %v2704_v7 = vmul.f32 -1.442695, %v866_v38 }
 0x77f   :  { %3157 = vtanh.f32 %v866_v38 }
 0x780   :  { %3159 = vpow2.f32 %v2704_v7 }
 0x781   :  { %v817_v16 = vpop.f32.mrf.mxu2 }
 0x783   :  { %v864_v25 = vpop.f32.mrf.mxu0 }
 0x784   :  { %v3156_v26 = vpop.eup %3155 }
 0x785   :  { %v3158_v48 = vpop.eup %3157  ;;  %v823_v50 = vadd.f32 1.0, %v3156_v26 }
 0x786   :  { %v3160_v27 = vpop.eup %3159  ;;  %889 = vrot.lane.b32.xlu1 %v3158_v48, %s3349_s1 }
 0x787   :  { %3161 = vrcp.f32 %v823_v50  ;;  %v870_v52 = vadd.f32 1.0, %v3160_v27  ;;  %v835_v63 = vand.u32 2147483648, %v823_v50  ;;  %v833_v32 = vand.u32 2147483647, %v823_v50 }
 0x788   :  { %vm829_vm10 = vweird.f32 %v823_v50 }
 0x789   :  { %3163 = vrcp.f32 %v870_v52  ;;  %v882_v39 = vand.u32 2147483648, %v870_v52  ;;  %v880_v42 = vand.u32 2147483647, %v870_v52  ;;  %v836_v43 = vor.u32 1.1754944e-38, %v835_v63 }
 0x78a   :  { %vm834_vm13 = vcmp.eq.f32.partialorder %v833_v32, 8.507059e+37  ;;  %vm876_vm14 = vweird.f32 %v870_v52  ;;  %3165 = vtanh.f32 %v819_v19 }
 0x78b   :  { %v883_v47 = vor.u32 1.1754944e-38, %v882_v39  ;;  %vm881_vm0 = vcmp.eq.f32.partialorder %v880_v42, 8.507059e+37 }
 0x78d   :  { %v3162_v55 = vpop.eup %3161 }
 0x78e   :  { %v825_v28 = vmul.f32 %v3162_v55, %v823_v50  ;;  %vm830_vm9 = vweird.f32 %v3162_v55 }
 0x78f   :  { %v3164_v56 = vpop.eup %3163  ;;  %vm831_vm12 = vmor %vm829_vm10, %vm830_vm9 }
 0x790   :  { %v826_v29 = vsub.f32 1.0, %v825_v28  ;;  %v872_v59 = vmul.f32 %v3164_v56, %v870_v52  ;;  %vm877_vm11 = vweird.f32 %v3164_v56  ;;  %v3166_v53 = vpop.eup %3165 }
 0x791   :  { %vm878_vm15 = vmor %vm876_vm14, %vm877_vm11 }
 0x792   :  { %v827_v9 = vmul.f32 %v3162_v55, %v826_v29  ;;  %v873_v34 = vsub.f32 1.0, %v872_v59 }
 0x794   :  { %v828_v40 = vadd.f32 %v3162_v55, %v827_v9  ;;  %v874_v41 = vmul.f32 %v3164_v56, %v873_v34 }
 0x796   :  { %v832_v44 = vsel %vm831_vm12, %v3162_v55, %v828_v40  ;;  %v875_v45 = vadd.f32 %v3164_v56, %v874_v41 }
 0x797   :  { %v837_v46 = vsel %vm834_vm13, %v836_v43, %v832_v44 }
 0x798   :  { %840 = vrot.lane.b32.xlu2 %v837_v46, %s3348_s10  ;;  %v879_v49 = vsel %vm878_vm15, %v3164_v56, %v875_v45 }
 0x799   :  { %v884_v51 = vsel %vm881_vm0, %v883_v47, %v879_v49 }
 0x79a   :  { %891 = vrot.lane.b32.xlu1 %v884_v51, %s3350_s6  ;;  %887 = vrot.lane.b32.xlu0 %v884_v51, %s3348_s10 }
 0x7a0   :  { %844 = vrot.lane.b32.xlu2 %v837_v46, %s3350_s6 }
 0x7a2   :  { %842 = vrot.lane.b32.xlu0 %v3166_v53, %s3349_s1 }
 0x7f2   :  { %v841_v0 = vpop.permute.xlu2 %840 }
 0x7f3   :  { %v846_v2 = vmul.f32 %v841_v0, %v3813_v10 }
 0x7f8   :  { %v890_v54 = vpop.permute.xlu1 %889 }
 0x7f9   :  { %v894_v58 = vmul.f32 %v890_v54, %v884_v51 }
 0x7fa   :  { %v845_v14 = vpop.permute.xlu2 %844 }
 0x80c   :  { %v888_v57 = vpop.permute.xlu0 %887  ;;  %v892_v5 = vpop.permute.xlu1 %891 }
 0x80d   :  { %v893_v60 = vmul.f32 %v888_v57, %v3817_v18  ;;  %v947_v18 = vld [vmem:[#allocation3 + $0x4] sm:$0x3] }
 0x80f   :  { %v3827_v62 = vadd.f32 %v894_v58, %v893_v60 }
 0x811   :  { %3167 = vtanh.f32 %v3827_v62 }
 0x814   :  { %v843_v1 = vpop.permute.xlu0 %842 }
 0x815   :  { %v847_v3 = vmul.f32 %v843_v1, %v837_v46 }
 0x817   :  { %v3168_v4 = vpop.eup %3167  ;;  %v3831_v6 = vadd.f32 %v847_v3, %v846_v2 }
 0x818   :  { %v897_v11 = vmul.f32 %v3168_v4, %v892_v5 }
 0x819   :  { %3169 = vtanh.f32 %v3831_v6 }
 0x81a   :  { %899 = vst [vmem:[#allocation5 + $0x6] sm:$0x3] %v897_v11  ;;  %v948_v12 = vpack.c.bf16 %v897_v11, %v897_v11 }
 0x81c   :  { %957 = vmatmul.bf16.vlgmr.msrb.gmra.mxu3 %v948_v12  ;;  %v1043_v12 = vld [vmem:[#allocation3 + $0x2] sm:$0x3] }
 0x81f   :  { %v3170_v13 = vpop.eup %3169 }
 0x820   :  { %v850_v15 = vmul.f32 %v3170_v13, %v845_v14 }
 0x822   :  { %898 = vst [vmem:[#allocation4 + $0x8] sm:$0x3] %v850_v15  ;;  %v901_v17 = vpack.c.bf16 %v850_v15, %v850_v15 }
 0x824   :  { %910 = vmatmul.bf16.vlgmr.msrb.gmra.mxu1 %v901_v17 }
 0x89f   :  { %v958_v20 = vpop.f32.mrf.mxu3 }
 0x8a0   :  { %v962_v10 = vadd.f32 %v958_v20, %v947_v18 }
 0x8a1   :  { %v911_v22 = vpop.f32.mrf.mxu1 }
 0x8a2   :  { %v2706_v8 = vmul.f32 -1.442695, %v962_v10  ;;  %v915_v24 = vadd.f32 %v911_v22, %v900_v21 }
 0x8a4   :  { %3171 = vpow2.f32 %v2706_v8  ;;  %v2705_v31 = vmul.f32 -1.442695, %v915_v24 }
 0x8a5   :  { %3173 = vtanh.f32 %v915_v24 }
 0x8a6   :  { %3175 = vpow2.f32 %v2705_v31 }
 0x8a7   :  { %v960_v30 = vpop.f32.mrf.mxu3 }
 0x8a9   :  { %v913_v33 = vpop.f32.mrf.mxu1 }
 0x8aa   :  { %v3172_v19 = vpop.eup %3171 }
 0x8ab   :  { %v3174_v36 = vpop.eup %3173  ;;  %v966_v61 = vadd.f32 1.0, %v3172_v19 }
 0x8ac   :  { %v3176_v37 = vpop.eup %3175  ;;  %938 = vrot.lane.b32.xlu1 %v3174_v36, %s3349_s1 }
 0x8ad   :  { %3177 = vrcp.f32 %v966_v61  ;;  %v919_v38 = vadd.f32 1.0, %v3176_v37  ;;  %v978_v50 = vand.u32 2147483648, %v966_v61  ;;  %v976_v52 = vand.u32 2147483647, %v966_v61 }
 0x8ae   :  { %vm972_vm2 = vweird.f32 %v966_v61 }
 0x8af   :  { %3179 = vrcp.f32 %v919_v38  ;;  %v931_v28 = vand.u32 2147483648, %v919_v38  ;;  %v929_v59 = vand.u32 2147483647, %v919_v38  ;;  %v979_v63 = vor.u32 1.1754944e-38, %v978_v50 }
 0x8b0   :  { %vm977_vm6 = vcmp.eq.f32.partialorder %v976_v52, 8.507059e+37  ;;  %vm925_vm7 = vweird.f32 %v919_v38  ;;  %3181 = vtanh.f32 %v962_v10 }
 0x8b1   :  { %v932_v39 = vor.u32 1.1754944e-38, %v931_v28  ;;  %vm930_vm9 = vcmp.eq.f32.partialorder %v929_v59, 8.507059e+37 }
 0x8b3   :  { %v3178_v7 = vpop.eup %3177 }
 0x8b4   :  { %v968_v16 = vmul.f32 %v3178_v7, %v966_v61  ;;  %vm973_vm1 = vweird.f32 %v3178_v7 }
 0x8b5   :  { %v3180_v25 = vpop.eup %3179  ;;  %vm974_vm5 = vmor %vm972_vm2, %vm973_vm1 }
 0x8b6   :  { %v969_v26 = vsub.f32 1.0, %v968_v16  ;;  %v921_v48 = vmul.f32 %v3180_v25, %v919_v38  ;;  %vm926_vm3 = vweird.f32 %v3180_v25  ;;  %v3182_v42 = vpop.eup %3181 }
 0x8b7   :  { %vm927_vm8 = vmor %vm925_vm7, %vm926_vm3 }
 0x8b8   :  { %v970_v27 = vmul.f32 %v3178_v7, %v969_v26  ;;  %v922_v55 = vsub.f32 1.0, %v921_v48 }
 0x8ba   :  { %v971_v56 = vadd.f32 %v3178_v7, %v970_v27  ;;  %v923_v29 = vmul.f32 %v3180_v25, %v922_v55 }
 0x8bc   :  { %v975_v9 = vsel %vm974_vm5, %v3178_v7, %v971_v56  ;;  %v924_v32 = vadd.f32 %v3180_v25, %v923_v29 }
 0x8bd   :  { %v980_v34 = vsel %vm977_vm6, %v979_v63, %v975_v9 }
 0x8be   :  { %983 = vrot.lane.b32.xlu2 %v980_v34, %s3348_s10  ;;  %v928_v40 = vsel %vm927_vm8, %v3180_v25, %v924_v32 }
 0x8bf   :  { %v933_v41 = vsel %vm930_vm9, %v932_v39, %v928_v40 }
 0x8c0   :  { %940 = vrot.lane.b32.xlu1 %v933_v41, %s3350_s6  ;;  %936 = vrot.lane.b32.xlu0 %v933_v41, %s3348_s10 }
 0x8c6   :  { %987 = vrot.lane.b32.xlu2 %v980_v34, %s3350_s6 }
 0x8c8   :  { %985 = vrot.lane.b32.xlu0 %v3182_v42, %s3349_s1 }
 0x918   :  { %v984_v49 = vpop.permute.xlu2 %983 }
 0x919   :  { %v989_v53 = vmul.f32 %v984_v49, %v3827_v62 }
 0x91e   :  { %v939_v43 = vpop.permute.xlu1 %938 }
 0x91f   :  { %v943_v45 = vmul.f32 %v939_v43, %v933_v41 }
 0x920   :  { %v988_v3 = vpop.permute.xlu2 %987 }
 0x932   :  { %v937_v44 = vpop.permute.xlu0 %936  ;;  %v941_v58 = vpop.permute.xlu1 %940 }
 0x933   :  { %v942_v46 = vmul.f32 %v937_v44, %v3831_v6  ;;  %v996_v6 = vld [vmem:[#allocation2 + $0xc] sm:$0x3] }
 0x935   :  { %v3841_v47 = vadd.f32 %v943_v45, %v942_v46 }
 0x937   :  { %3183 = vtanh.f32 %v3841_v47 }
 0x93a   :  { %v986_v51 = vpop.permute.xlu0 %985 }
 0x93b   :  { %v990_v54 = vmul.f32 %v986_v51, %v980_v34 }
 0x93d   :  { %v3184_v57 = vpop.eup %3183  ;;  %v3845_v60 = vadd.f32 %v990_v54, %v989_v53 }
 0x93e   :  { %v946_v0 = vmul.f32 %v3184_v57, %v941_v58 }
 0x93f   :  { %3185 = vtanh.f32 %v3845_v60 }
 0x940   :  { %994 = vst [vmem:[#allocation4 + $0xa] sm:$0x3] %v946_v0  ;;  %v997_v1 = vpack.c.bf16 %v946_v0, %v946_v0 }
 0x942   :  { %1006 = vmatmul.bf16.vlgmr.msra.gmra.mxu2 %v997_v1  ;;  %v1092_v1 = vld [vmem:[#allocation2 + $0xe] sm:$0x3] }
 0x945   :  { %v3186_v2 = vpop.eup %3185 }
 0x946   :  { %v993_v4 = vmul.f32 %v3186_v2, %v988_v3 }
 0x948   :  { %995 = vst [vmem:[#allocation5 + $0x4] sm:$0x3] %v993_v4  ;;  %v1044_v5 = vpack.c.bf16 %v993_v4, %v993_v4 }
 0x94a   :  { %1053 = vmatmul.bf16.vlgmr.msrb.gmra.mxu0 %v1044_v5 }
 0x9c5   :  { %v1007_v11 = vpop.f32.mrf.mxu2 }
 0x9c6   :  { %v1011_v62 = vadd.f32 %v1007_v11, %v996_v6 }
 0x9c7   :  { %v1054_v13 = vpop.f32.mrf.mxu0 }
 0x9c8   :  { %v2707_v14 = vmul.f32 -1.442695, %v1011_v62  ;;  %v1058_v15 = vadd.f32 %v1054_v13, %v1043_v12 }
 0x9ca   :  { %3187 = vpow2.f32 %v2707_v14  ;;  %v2708_v17 = vmul.f32 -1.442695, %v1058_v15 }
 0x9cb   :  { %3189 = vtanh.f32 %v1058_v15 }
 0x9cc   :  { %3191 = vpow2.f32 %v2708_v17 }
 0x9cd   :  { %v1009_v18 = vpop.f32.mrf.mxu2 }
 0x9cf   :  { %v1056_v20 = vpop.f32.mrf.mxu0 }
 0x9d0   :  { %v3188_v10 = vpop.eup %3187 }
 0x9d1   :  { %v3190_v21 = vpop.eup %3189  ;;  %v1015_v22 = vadd.f32 1.0, %v3188_v10 }
 0x9d2   :  { %v3192_v8 = vpop.eup %3191  ;;  %1081 = vrot.lane.b32.xlu1 %v3190_v21, %s3349_s1 }
 0x9d3   :  { %3193 = vrcp.f32 %v1015_v22  ;;  %v1062_v24 = vadd.f32 1.0, %v3192_v8  ;;  %v1027_v61 = vand.u32 2147483648, %v1015_v22  ;;  %v1025_v38 = vand.u32 2147483647, %v1015_v22 }
 0x9d4   :  { %vm1021_vm11 = vweird.f32 %v1015_v22 }
 0x9d5   :  { %3195 = vrcp.f32 %v1062_v24  ;;  %v1074_v16 = vand.u32 2147483648, %v1062_v24  ;;  %v1072_v48 = vand.u32 2147483647, %v1062_v24  ;;  %v1028_v50 = vor.u32 1.1754944e-38, %v1027_v61 }
 0x9d6   :  { %vm1026_vm14 = vcmp.eq.f32.partialorder %v1025_v38, 8.507059e+37  ;;  %vm1068_vm15 = vweird.f32 %v1062_v24  ;;  %3197 = vtanh.f32 %v1011_v62 }
 0x9d7   :  { %v1075_v28 = vor.u32 1.1754944e-38, %v1074_v16  ;;  %vm1073_vm1 = vcmp.eq.f32.partialorder %v1072_v48, 8.507059e+37 }
 0x9d9   :  { %v3194_v31 = vpop.eup %3193 }
 0x9da   :  { %v1017_v30 = vmul.f32 %v3194_v31, %v1015_v22  ;;  %vm1022_vm10 = vweird.f32 %v3194_v31 }
 0x9db   :  { %v3196_v33 = vpop.eup %3195  ;;  %vm1023_vm13 = vmor %vm1021_vm11, %vm1022_vm10 }
 0x9dc   :  { %v1018_v19 = vsub.f32 1.0, %v1017_v30  ;;  %v1064_v36 = vmul.f32 %v3196_v33, %v1062_v24  ;;  %vm1069_vm12 = vweird.f32 %v3196_v33  ;;  %v3198_v59 = vpop.eup %3197 }
 0x9dd   :  { %vm1070_vm0 = vmor %vm1068_vm15, %vm1069_vm12 }
 0x9de   :  { %v1019_v37 = vmul.f32 %v3194_v31, %v1018_v19  ;;  %v1065_v7 = vsub.f32 1.0, %v1064_v36 }
 0x9e0   :  { %v1020_v25 = vadd.f32 %v3194_v31, %v1019_v37  ;;  %v1066_v26 = vmul.f32 %v3196_v33, %v1065_v7 }
 0x9e2   :  { %v1024_v27 = vsel %vm1023_vm13, %v3194_v31, %v1020_v25  ;;  %v1067_v52 = vadd.f32 %v3196_v33, %v1066_v26 }
 0x9e3   :  { %v1029_v55 = vsel %vm1026_vm14, %v1028_v50, %v1024_v27  ;;  %v3029_v50 = vld [vmem:[%s4376_s15 + $0x38] sm:$0xff] }
 0x9e4   :  { %1032 = vrot.lane.b32.xlu2 %v1029_v55, %s3348_s10  ;;  %v1071_v56 = vsel %vm1070_vm0, %v3196_v33, %v1067_v52  ;;  %v3021_v27 = vld [vmem:[%s4377_s14 + $0x38] sm:$0xff]  ;;  %1274 = vmatpush.bf16.msrb.mxu2 %v3029_v50 }
 0x9e5   :  { %v1076_v29 = vsel %vm1073_vm1, %v1075_v28, %v1071_v56  ;;  %v3037_v52 = vld [vmem:[%s4378_s18 + $0x38] sm:$0xff]  ;;  %1336 = vmatpush.bf16.msra.mxu0 %v3021_v27  ;;  %v3020_v28 = vld [vmem:[%s4377_s14 + $0x30] sm:$0xff] }
 0x9e6   :  { %1083 = vrot.lane.b32.xlu1 %v1076_v29, %s3350_s6  ;;  %1079 = vrot.lane.b32.xlu0 %v1076_v29, %s3348_s10  ;;  %v3036_v56 = vld [vmem:[%s4378_s18 + $0x30] sm:$0xff] }
 0x9e7   :  { %1500 = vmatpush.bf16.msrb.mxu3 %v3037_v52  ;;  %v1188_v52 = vld [vmem:[#allocation4] sm:$0xff] }
 0x9e9   :  { %1337 = vmatpush.bf16.msra.mxu0 %v3020_v28 }
 0x9eb   :  { %1501 = vmatpush.bf16.msrb.mxu3 %v3036_v56 }
 0x9ec   :  { %1036 = vrot.lane.b32.xlu2 %v1029_v55, %s3350_s6 }
 0x9ee   :  { %1034 = vrot.lane.b32.xlu0 %v3198_v59, %s3349_s1  ;;  %v3019_v59 = vld [vmem:[%s4377_s14 + $0x28] sm:$0xff] }
 0x9ef   :  { %1338 = vmatpush.bf16.msra.mxu0 %v3019_v59 }
 0xa3e   :  { %v1033_v40 = vpop.permute.xlu2 %1032 }
 0xa3f   :  { %v1038_v42 = vmul.f32 %v1033_v40, %v3841_v47  ;;  %v3018_v40 = vld [vmem:[%s4377_s14 + $0x20] sm:$0xff] }
 0xa40   :  { %1339 = vmatpush.bf16.msra.mxu0 %v3018_v40 }
 0xa44   :  { %v1082_v63 = vpop.permute.xlu1 %1081 }
 0xa45   :  { %v1086_v32 = vmul.f32 %v1082_v63, %v1076_v29  ;;  %v3027_v29 = vld [vmem:[%s4376_s15 + $0x28] sm:$0xff]  ;;  %v3026_v63 = vld [vmem:[%s4376_s15 + $0x20] sm:$0xff] }
 0xa46   :  { %v1037_v54 = vpop.permute.xlu2 %1036 }
 0xa58   :  { %v1080_v9 = vpop.permute.xlu0 %1079  ;;  %v1084_v45 = vpop.permute.xlu1 %1083 }
 0xa59   :  { %v1085_v34 = vmul.f32 %v1080_v9, %v3845_v60  ;;  %v1139_v60 = vld [vmem:[#allocation3] sm:$0x3]  ;;  %v3045_v9 = vld [vmem:[%s4379_s19 + $0x38] sm:$0xff] }
 0xa5a   :  { %1438 = vmatpush.bf16.msrb.mxu1 %v3045_v9  ;;  %v3088_v9 = vld [vmem:[%s4382_s21] ss:$0 sm:$0xff] }
 0xa5b   :  { %v3855_v39 = vadd.f32 %v1086_v32, %v1085_v34  ;;  %v3035_v32 = vld [vmem:[%s4378_s18 + $0x28] sm:$0xff]  ;;  %v3025_v34 = vld [vmem:[%s4376_s15 + $0x18] sm:$0xff] }
 0xa5c   :  { %1502 = vmatpush.bf16.msrb.mxu3 %v3035_v32 }
 0xa5d   :  { %3199 = vtanh.f32 %v3855_v39 }
 0xa60   :  { %v1035_v41 = vpop.permute.xlu0 %1034 }
 0xa61   :  { %v1039_v43 = vmul.f32 %v1035_v41, %v1029_v55  ;;  %v3028_v55 = vld [vmem:[%s4376_s15 + $0x30] sm:$0xff] }
 0xa62   :  { %1275 = vmatpush.bf16.msrb.mxu2 %v3028_v55  ;;  %v3044_v41 = vld [vmem:[%s4379_s19 + $0x30] sm:$0xff] }
 0xa63   :  { %v3200_v44 = vpop.eup %3199  ;;  %v3859_v46 = vadd.f32 %v1039_v43, %v1038_v42  ;;  %v3034_v42 = vld [vmem:[%s4378_s18 + $0x20] sm:$0xff]  ;;  %1439 = vmatpush.bf16.msrb.mxu1 %v3044_v41  ;;  %v3024_v43 = vld [vmem:[%s4376_s15 + $0x10] sm:$0xff] }
 0xa64   :  { %v1089_v49 = vmul.f32 %v3200_v44, %v1084_v45  ;;  %1503 = vmatpush.bf16.msrb.mxu3 %v3034_v42  ;;  %v3017_v44 = vld [vmem:[%s4377_s14 + $0x18] sm:$0xff]  ;;  %v3043_v45 = vld [vmem:[%s4379_s19 + $0x28] sm:$0xff]  ;;  %v3089_v42 = vld [vmem:[%s4383_s17] ss:$0 sm:$0xff] }
 0xa65   :  { %3201 = vtanh.f32 %v3859_v46  ;;  %1340 = vmatpush.bf16.msra.mxu0 %v3017_v44 }
 0xa66   :  { %1091 = vst [vmem:[#allocation5 + $0x2] sm:$0x3] %v1089_v49  ;;  %v1140_v51 = vpack.c.bf16 %v1089_v49, %v1089_v49  ;;  %1276 = vmatpush.bf16.msrb.mxu2 %v3027_v29  ;;  %v3033_v49 = vld [vmem:[%s4378_s18 + $0x18] sm:$0xff] }
 0xa67   :  { %1440 = vmatpush.bf16.msrb.mxu1 %v3043_v45  ;;  %v1192_v29 = vld [vmem:[#allocation5 + $0x8] sm:$0xff] }
 0xa68   :  { %1149 = vmatmul.bf16.vlgmr.msra.gmra.mxu3 %v1140_v51  ;;  %v3023_v51 = vld [vmem:[%s4376_s15 + $0x8] sm:$0xff] }
 0xa69   :  { %1504 = vmatpush.bf16.msrb.mxu3 %v3033_v49 }
 0xa6a   :  { %1277 = vmatpush.bf16.msrb.mxu2 %v3026_v63 }
 0xa6b   :  { %v3202_v53 = vpop.eup %3201 }
 0xa6c   :  { %v1042_v57 = vmul.f32 %v3202_v53, %v1037_v54  ;;  %v3016_v53 = vld [vmem:[%s4377_s14 + $0x10] sm:$0xff]  ;;  %v3042_v54 = vld [vmem:[%s4379_s19 + $0x20] sm:$0xff] }
 0xa6d   :  { %1341 = vmatpush.bf16.msra.mxu0 %v3016_v53  ;;  %1441 = vmatpush.bf16.msrb.mxu1 %v3042_v54 }
 0xa6e   :  { %1090 = vst [vmem:[#allocation4 + $0xc] sm:$0x3] %v1042_v57  ;;  %v1093_v58 = vpack.c.bf16 %v1042_v57, %v1042_v57  ;;  %1278 = vmatpush.bf16.msrb.mxu2 %v3025_v34  ;;  %v3032_v57 = vld [vmem:[%s4378_s18 + $0x10] sm:$0xff] }
 0xa6f   :  { %1505 = vmatpush.bf16.msrb.mxu3 %v3032_v57 }
 0xa70   :  { %1102 = vmatmul.bf16.vlgmr.msra.gmra.mxu1 %v1093_v58  ;;  %v3022_v58 = vld [vmem:[%s4376_s15] sm:$0xff] }
 0xa72   :  { %1279 = vmatpush.bf16.msrb.mxu2 %v3024_v43 }
 0xa76   :  { %1280 = vmatpush.bf16.msrb.mxu2 %v3023_v51 }
 0xa7a   :  { %1281 = vmatpush.bf16.msrb.mxu2 %v3022_v58 }
 0xaeb   :  { %v1150_v0 = vpop.f32.mrf.mxu3 }
 0xaec   :  { %v1154_v47 = vadd.f32 %v1150_v0, %v1139_v60  ;;  %v3015_v60 = vld [vmem:[%s4377_s14 + $0x8] sm:$0xff]  ;;  %v3041_v0 = vld [vmem:[%s4379_s19 + $0x18] sm:$0xff] }
 0xaed   :  { %v1103_v2 = vpop.f32.mrf.mxu1  ;;  %1342 = vmatpush.bf16.msra.mxu0 %v3015_v60  ;;  %1442 = vmatpush.bf16.msrb.mxu1 %v3041_v0 }
 0xaee   :  { %v2710_v3 = vmul.f32 -1.442695, %v1154_v47  ;;  %v1107_v4 = vadd.f32 %v1103_v2, %v1092_v1  ;;  %v3960_v1 = vld [vmem:[%s4380_s16 + $0x38] sm:$0xff]  ;;  %v3014_v2 = vld [vmem:[%s4377_s14] sm:$0xff] }
 0xaef   :  { %1603 = vmatpush.bf16.msra.mxu2 %v3960_v1 }
 0xaf0   :  { %3203 = vpow2.f32 %v2710_v3  ;;  %v2709_v5 = vmul.f32 -1.442695, %v1107_v4  ;;  %v3040_v3 = vld [vmem:[%s4379_s19 + $0x10] sm:$0xff] }
 0xaf1   :  { %3205 = vtanh.f32 %v1107_v4  ;;  %v3030_v4 = vld [vmem:[%s4378_s18] sm:$0xff]  ;;  %1343 = vmatpush.bf16.msra.mxu0 %v3014_v2  ;;  %1443 = vmatpush.bf16.msrb.mxu1 %v3040_v3 }
 0xaf2   :  { %3207 = vpow2.f32 %v2709_v5  ;;  %v3975_v5 = vld [vmem:[%s4380_s16 + $0x30] sm:$0xff] }
 0xaf3   :  { %v1152_v6 = vpop.f32.mrf.mxu3  ;;  %1604 = vmatpush.bf16.msra.mxu2 %v3975_v5 }
 0xaf4   :  { %v3980_v6 = vld [vmem:[%s4381_s20 + $0x38] sm:$0xff] }
 0xaf5   :  { %v1105_v11 = vpop.f32.mrf.mxu1  ;;  %1697 = vmatpush.bf16.msrb.mxu0 %v3980_v6 }
 0xaf6   :  { %v3204_v62 = vpop.eup %3203  ;;  %v3039_v11 = vld [vmem:[%s4379_s19 + $0x8] sm:$0xff] }
 0xaf7   :  { %v3206_v12 = vpop.eup %3205  ;;  %v1158_v13 = vadd.f32 1.0, %v3204_v62  ;;  %v3990_v62 = vld [vmem:[%s4380_s16 + $0x28] sm:$0xff]  ;;  %1444 = vmatpush.bf16.msrb.mxu1 %v3039_v11 }
 0xaf8   :  { %v3208_v14 = vpop.eup %3207  ;;  %1130 = vrot.lane.b32.xlu1 %v3206_v12, %s3349_s1  ;;  %v3995_v12 = vld [vmem:[%s4381_s20 + $0x30] sm:$0xff]  ;;  %1605 = vmatpush.bf16.msra.mxu2 %v3990_v62 }
 0xaf9   :  { %3209 = vrcp.f32 %v1158_v13  ;;  %v1111_v15 = vadd.f32 1.0, %v3208_v14  ;;  %v1170_v22 = vand.u32 2147483648, %v1158_v13  ;;  %v1168_v24 = vand.u32 2147483647, %v1158_v13  ;;  %1698 = vmatpush.bf16.msrb.mxu0 %v3995_v12  ;;  %v4006_v14 = vld [vmem:[%s4380_s16 + $0x20] sm:$0xff] }
 0xafa   :  { %vm1164_vm3 = vweird.f32 %v1158_v13 }
 0xafb   :  { %3211 = vrcp.f32 %v1111_v15  ;;  %v1123_v30 = vand.u32 2147483648, %v1111_v15  ;;  %v1121_v36 = vand.u32 2147483647, %v1111_v15  ;;  %v1171_v61 = vor.u32 1.1754944e-38, %v1170_v22 }
 0xafc   :  { %vm1169_vm7 = vcmp.eq.f32.partialorder %v1168_v24, 8.507059e+37  ;;  %vm1117_vm8 = vweird.f32 %v1111_v15  ;;  %3213 = vtanh.f32 %v1154_v47  ;;  %v3031_v47 = vld [vmem:[%s4378_s18 + $0x8] sm:$0xff]  ;;  %1606 = vmatpush.bf16.msra.mxu2 %v4006_v14  ;;  %v4035_v24 = vld [vmem:[%s4380_s16 + $0x10] sm:$0xff] }
 0xafd   :  { %v1124_v16 = vor.u32 1.1754944e-38, %v1123_v30  ;;  %vm1122_vm10 = vcmp.eq.f32.partialorder %v1121_v36, 8.507059e+37  ;;  %1506 = vmatpush.bf16.msrb.mxu3 %v3031_v47  ;;  %v4049_v30 = vld [vmem:[%s4380_s16 + $0x8] sm:$0xff] }
 0xaff   :  { %v3210_v17 = vpop.eup %3209 }
 0xb00   :  { %v1160_v18 = vmul.f32 %v3210_v17, %v1158_v13  ;;  %vm1165_vm2 = vweird.f32 %v3210_v17  ;;  %v3038_v13 = vld [vmem:[%s4379_s19] sm:$0xff] }
 0xb01   :  { %v3212_v20 = vpop.eup %3211  ;;  %vm1166_vm6 = vmor %vm1164_vm3, %vm1165_vm2  ;;  %1507 = vmatpush.bf16.msrb.mxu3 %v3030_v4  ;;  %1445 = vmatpush.bf16.msrb.mxu1 %v3038_v13 }
 0xb02   :  { %v1161_v10 = vsub.f32 1.0, %v1160_v18  ;;  %v1113_v21 = vmul.f32 %v3212_v20, %v1111_v15  ;;  %vm1118_vm5 = vweird.f32 %v3212_v20  ;;  %v3214_v48 = vpop.eup %3213  ;;  %v4011_v15 = vld [vmem:[%s4381_s20 + $0x28] sm:$0xff] }
 0xb03   :  { %vm1119_vm9 = vmor %vm1117_vm8, %vm1118_vm5  ;;  %1699 = vmatpush.bf16.msrb.mxu0 %v4011_v15 }
 0xb04   :  { %v1162_v8 = vmul.f32 %v3210_v17, %v1161_v10  ;;  %v1114_v31 = vsub.f32 1.0, %v1113_v21  ;;  %v4024_v10 = vld [vmem:[%s4381_s20 + $0x20] sm:$0xff] }
 0xb05   :  { %1791 = vmatpush.bf16.msra.mxu3 %v3980_v6  ;;  %1744 = vmatpush.bf16.msra.mxu1 %v3960_v1 }
 0xb06   :  { %v1163_v33 = vadd.f32 %v3210_v17, %v1162_v8  ;;  %v1115_v19 = vmul.f32 %v3212_v20, %v1114_v31  ;;  %v4040_v31 = vld [vmem:[%s4381_s20 + $0x18] sm:$0xff] }
 0xb07   :  { %1700 = vmatpush.bf16.msrb.mxu0 %v4024_v10 }
 0xb08   :  { %v1167_v37 = vsel %vm1166_vm6, %v3210_v17, %v1163_v33  ;;  %v1116_v38 = vadd.f32 %v3212_v20, %v1115_v19  ;;  %v4054_v33 = vld [vmem:[%s4381_s20 + $0x10] sm:$0xff] }
 0xb09   :  { %v3863_v7 = vsel %vm1169_vm7, %v1171_v61, %v1167_v37  ;;  %1792 = vmatpush.bf16.msra.mxu3 %v3995_v12  ;;  %1745 = vmatpush.bf16.msra.mxu1 %v3975_v5 }
 0xb0a   :  { %1175 = vrot.lane.b32.xlu2 %v3863_v7, %s3348_s10  ;;  %v1120_v25 = vsel %vm1119_vm9, %v3212_v20, %v1116_v38  ;;  %v4019_v20 = vld [vmem:[%s4380_s16 + $0x18] sm:$0xff] }
 0xb0b   :  { %v3867_v26 = vsel %vm1122_vm10, %v1124_v16, %v1120_v25  ;;  %1607 = vmatpush.bf16.msra.mxu2 %v4019_v20  ;;  %1701 = vmatpush.bf16.msrb.mxu0 %v4040_v31  ;;  %v4065_v25 = vld [vmem:[%s4380_s16] sm:$0xff] }
 0xb0c   :  { %1132 = vrot.lane.b32.xlu1 %v3867_v26, %s3350_s6  ;;  %1128 = vrot.lane.b32.xlu0 %v3867_v26, %s3348_s10 }
 0xb0d   :  { %1793 = vmatpush.bf16.msra.mxu3 %v4011_v15  ;;  %1746 = vmatpush.bf16.msra.mxu1 %v3990_v62 }
 0xb0f   :  { %1608 = vmatpush.bf16.msra.mxu2 %v4035_v24  ;;  %1702 = vmatpush.bf16.msrb.mxu0 %v4054_v33 }
 0xb11   :  { %1794 = vmatpush.bf16.msra.mxu3 %v4024_v10  ;;  %1747 = vmatpush.bf16.msra.mxu1 %v4006_v14 }
 0xb12   :  { %1179 = vrot.lane.b32.xlu2 %v3863_v7, %s3350_s6 }
 0xb13   :  { %1609 = vmatpush.bf16.msra.mxu2 %v4049_v30 }
 0xb14   :  { %1177 = vrot.lane.b32.xlu0 %v3214_v48, %s3349_s1 }
 0xb15   :  { %1795 = vmatpush.bf16.msra.mxu3 %v4040_v31  ;;  %1748 = vmatpush.bf16.msra.mxu1 %v4019_v20 }
 0xb17   :  { %1610 = vmatpush.bf16.msra.mxu2 %v4065_v25 }
 0xb19   :  { %1796 = vmatpush.bf16.msra.mxu3 %v4054_v33  ;;  %1749 = vmatpush.bf16.msra.mxu1 %v4035_v24 }
 0xb1d   :  { %1750 = vmatpush.bf16.msra.mxu1 %v4049_v30 }
 0xb21   :  { %1751 = vmatpush.bf16.msra.mxu1 %v4065_v25 }
 0xb6a   :  { %v1131_v17 = vpop.permute.xlu1 %1130 }
 0xb6b   :  { %v1135_v21 = vmul.f32 %v1131_v17, %v3867_v26  ;;  %v4070_v26 = vld [vmem:[%s4381_s20 + $0x8] sm:$0xff] }
 0xb6c   :  { %1703 = vmatpush.bf16.msrb.mxu0 %v4070_v26  ;;  %1797 = vmatpush.bf16.msra.mxu3 %v4070_v26 }
 0xb7e   :  { %v1129_v18 = vpop.permute.xlu0 %1128  ;;  %v1133_v38 = vpop.permute.xlu1 %1132 }
 0xb7f   :  { %v1134_v22 = vmul.f32 %v1129_v18, %v3859_v46  ;;  %v1176_v46 = vpop.permute.xlu2 %1175 }
 0xb80   :  { %v1181_v36 = vmul.f32 %v1176_v46, %v3855_v39 }
 0xb81   :  { %v1136_v8 = vadd.f32 %v1135_v21, %v1134_v22 }
 0xb83   :  { %3215 = vtanh.f32 %v1136_v8 }
 0xb86   :  { %v1178_v19 = vpop.permute.xlu0 %1177 }
 0xb87   :  { %v1182_v61 = vmul.f32 %v1178_v19, %v3863_v7  ;;  %v4079_v7 = vld [vmem:[%s4381_s20] sm:$0xff]  ;;  %v1180_v50 = vpop.permute.xlu2 %1179 }
 0xb88   :  { %1704 = vmatpush.bf16.msrb.mxu0 %v4079_v7  ;;  %1798 = vmatpush.bf16.msra.mxu3 %v4079_v7 }
 0xb89   :  { %v3216_v37 = vpop.eup %3215  ;;  %v1183_v16 = vadd.f32 %v1182_v61, %v1181_v36 }
 0xb8a   :  { %v1138_v39 = vmul.f32 %v3216_v37, %v1133_v38 }
 0xb8b   :  { %3217 = vtanh.f32 %v1183_v16 }
 0xb8c   :  { %1186 = vst [vmem:[#allocation4 + $0xe] sm:$0x3] %v1138_v39 }
 0xb91   :  { %v3218_v48 = vpop.eup %3217 }
 0xb92   :  { %v1185_v27 = vmul.f32 %v3218_v48, %v1180_v50 }
 0xb93   :  { %v1189_v55 = vld [vmem:[#allocation4 + $0x8] sm:$0xff] }
 0xb94   :  { %1187 = vst [vmem:[#allocation5] sm:$0x3] %v1185_v27  ;;  %v1190_v28 = vpack.c.bf16 %v1189_v55, %v1188_v52 }
 0xb96   :  { %1344 = vmatmul.bf16.vlgmr.msra.gmra.mxu0 %v1190_v28  ;;  %1508 = vmatmul.bf16.vlgmr.msrb.gmra.mxu3 %v1190_v28 }
 0xb97   :  { %1885 = vmatpush.bf16.msra.mxu0 %v3980_v6  ;;  %1979 = vmatpush.bf16.msrb.mxu3 %v3980_v6 }
 0xb9b   :  { %v1191_v56 = vld [vmem:[#allocation5] sm:$0xff]  ;;  %1886 = vmatpush.bf16.msra.mxu0 %v3995_v12  ;;  %1980 = vmatpush.bf16.msrb.mxu3 %v3995_v12 }
 0xb9c   :  { %v1193_v59 = vpack.c.bf16 %v1192_v29, %v1191_v56 }
 0xb9e   :  { %1282 = vmatmul.bf16.vlgmr.msrb.gmra.mxu2 %v1193_v59  ;;  %1446 = vmatmul.bf16.vlgmr.msrb.gmra.mxu1 %v1193_v59 }
 0xb9f   :  { %1838 = vmatpush.bf16.msrb.mxu2 %v3960_v1  ;;  %1887 = vmatpush.bf16.msra.mxu0 %v4011_v15 }
 0xba0   :  { %1932 = vmatpush.bf16.msrb.mxu1 %v3960_v1  ;;  %1981 = vmatpush.bf16.msrb.mxu3 %v4011_v15 }
 0xba3   :  { %1839 = vmatpush.bf16.msrb.mxu2 %v3975_v5  ;;  %1888 = vmatpush.bf16.msra.mxu0 %v4024_v10 }
 0xba4   :  { %1933 = vmatpush.bf16.msrb.mxu1 %v3975_v5  ;;  %1982 = vmatpush.bf16.msrb.mxu3 %v4024_v10 }
 0xba6   :  { %1705 = vmatmul.bf16.vlgmr.msrb.gmra.mxu0 %v3347_v35 }
 0xba7   :  { %1840 = vmatpush.bf16.msrb.mxu2 %v3990_v62  ;;  %1889 = vmatpush.bf16.msra.mxu0 %v4040_v31 }
 0xba8   :  { %1934 = vmatpush.bf16.msrb.mxu1 %v3990_v62  ;;  %1983 = vmatpush.bf16.msrb.mxu3 %v4040_v31 }
 0xbab   :  { %1841 = vmatpush.bf16.msrb.mxu2 %v4006_v14  ;;  %1890 = vmatpush.bf16.msra.mxu0 %v4054_v33 }
 0xbac   :  { %1935 = vmatpush.bf16.msrb.mxu1 %v4006_v14  ;;  %1984 = vmatpush.bf16.msrb.mxu3 %v4054_v33 }
 0xbae   :  { %1611 = vmatmul.bf16.vlgmr.msra.gmra.mxu2 %v3347_v35 }
 0xbaf   :  { %1842 = vmatpush.bf16.msrb.mxu2 %v4019_v20  ;;  %1891 = vmatpush.bf16.msra.mxu0 %v4070_v26 }
 0xbb0   :  { %1936 = vmatpush.bf16.msrb.mxu1 %v4019_v20  ;;  %1985 = vmatpush.bf16.msrb.mxu3 %v4070_v26 }
 0xbb3   :  { %1843 = vmatpush.bf16.msrb.mxu2 %v4035_v24  ;;  %1892 = vmatpush.bf16.msra.mxu0 %v4079_v7 }
 0xbb4   :  { %1937 = vmatpush.bf16.msrb.mxu1 %v4035_v24  ;;  %1986 = vmatpush.bf16.msrb.mxu3 %v4079_v7 }
 0xbb7   :  { %2073 = vmatpush.bf16.msrb.mxu0 %v3980_v6  ;;  %1844 = vmatpush.bf16.msrb.mxu2 %v4049_v30 }
 0xbb8   :  { %1938 = vmatpush.bf16.msrb.mxu1 %v4049_v30 }
 0xbbb   :  { %2074 = vmatpush.bf16.msrb.mxu0 %v3995_v12  ;;  %1845 = vmatpush.bf16.msrb.mxu2 %v4065_v25 }
 0xbbc   :  { %1939 = vmatpush.bf16.msrb.mxu1 %v4065_v25 }
 0xbbf   :  { %2026 = vmatpush.bf16.msra.mxu2 %v3960_v1  ;;  %2075 = vmatpush.bf16.msrb.mxu0 %v4011_v15 }
 0xbc3   :  { %2027 = vmatpush.bf16.msra.mxu2 %v3975_v5  ;;  %2076 = vmatpush.bf16.msrb.mxu0 %v4024_v10 }
 0xbc7   :  { %2028 = vmatpush.bf16.msra.mxu2 %v3990_v62  ;;  %2077 = vmatpush.bf16.msrb.mxu0 %v4040_v31 }
 0xbcb   :  { %2029 = vmatpush.bf16.msra.mxu2 %v4006_v14  ;;  %2078 = vmatpush.bf16.msrb.mxu0 %v4054_v33 }
 0xbcf   :  { %2030 = vmatpush.bf16.msra.mxu2 %v4019_v20  ;;  %2079 = vmatpush.bf16.msrb.mxu0 %v4070_v26 }
 0xbd3   :  { %2031 = vmatpush.bf16.msra.mxu2 %v4035_v24  ;;  %2080 = vmatpush.bf16.msrb.mxu0 %v4079_v7 }
 0xbd7   :  { %2032 = vmatpush.bf16.msra.mxu2 %v4049_v30 }
 0xbdb   :  { %2033 = vmatpush.bf16.msra.mxu2 %v4065_v25 }
 0xc13   :  { %v1345_v35 = vpop.f32.mrf.mxu0 }
 0xc19   :  { %v1509_v63 = vpop.f32.mrf.mxu3 }
 0xc1b   :  { %v1347_v32 = vpop.f32.mrf.mxu0  ;;  %v1447_v34 = vpop.f32.mrf.mxu1 }
 0xc1c   :  { %v1510_v40 = vadd.f32 %v1509_v63, %v1447_v34 }
 0xc1e   :  { %v1518_v41 = vadd.f32 %v3088_v9, %v1510_v40 }
 0xc20   :  { %1520 = vst [vmem:[#allocation7] sm:$0xff] %v1518_v41 }
 0xc21   :  { %v1283_v43 = vpop.f32.mrf.mxu2  ;;  %v1511_v45 = vpop.f32.mrf.mxu3 }
 0xc22   :  { %v1346_v44 = vadd.f32 %v1345_v35, %v1283_v43 }
 0xc23   :  { %v1449_v49 = vpop.f32.mrf.mxu1  ;;  %v1706_v51 = vpop.f32.mrf.mxu0 }
 0xc24   :  { %v1354_v53 = vadd.f32 %v3089_v42, %v1346_v44  ;;  %v1512_v54 = vadd.f32 %v1511_v45, %v1449_v49 }
 0xc26   :  { %1356 = vst [vmem:[#allocation6] sm:$0xff] %v1354_v53  ;;  %v1519_v57 = vadd.f32 %v3088_v9, %v1512_v54 }
 0xc28   :  { %1521 = vst [vmem:[#allocation7 + $0x8] sm:$0xff] %v1519_v57 }
 0xc29   :  { %v1285_v58 = vpop.f32.mrf.mxu2 }
 0xc2a   :  { %v1348_v60 = vadd.f32 %v1347_v32, %v1285_v58 }
 0xc2b   :  { %v1708_v0 = vpop.f32.mrf.mxu0 }
 0xc2c   :  { %v1355_v47 = vadd.f32 %v3089_v42, %v1348_v60 }
 0xc2d   :  { %v1554_v4 = vld [vmem:[#allocation6] sm:$0x3] }
 0xc2e   :  { %1357 = vst [vmem:[#allocation6 + $0x8] sm:$0xff] %v1355_v47 }
 0xc2f   :  { %v1648_v2 = vld [vmem:[#allocation7 + $0xe] sm:$0x3] }
 0xc30   :  { %v1710_v3 = vadd.f32 %v1706_v51, %v1648_v2 }
 0xc31   :  { %v1612_v11 = vpop.f32.mrf.mxu2 }
 0xc32   :  { %v2904_v13 = vmul.f32 -1.442695, %v1710_v3  ;;  %v1616_v17 = vadd.f32 %v1612_v11, %v1554_v4 }
 0xc34   :  { %3219 = vpow2.f32 %v2904_v13  ;;  %v2871_v18 = vmul.f32 -1.442695, %v1616_v17 }
 0xc35   :  { %3221 = vtanh.f32 %v1616_v17  ;;  %v1742_v17 = vld [vmem:[#allocation6 + $0x2] sm:$0x3] }
 0xc36   :  { %3223 = vpow2.f32 %v2871_v18 }
 0xc39   :  { %v1614_v21 = vpop.f32.mrf.mxu2 }
 0xc3a   :  { %v3220_v22 = vpop.eup %3219 }
 0xc3b   :  { %v3222_v8 = vpop.eup %3221  ;;  %v1714_v46 = vadd.f32 1.0, %v3220_v22 }
 0xc3c   :  { %v3224_v19 = vpop.eup %3223  ;;  %1639 = vrot.lane.b32.xlu1 %v3222_v8, %s3349_s1 }
 0xc3d   :  { %3225 = vrcp.f32 %v1714_v46  ;;  %v1620_v36 = vadd.f32 1.0, %v3224_v19  ;;  %v1726_v48 = vand.u32 2147483648, %v1714_v46  ;;  %v1724_v27 = vand.u32 2147483647, %v1714_v46 }
 0xc3e   :  { %vm1720_vm12 = vweird.f32 %v1714_v46 }
 0xc3f   :  { %3227 = vrcp.f32 %v1620_v36  ;;  %v1632_v55 = vand.u32 2147483648, %v1620_v36  ;;  %v1630_v29 = vand.u32 2147483647, %v1620_v36  ;;  %v1727_v59 = vor.u32 1.1754944e-38, %v1726_v48 }
 0xc40   :  { %vm1725_vm15 = vcmp.eq.f32.partialorder %v1724_v27, 8.507059e+37  ;;  %vm1626_vm0 = vweird.f32 %v1620_v36  ;;  %3229 = vtanh.f32 %v1710_v3 }
 0xc41   :  { %v1633_v32 = vor.u32 1.1754944e-38, %v1632_v55  ;;  %vm1631_vm2 = vcmp.eq.f32.partialorder %v1630_v29, 8.507059e+37 }
 0xc43   :  { %v3226_v61 = vpop.eup %3225 }
 0xc44   :  { %v1716_v37 = vmul.f32 %v3226_v61, %v1714_v46  ;;  %vm1721_vm11 = vweird.f32 %v3226_v61 }
 0xc45   :  { %v3228_v38 = vpop.eup %3227  ;;  %vm1722_vm14 = vmor %vm1720_vm12, %vm1721_vm11 }
 0xc46   :  { %v1717_v16 = vsub.f32 1.0, %v1716_v37  ;;  %v1622_v39 = vmul.f32 %v3228_v38, %v1620_v36  ;;  %vm1627_vm13 = vweird.f32 %v3228_v38  ;;  %v3230_v41 = vpop.eup %3229 }
 0xc47   :  { %vm1628_vm1 = vmor %vm1626_vm0, %vm1627_vm13 }
 0xc48   :  { %v1718_v50 = vmul.f32 %v3226_v61, %v1717_v16  ;;  %v1623_v52 = vsub.f32 1.0, %v1622_v39 }
 0xc4a   :  { %v1719_v28 = vadd.f32 %v3226_v61, %v1718_v50  ;;  %v1624_v56 = vmul.f32 %v3228_v38, %v1623_v52 }
 0xc4c   :  { %v1723_v35 = vsel %vm1722_vm14, %v3226_v61, %v1719_v28  ;;  %v1625_v63 = vadd.f32 %v3228_v38, %v1624_v56  ;;  %v1789_v61 = vld [vmem:[#allocation7 + $0xc] sm:$0x3] }
 0xc4d   :  { %v1728_v9 = vsel %vm1725_vm15, %v1727_v59, %v1723_v35 }
 0xc4e   :  { %1731 = vrot.lane.b32.xlu2 %v1728_v9, %s3348_s10  ;;  %v1629_v34 = vsel %vm1628_vm1, %v3228_v38, %v1625_v63 }
 0xc4f   :  { %v1634_v40 = vsel %vm1631_vm2, %v1633_v32, %v1629_v34 }
 0xc50   :  { %1641 = vrot.lane.b32.xlu1 %v1634_v40, %s3350_s6  ;;  %1637 = vrot.lane.b32.xlu0 %v1634_v40, %s3348_s10 }
 0xc56   :  { %1735 = vrot.lane.b32.xlu2 %v1728_v9, %s3350_s6 }
 0xc58   :  { %1733 = vrot.lane.b32.xlu0 %v3230_v41, %s3349_s1 }
 0xca8   :  { %v1732_v51 = vpop.permute.xlu2 %1731 }
 0xca9   :  { %v1737_v54 = vmul.f32 0.0, %v1732_v51 }
 0xcae   :  { %v1640_v42 = vpop.permute.xlu1 %1639 }
 0xcaf   :  { %v1644_v44 = vmul.f32 %v1640_v42, %v1634_v40 }
 0xcb0   :  { %v1736_v4 = vpop.permute.xlu2 %1735 }
 0xcc2   :  { %v1638_v43 = vpop.permute.xlu0 %1637  ;;  %v1642_v60 = vpop.permute.xlu1 %1641 }
 0xcc3   :  { %v1643_v45 = vmul.f32 0.0, %v1638_v43 }
 0xcc5   :  { %v4150_v49 = vadd.f32 %v1644_v44, %v1643_v45 }
 0xcc7   :  { %3231 = vtanh.f32 %v4150_v49 }
 0xcca   :  { %v1734_v53 = vpop.permute.xlu0 %1733 }
 0xccb   :  { %v1738_v57 = vmul.f32 %v1734_v53, %v1728_v9 }
 0xccd   :  { %v3232_v58 = vpop.eup %3231  ;;  %v4153_v0 = vadd.f32 %v1738_v57, %v1737_v54 }
 0xcce   :  { %v1647_v47 = vmul.f32 %v3232_v58, %v1642_v60 }
 0xccf   :  { %3233 = vtanh.f32 %v4153_v0 }
 0xcd0   :  { %v1743_v2 = vpack.c.bf16 %v1647_v47, %v1647_v47 }
 0xcd2   :  { %1752 = vmatmul.bf16.vlgmr.msra.gmra.mxu1 %v1743_v2 }
 0xcd3   :  { %2120 = vmatpush.bf16.msra.mxu1 %v3960_v1 }
 0xcd5   :  { %v3234_v3 = vpop.eup %3233 }
 0xcd6   :  { %v1741_v11 = vmul.f32 %v3234_v3, %v1736_v4 }
 0xcd7   :  { %2121 = vmatpush.bf16.msra.mxu1 %v3975_v5 }
 0xcd8   :  { %v1790_v13 = vpack.c.bf16 %v1741_v11, %v1741_v11 }
 0xcda   :  { %1799 = vmatmul.bf16.vlgmr.msra.gmra.mxu3 %v1790_v13 }
 0xcdb   :  { %2122 = vmatpush.bf16.msra.mxu1 %v3990_v62  ;;  %2167 = vmatpush.bf16.msra.mxu3 %v3980_v6 }
 0xcdf   :  { %2123 = vmatpush.bf16.msra.mxu1 %v4006_v14  ;;  %2168 = vmatpush.bf16.msra.mxu3 %v3995_v12 }
 0xce3   :  { %2124 = vmatpush.bf16.msra.mxu1 %v4019_v20  ;;  %2169 = vmatpush.bf16.msra.mxu3 %v4011_v15 }
 0xce7   :  { %2125 = vmatpush.bf16.msra.mxu1 %v4035_v24  ;;  %2170 = vmatpush.bf16.msra.mxu3 %v4024_v10 }
 0xceb   :  { %2126 = vmatpush.bf16.msra.mxu1 %v4049_v30  ;;  %2171 = vmatpush.bf16.msra.mxu3 %v4040_v31 }
 0xcef   :  { %2127 = vmatpush.bf16.msra.mxu1 %v4065_v25  ;;  %2172 = vmatpush.bf16.msra.mxu3 %v4054_v33 }
 0xcf3   :  { %2173 = vmatpush.bf16.msra.mxu3 %v4070_v26 }
 0xcf7   :  { %2174 = vmatpush.bf16.msra.mxu3 %v4079_v7 }
 0xd4f   :  { %v1753_v18 = vpop.f32.mrf.mxu1 }
 0xd50   :  { %v1757_v21 = vadd.f32 %v1753_v18, %v1742_v17 }
 0xd52   :  { %v2905_v22 = vmul.f32 -1.442695, %v1757_v21  ;;  %3235 = vtanh.f32 %v1757_v21 }
 0xd54   :  { %3237 = vpow2.f32 %v2905_v22 }
 0xd57   :  { %v1755_v8 = vpop.f32.mrf.mxu1 }
 0xd58   :  { %v3236_v46 = vpop.eup %3235 }
 0xd59   :  { %1780 = vrot.lane.b32.xlu1 %v3236_v46, %s3349_s1 }
 0xd5a   :  { %v3238_v19 = vpop.eup %3237 }
 0xd5b   :  { %v1761_v36 = vadd.f32 1.0, %v3238_v19 }
 0xd5d   :  { %3239 = vrcp.f32 %v1761_v36  ;;  %v1800_v37 = vpop.f32.mrf.mxu3  ;;  %v1773_v52 = vand.u32 2147483648, %v1761_v36  ;;  %v1771_v56 = vand.u32 2147483647, %v1761_v36  ;;  %vm1767_vm5 = vweird.f32 %v1761_v36 }
 0xd5e   :  { %v1804_v38 = vadd.f32 %v1800_v37, %v1789_v61 }
 0xd5f   :  { %v1774_v35 = vor.u32 1.1754944e-38, %v1773_v52  ;;  %vm1772_vm7 = vcmp.eq.f32.partialorder %v1771_v56, 8.507059e+37 }
 0xd60   :  { %v2906_v16 = vmul.f32 -1.442695, %v1804_v38 }
 0xd62   :  { %3241 = vpow2.f32 %v2906_v16 }
 0xd63   :  { %v3240_v39 = vpop.eup %3239 }
 0xd64   :  { %v1763_v48 = vmul.f32 %v3240_v39, %v1761_v36  ;;  %vm1768_vm3 = vweird.f32 %v3240_v39 }
 0xd65   :  { %v1802_v50 = vpop.f32.mrf.mxu3  ;;  %vm1769_vm6 = vmor %vm1767_vm5, %vm1768_vm3 }
 0xd66   :  { %v1764_v27 = vsub.f32 1.0, %v1763_v48 }
 0xd68   :  { %v3242_v55 = vpop.eup %3241  ;;  %v1765_v28 = vmul.f32 %v3240_v39, %v1764_v27 }
 0xd69   :  { %v1808_v29 = vadd.f32 1.0, %v3242_v55 }
 0xd6a   :  { %v1766_v59 = vadd.f32 %v3240_v39, %v1765_v28 }
 0xd6b   :  { %3243 = vrcp.f32 %v1808_v29  ;;  %v1820_v42 = vand.u32 2147483648, %v1808_v29  ;;  %v1818_v44 = vand.u32 2147483647, %v1808_v29  ;;  %vm1814_vm9 = vweird.f32 %v1808_v29 }
 0xd6c   :  { %v1770_v63 = vsel %vm1769_vm6, %v3240_v39, %v1766_v59  ;;  %3245 = vtanh.f32 %v1804_v38  ;;  %v1883_v38 = vld [vmem:[#allocation7 + $0xa] sm:$0x3] }
 0xd6d   :  { %v1775_v9 = vsel %vm1772_vm7, %v1774_v35, %v1770_v63  ;;  %v1821_v51 = vor.u32 1.1754944e-38, %v1820_v42  ;;  %vm1819_vm11 = vcmp.eq.f32.partialorder %v1818_v44, 8.507059e+37 }
 0xd6e   :  { %1782 = vrot.lane.b32.xlu1 %v1775_v9, %s3350_s6  ;;  %1778 = vrot.lane.b32.xlu0 %v1775_v9, %s3348_s10 }
 0xd71   :  { %v3244_v32 = vpop.eup %3243 }
 0xd72   :  { %v1810_v34 = vmul.f32 %v3244_v32, %v1808_v29  ;;  %v3246_v41 = vpop.eup %3245  ;;  %vm1815_vm8 = vweird.f32 %v3244_v32 }
 0xd73   :  { %vm1816_vm10 = vmor %vm1814_vm9, %vm1815_vm8 }
 0xd74   :  { %v1811_v40 = vsub.f32 1.0, %v1810_v34 }
 0xd76   :  { %1827 = vrot.lane.b32.xlu0 %v3246_v41, %s3349_s1  ;;  %v1812_v43 = vmul.f32 %v3244_v32, %v1811_v40 }
 0xd78   :  { %v1813_v45 = vadd.f32 %v3244_v32, %v1812_v43 }
 0xd7a   :  { %v1817_v53 = vsel %vm1816_vm10, %v3244_v32, %v1813_v45 }
 0xd7b   :  { %v1822_v54 = vsel %vm1819_vm11, %v1821_v51, %v1817_v53 }
 0xd7c   :  { %1825 = vrot.lane.b32.xlu2 %v1822_v54, %s3348_s10 }
 0xd84   :  { %1829 = vrot.lane.b32.xlu2 %v1822_v54, %s3350_s6 }
 0xdcb   :  { %v1781_v57 = vpop.permute.xlu1 %1780 }
 0xdcc   :  { %v1785_v60 = vmul.f32 %v1781_v57, %v1775_v9 }
 0xdd6   :  { %v1826_v3 = vpop.permute.xlu2 %1825 }
 0xdd7   :  { %v1831_v11 = vmul.f32 %v1826_v3, %v4153_v0  ;;  %v1836_v0 = vld [vmem:[#allocation6 + $0x4] sm:$0x3] }
 0xdde   :  { %v1830_v46 = vpop.permute.xlu2 %1829 }
 0xde0   :  { %v1779_v58 = vpop.permute.xlu0 %1778  ;;  %v1783_v18 = vpop.permute.xlu1 %1782 }
 0xde1   :  { %v1784_v47 = vmul.f32 %v1779_v58, %v4150_v49 }
 0xde3   :  { %v4179_v2 = vadd.f32 %v1785_v60, %v1784_v47 }
 0xde5   :  { %3247 = vtanh.f32 %v4179_v2 }
 0xde8   :  { %v1828_v4 = vpop.permute.xlu0 %1827 }
 0xde9   :  { %v1832_v13 = vmul.f32 %v1828_v4, %v1822_v54 }
 0xdeb   :  { %v3248_v17 = vpop.eup %3247  ;;  %v4183_v21 = vadd.f32 %v1832_v13, %v1831_v11 }
 0xdec   :  { %v1788_v22 = vmul.f32 %v3248_v17, %v1783_v18 }
 0xded   :  { %3249 = vtanh.f32 %v4183_v21 }
 0xdee   :  { %v1837_v8 = vpack.c.bf16 %v1788_v22, %v1788_v22 }
 0xdf0   :  { %1846 = vmatmul.bf16.vlgmr.msrb.gmra.mxu2 %v1837_v8 }
 0xdf1   :  { %2214 = vmatpush.bf16.msrb.mxu2 %v3960_v1 }
 0xdf3   :  { %v3250_v49 = vpop.eup %3249 }
 0xdf4   :  { %v1835_v19 = vmul.f32 %v3250_v49, %v1830_v46 }
 0xdf5   :  { %2215 = vmatpush.bf16.msrb.mxu2 %v3975_v5 }
 0xdf6   :  { %v1884_v36 = vpack.c.bf16 %v1835_v19, %v1835_v19 }
 0xdf8   :  { %1893 = vmatmul.bf16.vlgmr.msra.gmra.mxu0 %v1884_v36 }
 0xdf9   :  { %2216 = vmatpush.bf16.msrb.mxu2 %v3990_v62  ;;  %2261 = vmatpush.bf16.msra.mxu0 %v3980_v6 }
 0xdfd   :  { %2217 = vmatpush.bf16.msrb.mxu2 %v4006_v14  ;;  %2262 = vmatpush.bf16.msra.mxu0 %v3995_v12 }
 0xe01   :  { %2218 = vmatpush.bf16.msrb.mxu2 %v4019_v20  ;;  %2263 = vmatpush.bf16.msra.mxu0 %v4011_v15 }
 0xe05   :  { %2219 = vmatpush.bf16.msrb.mxu2 %v4035_v24  ;;  %2264 = vmatpush.bf16.msra.mxu0 %v4024_v10 }
 0xe09   :  { %2220 = vmatpush.bf16.msrb.mxu2 %v4049_v30  ;;  %2265 = vmatpush.bf16.msra.mxu0 %v4040_v31 }
 0xe0d   :  { %2221 = vmatpush.bf16.msrb.mxu2 %v4065_v25  ;;  %2266 = vmatpush.bf16.msra.mxu0 %v4054_v33 }
 0xe11   :  { %2267 = vmatpush.bf16.msra.mxu0 %v4070_v26 }
 0xe15   :  { %2268 = vmatpush.bf16.msra.mxu0 %v4079_v7 }
 0xe73   :  { %v1847_v61 = vpop.f32.mrf.mxu2 }
 0xe74   :  { %v1851_v37 = vadd.f32 %v1847_v61, %v1836_v0 }
 0xe75   :  { %v1894_v16 = vpop.f32.mrf.mxu0 }
 0xe76   :  { %v2907_v39 = vmul.f32 -1.442695, %v1851_v37  ;;  %3251 = vtanh.f32 %v1851_v37  ;;  %v1898_v48 = vadd.f32 %v1894_v16, %v1883_v38 }
 0xe78   :  { %3253 = vpow2.f32 %v2907_v39  ;;  %v2908_v50 = vmul.f32 -1.442695, %v1898_v48 }
 0xe7a   :  { %3255 = vpow2.f32 %v2908_v50 }
 0xe7b   :  { %v1849_v27 = vpop.f32.mrf.mxu2 }
 0xe7c   :  { %v3252_v52 = vpop.eup %3251 }
 0xe7d   :  { %v1896_v55 = vpop.f32.mrf.mxu0  ;;  %1874 = vrot.lane.b32.xlu1 %v3252_v52, %s3349_s1 }
 0xe7e   :  { %v3254_v28 = vpop.eup %3253 }
 0xe7f   :  { %v1855_v56 = vadd.f32 1.0, %v3254_v28 }
 0xe80   :  { %v3256_v29 = vpop.eup %3255 }
 0xe81   :  { %3257 = vrcp.f32 %v1855_v56  ;;  %v1902_v59 = vadd.f32 1.0, %v3256_v29  ;;  %v1867_v40 = vand.u32 2147483648, %v1855_v56  ;;  %v1865_v42 = vand.u32 2147483647, %v1855_v56 }
 0xe82   :  { %vm1861_vm13 = vweird.f32 %v1855_v56 }
 0xe83   :  { %3259 = vrcp.f32 %v1902_v59  ;;  %v1914_v44 = vand.u32 2147483648, %v1902_v59  ;;  %v1912_v53 = vand.u32 2147483647, %v1902_v59  ;;  %v1868_v54 = vor.u32 1.1754944e-38, %v1867_v40 }
 0xe84   :  { %vm1866_vm0 = vcmp.eq.f32.partialorder %v1865_v42, 8.507059e+37  ;;  %vm1908_vm1 = vweird.f32 %v1902_v59  ;;  %3261 = vtanh.f32 %v1898_v48 }
 0xe85   :  { %v1915_v47 = vor.u32 1.1754944e-38, %v1914_v44  ;;  %vm1913_vm3 = vcmp.eq.f32.partialorder %v1912_v53, 8.507059e+37 }
 0xe87   :  { %v3258_v35 = vpop.eup %3257 }
 0xe88   :  { %v1857_v63 = vmul.f32 %v3258_v35, %v1855_v56  ;;  %vm1862_vm12 = vweird.f32 %v3258_v35 }
 0xe89   :  { %v3260_v9 = vpop.eup %3259  ;;  %vm1863_vm15 = vmor %vm1861_vm13, %vm1862_vm12 }
 0xe8a   :  { %v1858_v32 = vsub.f32 1.0, %v1857_v63  ;;  %v1904_v34 = vmul.f32 %v3260_v9, %v1902_v59  ;;  %vm1909_vm14 = vweird.f32 %v3260_v9  ;;  %v3262_v11 = vpop.eup %3261 }
 0xe8b   :  { %vm1910_vm2 = vmor %vm1908_vm1, %vm1909_vm14 }
 0xe8c   :  { %v1859_v41 = vmul.f32 %v3258_v35, %v1858_v32  ;;  %v1905_v43 = vsub.f32 1.0, %v1904_v34 }
 0xe8e   :  { %v1860_v45 = vadd.f32 %v3258_v35, %v1859_v41  ;;  %v1906_v51 = vmul.f32 %v3260_v9, %v1905_v43 }
 0xe90   :  { %v1864_v57 = vsel %vm1863_vm15, %v3258_v35, %v1860_v45  ;;  %v1907_v58 = vadd.f32 %v3260_v9, %v1906_v51 }
 0xe91   :  { %v1869_v60 = vsel %vm1866_vm0, %v1868_v54, %v1864_v57 }
 0xe92   :  { %1876 = vrot.lane.b32.xlu1 %v1869_v60, %s3350_s6  ;;  %1872 = vrot.lane.b32.xlu0 %v1869_v60, %s3348_s10  ;;  %v1911_v3 = vsel %vm1910_vm2, %v3260_v9, %v1907_v58 }
 0xe93   :  { %v1916_v4 = vsel %vm1913_vm3, %v1915_v47, %v1911_v3 }
 0xe94   :  { %1919 = vrot.lane.b32.xlu2 %v1916_v4, %s3348_s10 }
 0xe9a   :  { %1921 = vrot.lane.b32.xlu0 %v3262_v11, %s3349_s1 }
 0xe9c   :  { %1923 = vrot.lane.b32.xlu2 %v1916_v4, %s3350_s6 }
 0xeee   :  { %v1920_v49 = vpop.permute.xlu2 %1919 }
 0xeef   :  { %v1875_v13 = vpop.permute.xlu1 %1874  ;;  %v1925_v19 = vmul.f32 %v1920_v49, %v4183_v21 }
 0xef0   :  { %v1879_v18 = vmul.f32 %v1875_v13, %v1869_v60 }
 0xef6   :  { %v1924_v39 = vpop.permute.xlu2 %1923 }
 0xf04   :  { %v1873_v17 = vpop.permute.xlu0 %1872  ;;  %v1877_v61 = vpop.permute.xlu1 %1876 }
 0xf05   :  { %v1878_v22 = vmul.f32 %v1873_v17, %v4179_v2 }
 0xf07   :  { %v4209_v8 = vadd.f32 %v1879_v18, %v1878_v22 }
 0xf09   :  { %3263 = vtanh.f32 %v4209_v8 }
 0xf0c   :  { %v1922_v46 = vpop.permute.xlu0 %1921 }
 0xf0d   :  { %v1926_v36 = vmul.f32 %v1922_v46, %v1916_v4 }
 0xf0f   :  { %v3264_v0 = vpop.eup %3263  ;;  %v4213_v37 = vadd.f32 %v1926_v36, %v1925_v19 }
 0xf10   :  { %v1882_v38 = vmul.f32 %v3264_v0, %v1877_v61  ;;  %v2024_v0 = vld [vmem:[#allocation6 + $0x8] sm:$0x3] }
 0xf11   :  { %3265 = vtanh.f32 %v4213_v37 }
 0xf12   :  { %v1931_v16 = vpack.c.bf16 %v1882_v38, %v1882_v38 }
 0xf14   :  { %1940 = vmatmul.bf16.vlgmr.msrb.gmra.mxu1 %v1931_v16  ;;  %v2071_v16 = vld [vmem:[#allocation7 + $0x6] sm:$0x3] }
 0xf15   :  { %2308 = vmatpush.bf16.msrb.mxu1 %v3960_v1  ;;  %v1930_v1 = vld [vmem:[#allocation6 + $0x6] sm:$0x3] }
 0xf17   :  { %v3266_v2 = vpop.eup %3265 }
 0xf18   :  { %v1929_v48 = vmul.f32 %v3266_v2, %v1924_v39 }
 0xf19   :  { %2309 = vmatpush.bf16.msrb.mxu1 %v3975_v5 }
 0xf1a   :  { %v1978_v50 = vpack.c.bf16 %v1929_v48, %v1929_v48 }
 0xf1c   :  { %1987 = vmatmul.bf16.vlgmr.msrb.gmra.mxu3 %v1978_v50 }
 0xf1d   :  { %2310 = vmatpush.bf16.msrb.mxu1 %v3990_v62  ;;  %2355 = vmatpush.bf16.msrb.mxu3 %v3980_v6 }
 0xf21   :  { %2311 = vmatpush.bf16.msrb.mxu1 %v4006_v14  ;;  %2356 = vmatpush.bf16.msrb.mxu3 %v3995_v12 }
 0xf25   :  { %2312 = vmatpush.bf16.msrb.mxu1 %v4019_v20  ;;  %2357 = vmatpush.bf16.msrb.mxu3 %v4011_v15 }
 0xf29   :  { %2313 = vmatpush.bf16.msrb.mxu1 %v4035_v24  ;;  %2358 = vmatpush.bf16.msrb.mxu3 %v4024_v10  ;;  %v1977_v10 = vld [vmem:[#allocation7 + $0x8] sm:$0x3] }
 0xf2d   :  { %2314 = vmatpush.bf16.msrb.mxu1 %v4049_v30  ;;  %2359 = vmatpush.bf16.msrb.mxu3 %v4040_v31 }
 0xf31   :  { %2315 = vmatpush.bf16.msrb.mxu1 %v4065_v25  ;;  %2360 = vmatpush.bf16.msrb.mxu3 %v4054_v33 }
 0xf35   :  { %2361 = vmatpush.bf16.msrb.mxu3 %v4070_v26 }
 0xf39   :  { %2362 = vmatpush.bf16.msrb.mxu3 %v4079_v7 }
 0xf91   :  { %v1941_v5 = vpop.f32.mrf.mxu1 }
 0xf92   :  { %v1945_v6 = vadd.f32 %v1941_v5, %v1930_v1 }
 0xf94   :  { %v2909_v62 = vmul.f32 -1.442695, %v1945_v6  ;;  %3267 = vtanh.f32 %v1945_v6 }
 0xf96   :  { %3269 = vpow2.f32 %v2909_v62 }
 0xf99   :  { %v1943_v12 = vpop.f32.mrf.mxu1 }
 0xf9a   :  { %v3268_v14 = vpop.eup %3267 }
 0xf9b   :  { %1968 = vrot.lane.b32.xlu1 %v3268_v14, %s3349_s1 }
 0xf9c   :  { %v3270_v15 = vpop.eup %3269 }
 0xf9d   :  { %v1949_v20 = vadd.f32 1.0, %v3270_v15 }
 0xf9f   :  { %3271 = vrcp.f32 %v1949_v20  ;;  %v1988_v24 = vpop.f32.mrf.mxu3  ;;  %v1961_v21 = vand.u32 2147483648, %v1949_v20  ;;  %v1959_v55 = vand.u32 2147483647, %v1949_v20  ;;  %vm1955_vm6 = vweird.f32 %v1949_v20 }
 0xfa0   :  { %v1992_v31 = vadd.f32 %v1988_v24, %v1977_v10 }
 0xfa1   :  { %v1962_v29 = vor.u32 1.1754944e-38, %v1961_v21  ;;  %vm1960_vm8 = vcmp.eq.f32.partialorder %v1959_v55, 8.507059e+37 }
 0xfa2   :  { %v2910_v30 = vmul.f32 -1.442695, %v1992_v31 }
 0xfa4   :  { %3273 = vpow2.f32 %v2910_v30 }
 0xfa5   :  { %v3272_v33 = vpop.eup %3271 }
 0xfa6   :  { %v1951_v25 = vmul.f32 %v3272_v33, %v1949_v20  ;;  %vm1956_vm5 = vweird.f32 %v3272_v33 }
 0xfa7   :  { %v1990_v26 = vpop.f32.mrf.mxu3  ;;  %vm1957_vm7 = vmor %vm1955_vm6, %vm1956_vm5 }
 0xfa8   :  { %v1952_v7 = vsub.f32 1.0, %v1951_v25 }
 0xfaa   :  { %v3274_v27 = vpop.eup %3273  ;;  %v1953_v52 = vmul.f32 %v3272_v33, %v1952_v7 }
 0xfab   :  { %v1996_v28 = vadd.f32 1.0, %v3274_v27 }
 0xfac   :  { %v1954_v56 = vadd.f32 %v3272_v33, %v1953_v52 }
 0xfad   :  { %3275 = vrcp.f32 %v1996_v28  ;;  %v2008_v40 = vand.u32 2147483648, %v1996_v28  ;;  %v2006_v42 = vand.u32 2147483647, %v1996_v28  ;;  %vm2002_vm10 = vweird.f32 %v1996_v28 }
 0xfae   :  { %v1958_v59 = vsel %vm1957_vm7, %v3272_v33, %v1954_v56  ;;  %3277 = vtanh.f32 %v1992_v31 }
 0xfaf   :  { %v1963_v35 = vsel %vm1960_vm8, %v1962_v29, %v1958_v59  ;;  %v2009_v44 = vor.u32 1.1754944e-38, %v2008_v40  ;;  %vm2007_vm12 = vcmp.eq.f32.partialorder %v2006_v42, 8.507059e+37 }
 0xfb0   :  { %1970 = vrot.lane.b32.xlu1 %v1963_v35, %s3350_s6  ;;  %1966 = vrot.lane.b32.xlu0 %v1963_v35, %s3348_s10 }
 0xfb3   :  { %v3276_v63 = vpop.eup %3275 }
 0xfb4   :  { %v1998_v9 = vmul.f32 %v3276_v63, %v1996_v28  ;;  %v3278_v34 = vpop.eup %3277  ;;  %vm2003_vm9 = vweird.f32 %v3276_v63 }
 0xfb5   :  { %vm2004_vm11 = vmor %vm2002_vm10, %vm2003_vm9 }
 0xfb6   :  { %v1999_v32 = vsub.f32 1.0, %v1998_v9 }
 0xfb8   :  { %2015 = vrot.lane.b32.xlu0 %v3278_v34, %s3349_s1  ;;  %v2000_v41 = vmul.f32 %v3276_v63, %v1999_v32 }
 0xfba   :  { %v2001_v43 = vadd.f32 %v3276_v63, %v2000_v41 }
 0xfbc   :  { %v2005_v45 = vsel %vm2004_vm11, %v3276_v63, %v2001_v43 }
 0xfbd   :  { %v2010_v51 = vsel %vm2007_vm12, %v2009_v44, %v2005_v45 }
 0xfbe   :  { %2013 = vrot.lane.b32.xlu2 %v2010_v51, %s3348_s10 }
 0xfc6   :  { %2017 = vrot.lane.b32.xlu2 %v2010_v51, %s3350_s6 }
0x100d   :  { %v1969_v53 = vpop.permute.xlu1 %1968 }
0x100e   :  { %v1973_v57 = vmul.f32 %v1969_v53, %v1963_v35 }
0x1018   :  { %v2014_v47 = vpop.permute.xlu2 %2013 }
0x1019   :  { %v2019_v4 = vmul.f32 %v2014_v47, %v4213_v37 }
0x1022   :  { %v1967_v54 = vpop.permute.xlu0 %1966  ;;  %v1971_v17 = vpop.permute.xlu1 %1970 }
0x1023   :  { %v1972_v58 = vmul.f32 %v1967_v54, %v4209_v8  ;;  %v2018_v8 = vpop.permute.xlu2 %2017 }
0x1025   :  { %v4239_v60 = vadd.f32 %v1973_v57, %v1972_v58 }
0x1027   :  { %3279 = vtanh.f32 %v4239_v60 }
0x102a   :  { %v2016_v3 = vpop.permute.xlu0 %2015 }
0x102b   :  { %v2020_v11 = vmul.f32 %v2016_v3, %v2010_v51 }
0x102d   :  { %v3280_v13 = vpop.eup %3279  ;;  %v4243_v18 = vadd.f32 %v2020_v11, %v2019_v4 }
0x102e   :  { %v1976_v22 = vmul.f32 %v3280_v13, %v1971_v17  ;;  %v2118_v13 = vld [vmem:[#allocation6 + $0xa] sm:$0x3] }
0x102f   :  { %3281 = vtanh.f32 %v4243_v18 }
0x1030   :  { %v2025_v49 = vpack.c.bf16 %v1976_v22, %v1976_v22 }
0x1032   :  { %2034 = vmatmul.bf16.vlgmr.msra.gmra.mxu2 %v2025_v49 }
0x1035   :  { %v3282_v46 = vpop.eup %3281 }
0x1036   :  { %v2023_v19 = vmul.f32 %v3282_v46, %v2018_v8 }
0x1038   :  { %v2072_v36 = vpack.c.bf16 %v2023_v19, %v2023_v19 }
0x103a   :  { %2081 = vmatmul.bf16.vlgmr.msrb.gmra.mxu0 %v2072_v36  ;;  %v2165_v36 = vld [vmem:[#allocation7 + $0x4] sm:$0x3] }
0x10b5   :  { %v2035_v61 = vpop.f32.mrf.mxu2 }
0x10b6   :  { %v2039_v38 = vadd.f32 %v2035_v61, %v2024_v0 }
0x10b7   :  { %v2082_v37 = vpop.f32.mrf.mxu0 }
0x10b8   :  { %v2911_v2 = vmul.f32 -1.442695, %v2039_v38  ;;  %3283 = vtanh.f32 %v2039_v38  ;;  %v2086_v39 = vadd.f32 %v2082_v37, %v2071_v16 }
0x10ba   :  { %3285 = vpow2.f32 %v2911_v2  ;;  %v2912_v48 = vmul.f32 -1.442695, %v2086_v39 }
0x10bc   :  { %3287 = vpow2.f32 %v2912_v48 }
0x10bd   :  { %v2037_v50 = vpop.f32.mrf.mxu2 }
0x10be   :  { %v3284_v1 = vpop.eup %3283 }
0x10bf   :  { %v2084_v5 = vpop.f32.mrf.mxu0  ;;  %2062 = vrot.lane.b32.xlu1 %v3284_v1, %s3349_s1 }
0x10c0   :  { %v3286_v6 = vpop.eup %3285 }
0x10c1   :  { %v2043_v62 = vadd.f32 1.0, %v3286_v6 }
0x10c2   :  { %v3288_v12 = vpop.eup %3287 }
0x10c3   :  { %3289 = vrcp.f32 %v2043_v62  ;;  %v2090_v14 = vadd.f32 1.0, %v3288_v12  ;;  %v2055_v30 = vand.u32 2147483648, %v2043_v62  ;;  %v2053_v25 = vand.u32 2147483647, %v2043_v62 }
0x10c4   :  { %vm2049_vm14 = vweird.f32 %v2043_v62 }
0x10c5   :  { %3291 = vrcp.f32 %v2090_v14  ;;  %v2102_v7 = vand.u32 2147483648, %v2090_v14  ;;  %v2100_v52 = vand.u32 2147483647, %v2090_v14  ;;  %v2056_v55 = vor.u32 1.1754944e-38, %v2055_v30 }
0x10c6   :  { %vm2054_vm1 = vcmp.eq.f32.partialorder %v2053_v25, 8.507059e+37  ;;  %vm2096_vm2 = vweird.f32 %v2090_v14  ;;  %3293 = vtanh.f32 %v2086_v39 }
0x10c7   :  { %v2103_v59 = vor.u32 1.1754944e-38, %v2102_v7  ;;  %vm2101_vm5 = vcmp.eq.f32.partialorder %v2100_v52, 8.507059e+37  ;;  %v3063_v52 = vld [vmem:[%s4384_s22 + $0x8] sm:$0xff] }
0x10c8   :  { %2504 = vmatpush.bf16.msrb.mxu0 %v3063_v52 }
0x10c9   :  { %v3290_v15 = vpop.eup %3289 }
0x10ca   :  { %v2045_v20 = vmul.f32 %v3290_v15, %v2043_v62  ;;  %vm2050_vm13 = vweird.f32 %v3290_v15 }
0x10cb   :  { %v3292_v10 = vpop.eup %3291  ;;  %vm2051_vm0 = vmor %vm2049_vm14, %vm2050_vm13 }
0x10cc   :  { %v2046_v24 = vsub.f32 1.0, %v2045_v20  ;;  %v2092_v31 = vmul.f32 %v3292_v10, %v2090_v14  ;;  %vm2097_vm15 = vweird.f32 %v3292_v10  ;;  %v3294_v9 = vpop.eup %3293 }
0x10cd   :  { %vm2098_vm3 = vmor %vm2096_vm2, %vm2097_vm15 }
0x10ce   :  { %v2047_v33 = vmul.f32 %v3290_v15, %v2046_v24  ;;  %v2093_v26 = vsub.f32 1.0, %v2092_v31 }
0x10d0   :  { %v2048_v21 = vadd.f32 %v3290_v15, %v2047_v33  ;;  %v2094_v27 = vmul.f32 %v3292_v10, %v2093_v26 }
0x10d2   :  { %v2052_v28 = vsel %vm2051_vm0, %v3290_v15, %v2048_v21  ;;  %v2095_v56 = vadd.f32 %v3292_v10, %v2094_v27 }
0x10d3   :  { %v2057_v29 = vsel %vm2054_vm1, %v2056_v55, %v2052_v28  ;;  %v3062_v55 = vld [vmem:[%s4384_s22] sm:$0xff] }
0x10d4   :  { %2064 = vrot.lane.b32.xlu1 %v2057_v29, %s3350_s6  ;;  %2060 = vrot.lane.b32.xlu0 %v2057_v29, %s3348_s10  ;;  %v2099_v35 = vsel %vm2098_vm3, %v3292_v10, %v2095_v56 }
0x10d5   :  { %v2104_v63 = vsel %vm2101_vm5, %v2103_v59, %v2099_v35  ;;  %2505 = vmatpush.bf16.msrb.mxu0 %v3062_v55 }
0x10d6   :  { %2107 = vrot.lane.b32.xlu2 %v2104_v63, %s3348_s10 }
0x10dc   :  { %2109 = vrot.lane.b32.xlu0 %v3294_v9, %s3349_s1 }
0x10de   :  { %2111 = vrot.lane.b32.xlu2 %v2104_v63, %s3350_s6 }
0x1130   :  { %v2108_v43 = vpop.permute.xlu2 %2107 }
0x1131   :  { %v2063_v32 = vpop.permute.xlu1 %2062  ;;  %v2113_v45 = vmul.f32 %v2108_v43, %v4243_v18 }
0x1132   :  { %v2067_v40 = vmul.f32 %v2063_v32, %v2057_v29 }
0x1146   :  { %v2061_v34 = vpop.permute.xlu0 %2060  ;;  %v2065_v54 = vpop.permute.xlu1 %2064 }
0x1147   :  { %v2066_v41 = vmul.f32 %v2061_v34, %v4239_v60  ;;  %v2112_v60 = vpop.permute.xlu2 %2111 }
0x1149   :  { %v4253_v42 = vadd.f32 %v2067_v40, %v2066_v41 }
0x114b   :  { %3295 = vtanh.f32 %v4253_v42 }
0x114e   :  { %v2110_v44 = vpop.permute.xlu0 %2109 }
0x114f   :  { %v2114_v51 = vmul.f32 %v2110_v44, %v2104_v63 }
0x1151   :  { %v3296_v53 = vpop.eup %3295  ;;  %v4257_v57 = vadd.f32 %v2114_v51, %v2113_v45 }
0x1152   :  { %v2070_v58 = vmul.f32 %v3296_v53, %v2065_v54 }
0x1153   :  { %3297 = vtanh.f32 %v4257_v57 }
0x1154   :  { %v2119_v47 = vpack.c.bf16 %v2070_v58, %v2070_v58  ;;  %v2400_v58 = vpack.c.bf16 %v3716_v23, %v3716_v23 }
0x1156   :  { %2128 = vmatmul.bf16.vlgmr.msra.gmra.mxu1 %v2119_v47 }
0x1159   :  { %v3298_v3 = vpop.eup %3297 }
0x115a   :  { %v2117_v4 = vmul.f32 %v3298_v3, %v2112_v60  ;;  %v2259_v60 = vld [vmem:[#allocation7 + $0x2] sm:$0x3] }
0x115c   :  { %v2166_v11 = vpack.c.bf16 %v2117_v4, %v2117_v4 }
0x115e   :  { %2175 = vmatmul.bf16.vlgmr.msra.gmra.mxu3 %v2166_v11 }
0x11d3   :  { %v2129_v17 = vpop.f32.mrf.mxu1 }
0x11d4   :  { %v2133_v22 = vadd.f32 %v2129_v17, %v2118_v13 }
0x11d6   :  { %v2913_v49 = vmul.f32 -1.442695, %v2133_v22  ;;  %3299 = vtanh.f32 %v2133_v22 }
0x11d8   :  { %3301 = vpow2.f32 %v2913_v49 }
0x11db   :  { %v2131_v18 = vpop.f32.mrf.mxu1 }
0x11dc   :  { %v3300_v46 = vpop.eup %3299 }
0x11dd   :  { %2156 = vrot.lane.b32.xlu1 %v3300_v46, %s3349_s1 }
0x11de   :  { %v3302_v8 = vpop.eup %3301 }
0x11df   :  { %v2137_v19 = vadd.f32 1.0, %v3302_v8 }
0x11e1   :  { %3303 = vrcp.f32 %v2137_v19  ;;  %v2176_v0 = vpop.f32.mrf.mxu3  ;;  %v2149_v48 = vand.u32 2147483648, %v2137_v19  ;;  %v2147_v5 = vand.u32 2147483647, %v2137_v19  ;;  %vm2143_vm7 = vweird.f32 %v2137_v19 }
0x11e2   :  { %v2180_v61 = vadd.f32 %v2176_v0, %v2165_v36 }
0x11e3   :  { %v2150_v12 = vor.u32 1.1754944e-38, %v2149_v48  ;;  %vm2148_vm9 = vcmp.eq.f32.partialorder %v2147_v5, 8.507059e+37 }
0x11e4   :  { %v2914_v38 = vmul.f32 -1.442695, %v2180_v61 }
0x11e6   :  { %3305 = vpow2.f32 %v2914_v38 }
0x11e7   :  { %v3304_v16 = vpop.eup %3303 }
0x11e8   :  { %v2139_v37 = vmul.f32 %v3304_v16, %v2137_v19  ;;  %vm2144_vm6 = vweird.f32 %v3304_v16 }
0x11e9   :  { %v2178_v2 = vpop.f32.mrf.mxu3  ;;  %vm2145_vm8 = vmor %vm2143_vm7, %vm2144_vm6 }
0x11ea   :  { %v2140_v39 = vsub.f32 1.0, %v2139_v37 }
0x11ec   :  { %v3306_v50 = vpop.eup %3305  ;;  %v2141_v1 = vmul.f32 %v3304_v16, %v2140_v39 }
0x11ed   :  { %v2184_v6 = vadd.f32 1.0, %v3306_v50 }
0x11ee   :  { %v2142_v62 = vadd.f32 %v3304_v16, %v2141_v1 }
0x11ef   :  { %3307 = vrcp.f32 %v2184_v6  ;;  %v2196_v30 = vand.u32 2147483648, %v2184_v6  ;;  %v2194_v25 = vand.u32 2147483647, %v2184_v6  ;;  %vm2190_vm11 = vweird.f32 %v2184_v6 }
0x11f0   :  { %v2146_v14 = vsel %vm2145_vm8, %v3304_v16, %v2142_v62  ;;  %3309 = vtanh.f32 %v2180_v61 }
0x11f1   :  { %v2151_v15 = vsel %vm2148_vm9, %v2150_v12, %v2146_v14  ;;  %v2197_v7 = vor.u32 1.1754944e-38, %v2196_v30  ;;  %vm2195_vm13 = vcmp.eq.f32.partialorder %v2194_v25, 8.507059e+37 }
0x11f2   :  { %2158 = vrot.lane.b32.xlu1 %v2151_v15, %s3350_s6  ;;  %2154 = vrot.lane.b32.xlu0 %v2151_v15, %s3348_s10 }
0x11f5   :  { %v3308_v20 = vpop.eup %3307 }
0x11f6   :  { %v2186_v10 = vmul.f32 %v3308_v20, %v2184_v6  ;;  %v3310_v31 = vpop.eup %3309  ;;  %vm2191_vm10 = vweird.f32 %v3308_v20 }
0x11f7   :  { %vm2192_vm12 = vmor %vm2190_vm11, %vm2191_vm10 }
0x11f8   :  { %v2187_v24 = vsub.f32 1.0, %v2186_v10 }
0x11fa   :  { %2203 = vrot.lane.b32.xlu0 %v3310_v31, %s3349_s1  ;;  %v2188_v33 = vmul.f32 %v3308_v20, %v2187_v24 }
0x11fc   :  { %v2189_v26 = vadd.f32 %v3308_v20, %v2188_v33 }
0x11fe   :  { %v2193_v21 = vsel %vm2192_vm12, %v3308_v20, %v2189_v26 }
0x11ff   :  { %v2198_v27 = vsel %vm2195_vm13, %v2197_v7, %v2193_v21 }
0x1200   :  { %2201 = vrot.lane.b32.xlu2 %v2198_v27, %s3348_s10 }
0x1208   :  { %2205 = vrot.lane.b32.xlu2 %v2198_v27, %s3350_s6 }
0x124f   :  { %v2157_v28 = vpop.permute.xlu1 %2156 }
0x1250   :  { %v2161_v29 = vmul.f32 %v2157_v28, %v2151_v15 }
0x125a   :  { %v2202_v63 = vpop.permute.xlu2 %2201 }
0x125b   :  { %v2207_v32 = vmul.f32 %v2202_v63, %v4257_v57  ;;  %v2212_v57 = vld [vmem:[#allocation6 + $0xc] sm:$0x3] }
0x1264   :  { %v2155_v56 = vpop.permute.xlu0 %2154  ;;  %v2159_v41 = vpop.permute.xlu1 %2158 }
0x1265   :  { %v2160_v59 = vmul.f32 %v2155_v56, %v4253_v42  ;;  %v2206_v42 = vpop.permute.xlu2 %2205 }
0x1267   :  { %v4273_v35 = vadd.f32 %v2161_v29, %v2160_v59 }
0x1269   :  { %3311 = vtanh.f32 %v4273_v35 }
0x126c   :  { %v2204_v9 = vpop.permute.xlu0 %2203 }
0x126d   :  { %v2208_v34 = vmul.f32 %v2204_v9, %v2198_v27 }
0x126f   :  { %v3312_v40 = vpop.eup %3311  ;;  %v4277_v43 = vadd.f32 %v2208_v34, %v2207_v32 }
0x1270   :  { %v2164_v44 = vmul.f32 %v3312_v40, %v2159_v41 }
0x1271   :  { %3313 = vtanh.f32 %v4277_v43 }
0x1272   :  { %v2213_v45 = vpack.c.bf16 %v2164_v44, %v2164_v44  ;;  %v2306_v44 = vld [vmem:[#allocation6 + $0xe] sm:$0x3] }
0x1274   :  { %2222 = vmatmul.bf16.vlgmr.msrb.gmra.mxu2 %v2213_v45 }
0x1277   :  { %v3314_v51 = vpop.eup %3313 }
0x1278   :  { %v2211_v53 = vmul.f32 %v3314_v51, %v2206_v42 }
0x127a   :  { %v2260_v54 = vpack.c.bf16 %v2211_v53, %v2211_v53 }
0x127c   :  { %2269 = vmatmul.bf16.vlgmr.msra.gmra.mxu0 %v2260_v54 }
0x128c   :  { %2959 = vmatmul.msk.bf16.vlgmr.msrb.gmra.mxu0 %vm173_vm4, %v2400_v58 }
0x12f7   :  { %v2223_v47 = vpop.f32.mrf.mxu2 }
0x12f8   :  { %v2227_v3 = vadd.f32 %v2223_v47, %v2212_v57  ;;  %v2353_v57 = vld [vmem:[#allocation7] sm:$0x3] }
0x12f9   :  { %v2270_v4 = vpop.f32.mrf.mxu0 }
0x12fa   :  { %v2915_v11 = vmul.f32 -1.442695, %v2227_v3  ;;  %3315 = vtanh.f32 %v2227_v3  ;;  %v2274_v13 = vadd.f32 %v2270_v4, %v2259_v60 }
0x12fc   :  { %3317 = vpow2.f32 %v2915_v11  ;;  %v2916_v17 = vmul.f32 -1.442695, %v2274_v13 }
0x12fe   :  { %3319 = vpow2.f32 %v2916_v17 }
0x12ff   :  { %v2225_v22 = vpop.f32.mrf.mxu2 }
0x1300   :  { %v3316_v49 = vpop.eup %3315 }
0x1301   :  { %v2272_v18 = vpop.f32.mrf.mxu0  ;;  %2250 = vrot.lane.b32.xlu1 %v3316_v49, %s3349_s1 }
0x1302   :  { %v3318_v46 = vpop.eup %3317 }
0x1303   :  { %v2231_v23 = vadd.f32 1.0, %v3318_v46 }
0x1304   :  { %v3320_v8 = vpop.eup %3319 }
0x1305   :  { %3321 = vrcp.f32 %v2231_v23  ;;  %v2278_v19 = vadd.f32 1.0, %v3320_v8  ;;  %v2243_v2 = vand.u32 2147483648, %v2231_v23  ;;  %v2241_v48 = vand.u32 2147483647, %v2231_v23 }
0x1306   :  { %vm2237_vm14 = vweird.f32 %v2231_v23 }
0x1307   :  { %3323 = vrcp.f32 %v2278_v19  ;;  %v2290_v5 = vand.u32 2147483648, %v2278_v19  ;;  %v2288_v12 = vand.u32 2147483647, %v2278_v19  ;;  %v2244_v14 = vor.u32 1.1754944e-38, %v2243_v2 }
0x1308   :  { %vm2242_vm1 = vcmp.eq.f32.partialorder %v2241_v48, 8.507059e+37  ;;  %vm2284_vm2 = vweird.f32 %v2278_v19  ;;  %3325 = vtanh.f32 %v2274_v13 }
0x1309   :  { %v4284_v36 = vpop.f32.mrf.mxu0  ;;  %v2291_v24 = vor.u32 1.1754944e-38, %v2290_v5  ;;  %vm2289_vm5 = vcmp.eq.f32.partialorder %v2288_v12, 8.507059e+37  ;;  %v3071_v12 = vld [vmem:[%s4385_s23 + $0x38] sm:$0xff] }
0x130a   :  { %2470 = vmatpush.bf16.msra.mxu2 %v3071_v12 }
0x130b   :  { %v3322_v0 = vpop.eup %3321 }
0x130c   :  { %v2233_v61 = vmul.f32 %v3322_v0, %v2231_v23  ;;  %vm2238_vm4 = vweird.f32 %v3322_v0 }
0x130d   :  { %v3324_v38 = vpop.eup %3323  ;;  %vm2239_vm0 = vmor %vm2237_vm14, %vm2238_vm4 }
0x130e   :  { %v2234_v16 = vsub.f32 1.0, %v2233_v61  ;;  %v2280_v37 = vmul.f32 %v3324_v38, %v2278_v19  ;;  %vm2285_vm15 = vweird.f32 %v3324_v38  ;;  %v3326_v33 = vpop.eup %3325 }
0x130f   :  { %vm2286_vm3 = vmor %vm2284_vm2, %vm2285_vm15 }
0x1310   :  { %v2235_v39 = vmul.f32 %v3322_v0, %v2234_v16  ;;  %v2281_v50 = vsub.f32 1.0, %v2280_v37 }
0x1311   :  { %v2509_v1 = vpop.f32.mrf.mxu0 }
0x1312   :  { %v2236_v6 = vadd.f32 %v3322_v0, %v2235_v39  ;;  %v2282_v62 = vmul.f32 %v3324_v38, %v2281_v50 }
0x1314   :  { %v2240_v15 = vsel %vm2239_vm0, %v3322_v0, %v2236_v6  ;;  %v2283_v20 = vadd.f32 %v3324_v38, %v2282_v62 }
0x1315   :  { %v2245_v10 = vsel %vm2242_vm1, %v2244_v14, %v2240_v15  ;;  %v3070_v14 = vld [vmem:[%s4385_s23 + $0x30] sm:$0xff]  ;;  %v3069_v15 = vld [vmem:[%s4385_s23 + $0x28] sm:$0xff] }
0x1316   :  { %2252 = vrot.lane.b32.xlu1 %v2245_v10, %s3350_s6  ;;  %2248 = vrot.lane.b32.xlu0 %v2245_v10, %s3348_s10  ;;  %v2287_v31 = vsel %vm2286_vm3, %v3324_v38, %v2283_v20  ;;  %v3079_v20 = vld [vmem:[%s4386_s24 + $0x38] sm:$0xff] }
0x1317   :  { %v2292_v30 = vsel %vm2289_vm5, %v2291_v24, %v2287_v31  ;;  %2471 = vmatpush.bf16.msra.mxu2 %v3070_v14  ;;  %2576 = vmatpush.bf16.msra.mxu1 %v3079_v20  ;;  %v3078_v24 = vld [vmem:[%s4386_s24 + $0x30] sm:$0xff]  ;;  %v3067_v31 = vld [vmem:[%s4385_s23 + $0x18] sm:$0xff] }
0x1318   :  { %2295 = vrot.lane.b32.xlu2 %v2292_v30, %s3348_s10 }
0x131b   :  { %2472 = vmatpush.bf16.msra.mxu2 %v3069_v15  ;;  %2577 = vmatpush.bf16.msra.mxu1 %v3078_v24 }
0x131e   :  { %2297 = vrot.lane.b32.xlu0 %v3326_v33, %s3349_s1  ;;  %v3066_v33 = vld [vmem:[%s4385_s23 + $0x10] sm:$0xff] }
0x1320   :  { %2299 = vrot.lane.b32.xlu2 %v2292_v30, %s3350_s6 }
0x1372   :  { %v2296_v52 = vpop.permute.xlu2 %2295 }
0x1373   :  { %v2251_v25 = vpop.permute.xlu1 %2250  ;;  %v2301_v28 = vmul.f32 %v2296_v52, %v4277_v43  ;;  %v3074_v52 = vld [vmem:[%s4386_s24 + $0x10] sm:$0xff] }
0x1374   :  { %v2255_v7 = vmul.f32 %v2251_v25, %v2245_v10  ;;  %v3068_v10 = vld [vmem:[%s4385_s23 + $0x20] sm:$0xff] }
0x1375   :  { %2473 = vmatpush.bf16.msra.mxu2 %v3068_v10  ;;  %v3076_v25 = vld [vmem:[%s4386_s24 + $0x20] sm:$0xff] }
0x1379   :  { %2474 = vmatpush.bf16.msra.mxu2 %v3067_v31 }
0x137d   :  { %2475 = vmatpush.bf16.msra.mxu2 %v3066_v33 }
0x1388   :  { %v2249_v26 = vpop.permute.xlu0 %2248  ;;  %v2253_v59 = vpop.permute.xlu1 %2252 }
0x1389   :  { %v2254_v21 = vmul.f32 %v2249_v26, %v4273_v35  ;;  %v2300_v35 = vpop.permute.xlu2 %2299  ;;  %v3065_v26 = vld [vmem:[%s4385_s23 + $0x8] sm:$0xff] }
0x138a   :  { %2476 = vmatpush.bf16.msra.mxu2 %v3065_v26 }
0x138b   :  { %v4292_v27 = vadd.f32 %v2255_v7, %v2254_v21  ;;  %v3075_v7 = vld [vmem:[%s4386_s24 + $0x18] sm:$0xff]  ;;  %v3064_v21 = vld [vmem:[%s4385_s23] sm:$0xff] }
0x138d   :  { %3327 = vtanh.f32 %v4292_v27 }
0x138e   :  { %2477 = vmatpush.bf16.msra.mxu2 %v3064_v21 }
0x1390   :  { %v2298_v55 = vpop.permute.xlu0 %2297 }
0x1391   :  { %v2302_v56 = vmul.f32 %v2298_v55, %v2292_v30  ;;  %v3077_v30 = vld [vmem:[%s4386_s24 + $0x28] sm:$0xff] }
0x1392   :  { %2578 = vmatpush.bf16.msra.mxu1 %v3077_v30  ;;  %v3073_v55 = vld [vmem:[%s4386_s24 + $0x8] sm:$0xff] }
0x1393   :  { %v3328_v29 = vpop.eup %3327  ;;  %v4296_v63 = vadd.f32 %v2302_v56, %v2301_v28  ;;  %v3072_v28 = vld [vmem:[%s4386_s24] sm:$0xff] }
0x1394   :  { %v2258_v9 = vmul.f32 %v3328_v29, %v2253_v59 }
0x1395   :  { %3329 = vtanh.f32 %v4296_v63 }
0x1396   :  { %v2307_v32 = vpack.c.bf16 %v2258_v9, %v2258_v9  ;;  %2579 = vmatpush.bf16.msra.mxu1 %v3076_v25 }
0x1398   :  { %2316 = vmatmul.bf16.vlgmr.msrb.gmra.mxu1 %v2307_v32 }
0x139a   :  { %2580 = vmatpush.bf16.msra.mxu1 %v3075_v7 }
0x139b   :  { %v3330_v34 = vpop.eup %3329 }
0x139c   :  { %v2305_v40 = vmul.f32 %v3330_v34, %v2300_v35 }
0x139e   :  { %v2354_v41 = vpack.c.bf16 %v2305_v40, %v2305_v40  ;;  %2581 = vmatpush.bf16.msra.mxu1 %v3074_v52 }
0x13a0   :  { %2363 = vmatmul.bf16.vlgmr.msrb.gmra.mxu3 %v2354_v41 }
0x13a2   :  { %2582 = vmatpush.bf16.msra.mxu1 %v3073_v55 }
0x13a6   :  { %2583 = vmatpush.bf16.msra.mxu1 %v3072_v28 }
0x1415   :  { %v2317_v45 = vpop.f32.mrf.mxu1 }
0x1416   :  { %v2321_v51 = vadd.f32 %v2317_v45, %v2306_v44 }
0x1418   :  { %v2917_v42 = vmul.f32 -1.442695, %v2321_v51  ;;  %3331 = vtanh.f32 %v2321_v51 }
0x141a   :  { %3333 = vpow2.f32 %v2917_v42 }
0x141d   :  { %v2319_v43 = vpop.f32.mrf.mxu1 }
0x141e   :  { %v3332_v53 = vpop.eup %3331 }
0x141f   :  { %2344 = vrot.lane.b32.xlu1 %v3332_v53, %s3349_s1 }
0x1420   :  { %v3334_v54 = vpop.eup %3333 }
0x1421   :  { %v2325_v58 = vadd.f32 1.0, %v3334_v54 }
0x1423   :  { %3335 = vrcp.f32 %v2325_v58  ;;  %v2364_v47 = vpop.f32.mrf.mxu3  ;;  %v2337_v22 = vand.u32 2147483648, %v2325_v58  ;;  %v2335_v46 = vand.u32 2147483647, %v2325_v58  ;;  %vm2331_vm7 = vweird.f32 %v2325_v58 }
0x1424   :  { %v2368_v3 = vadd.f32 %v2364_v47, %v2353_v57 }
0x1425   :  { %v2338_v19 = vor.u32 1.1754944e-38, %v2337_v22  ;;  %vm2336_vm9 = vcmp.eq.f32.partialorder %v2335_v46, 8.507059e+37 }
0x1426   :  { %v2918_v60 = vmul.f32 -1.442695, %v2368_v3 }
0x1428   :  { %3337 = vpow2.f32 %v2918_v60 }
0x1429   :  { %v3336_v4 = vpop.eup %3335 }
0x142a   :  { %v2327_v11 = vmul.f32 %v3336_v4, %v2325_v58  ;;  %vm2332_vm6 = vweird.f32 %v3336_v4 }
0x142b   :  { %v2366_v13 = vpop.f32.mrf.mxu3  ;;  %vm2333_vm8 = vmor %vm2331_vm7, %vm2332_vm6 }
0x142c   :  { %v2328_v17 = vsub.f32 1.0, %v2327_v11 }
0x142e   :  { %v3338_v49 = vpop.eup %3337  ;;  %v2329_v18 = vmul.f32 %v3336_v4, %v2328_v17 }
0x142f   :  { %v2372_v23 = vadd.f32 1.0, %v3338_v49 }
0x1430   :  { %v2330_v8 = vadd.f32 %v3336_v4, %v2329_v18 }
0x1431   :  { %3339 = vrcp.f32 %v2372_v23  ;;  %v2384_v39 = vand.u32 2147483648, %v2372_v23  ;;  %v2382_v50 = vand.u32 2147483647, %v2372_v23  ;;  %vm2378_vm11 = vweird.f32 %v2372_v23 }
0x1432   :  { %v2334_v0 = vsel %vm2333_vm8, %v3336_v4, %v2330_v8  ;;  %3341 = vtanh.f32 %v2368_v3 }
0x1433   :  { %v2339_v61 = vsel %vm2336_vm9, %v2338_v19, %v2334_v0  ;;  %v2385_v5 = vor.u32 1.1754944e-38, %v2384_v39  ;;  %vm2383_vm13 = vcmp.eq.f32.partialorder %v2382_v50, 8.507059e+37 }
0x1434   :  { %2346 = vrot.lane.b32.xlu1 %v2339_v61, %s3350_s6  ;;  %2342 = vrot.lane.b32.xlu0 %v2339_v61, %s3348_s10 }
0x1437   :  { %v3340_v38 = vpop.eup %3339 }
0x1438   :  { %v2374_v16 = vmul.f32 %v3340_v38, %v2372_v23  ;;  %v3342_v2 = vpop.eup %3341  ;;  %vm2379_vm10 = vweird.f32 %v3340_v38 }
0x1439   :  { %vm2380_vm12 = vmor %vm2378_vm11, %vm2379_vm10 }
0x143a   :  { %v2375_v37 = vsub.f32 1.0, %v2374_v16 }
0x143c   :  { %2391 = vrot.lane.b32.xlu0 %v3342_v2, %s3349_s1  ;;  %v2376_v48 = vmul.f32 %v3340_v38, %v2375_v37 }
0x143e   :  { %v2377_v1 = vadd.f32 %v3340_v38, %v2376_v48 }
0x1440   :  { %v2381_v6 = vsel %vm2380_vm12, %v3340_v38, %v2377_v1 }
0x1441   :  { %v2386_v62 = vsel %vm2383_vm13, %v2385_v5, %v2381_v6 }
0x1442   :  { %2389 = vrot.lane.b32.xlu2 %v2386_v62, %s3348_s10 }
0x144a   :  { %2393 = vrot.lane.b32.xlu2 %v2386_v62, %s3350_s6 }
0x1491   :  { %v2345_v56 = vpop.permute.xlu1 %2344 }
0x1492   :  { %v2349_v59 = vmul.f32 %v2345_v56, %v2339_v61 }
0x149c   :  { %v2390_v34 = vpop.permute.xlu2 %2389 }
0x149d   :  { %v2395_v40 = vmul.f32 %v2390_v34, %v4296_v63  ;;  %v3090_v63 = vld [vmem:[%s4387_s25] ss:$0 sm:$0xff] }
0x14a4   :  { %v2394_v54 = vpop.permute.xlu2 %2393 }
0x14a6   :  { %v2343_v29 = vpop.permute.xlu0 %2342  ;;  %v2347_v45 = vpop.permute.xlu1 %2346 }
0x14a7   :  { %v2348_v9 = vmul.f32 %v2343_v29, %v4292_v27 }
0x14a9   :  { %v2350_v32 = vadd.f32 %v2349_v59, %v2348_v9 }
0x14ab   :  { %3343 = vtanh.f32 %v2350_v32 }
0x14ae   :  { %v2392_v35 = vpop.permute.xlu0 %2391 }
0x14af   :  { %v2396_v41 = vmul.f32 %v2392_v35, %v2386_v62 }
0x14b1   :  { %v3344_v44 = vpop.eup %3343  ;;  %v2397_v51 = vadd.f32 %v2396_v41, %v2395_v40 }
0x14b2   :  { %v2352_v42 = vmul.f32 %v3344_v44, %v2347_v45 }
0x14b3   :  { %3345 = vtanh.f32 %v2397_v51 }
0x14b4   :  { %v2405_v43 = vpack.c.bf16 %v2352_v42, %v2352_v42 }
0x14b6   :  { %2478 = vmatmul.bf16.vlgmr.msra.gmra.mxu2 %v2405_v43 }
0x14b9   :  { %v3346_v53 = vpop.eup %3345 }
0x14ba   :  { %v2399_v58 = vmul.f32 %v3346_v53, %v2394_v54 }
0x14bc   :  { %v2511_v57 = vpack.c.bf16 %v2399_v58, %v2399_v58 }
0x14be   :  { %2584 = vmatmul.bf16.vlgmr.msra.gmra.mxu1 %v2511_v57 }
0x1539   :  { %v2479_v27 = vpop.f32.mrf.mxu2 }
0x153a   :  { %v2508_v47 = vadd.f32 %v4284_v36, %v2479_v27 }
0x153b   :  { %v2585_v3 = vpop.f32.mrf.mxu1 }
0x153c   :  { %v2589_v60 = vadd.f32 %v2585_v3, %v2508_v47 }
0x153e   :  { %v2594_v4 = vadd.f32 %v3090_v63, %v2589_v60 }
0x1540   :  { %2595 = vst [vmem:[%s4388_s26] sm:$0x3] %v2594_v4 }
0x1541   :  { %v2481_v11 = vpop.f32.mrf.mxu2 }
0x1543   :  { %v2587_v13 = vpop.f32.mrf.mxu1 }

</bundles_post_ra>
